<compile_context>
chip_gen: v6e
topology: v6e:2x2x1
jax: 0.10.0
libtpu: 0.0.40
codegen_flags: <defaults>
</compile_context>

<pallas_src>
import functools

import jax
import jax.numpy as jnp
from jax.experimental import pallas as pl
from jax.experimental.pallas import tpu as pltpu

EPS = 1e-5


def _cdiv(a, b):
    return -(-a // b)


def _round_up(a, b):
    return _cdiv(a, b) * b


# ---------------------------------------------------------------------------
# Pallas kernels
# ---------------------------------------------------------------------------
def _conv1x1_bn_lrelu_kernel(x_ref, w_ref, s_ref, b_ref, o_ref, *, neg_slope):
    # x_ref: (TILE_M, Cin) bf16   w_ref: (Cin, Cout) bf16
    # s_ref/b_ref: (1, Cout) f32  o_ref: (TILE_M, Cout) f32
    y = jnp.dot(x_ref[...], w_ref[...], preferred_element_type=jnp.float32)
    y = y * s_ref[...] + b_ref[...]
    o_ref[...] = jnp.where(y >= 0, y, neg_slope * y).astype(o_ref.dtype)


def _merge3x3_bn_lrelu_kernel(x_ref, w_ref, s_ref, b_ref, o_ref, acc_ref,
                              *, TH, W, C, neg_slope):
    # x_ref:   (1, 1, TH+2, W+2, C) bf16  -- merged (base + upsampled) strip,
    #                                        zero-padded halo already included
    # w_ref:   (9, C, C) bf16             -- conv weights, tap-major (dy*3+dx)
    # s_ref/b_ref: (1, C) f32             -- folded BN scale / bias
    # o_ref:   (1, 1, TH*W, C) f32
    # acc_ref: (TH*W, C) f32 VMEM scratch accumulator
    x = x_ref[0, 0]                                     # (TH+2, W+2, C)

    def patch(dy, dx):
        return x[dy:dy + TH, dx:dx + W, :].reshape(TH * W, C)

    acc_ref[...] = jnp.dot(patch(0, 0), w_ref[0],
                           preferred_element_type=jnp.float32)
    for k in range(1, 9):
        dy, dx = k // 3, k % 3
        acc_ref[...] += jnp.dot(patch(dy, dx), w_ref[k],
                                preferred_element_type=jnp.float32)

    y = acc_ref[...] * s_ref[...] + b_ref[...]
    y = jnp.where(y >= 0, y, neg_slope * y)
    o_ref[0, 0] = y.astype(o_ref.dtype)


# ---------------------------------------------------------------------------
# Wrappers around pallas_call
# ---------------------------------------------------------------------------
def conv1x1_bn_lrelu(x_nhwc, w, scale, bias, neg_slope, tile_m=512):
    """1x1 conv (as matmul) + folded BN + LeakyReLU, tiled over M = N*H*W."""
    n, h, wdt, cin = x_nhwc.shape
    cout = w.shape[1]
    m = n * h * wdt

    tm = tile_m if m >= tile_m else _round_up(m, 8)
    m_pad = _round_up(m, tm)

    xf = x_nhwc.astype(jnp.bfloat16).reshape(m, cin)
    if m_pad != m:
        xf = jnp.pad(xf, ((0, m_pad - m), (0, 0)))

    out = pl.pallas_call(
        functools.partial(_conv1x1_bn_lrelu_kernel, neg_slope=neg_slope),
        grid=(m_pad // tm,),
        in_specs=[
            pl.BlockSpec((tm, cin), lambda i: (i, 0)),
            pl.BlockSpec((cin, cout), lambda i: (0, 0)),
            pl.BlockSpec((1, cout), lambda i: (0, 0)),
            pl.BlockSpec((1, cout), lambda i: (0, 0)),
        ],
        out_specs=pl.BlockSpec((tm, cout), lambda i: (i, 0)),
        out_shape=jax.ShapeDtypeStruct((m_pad, cout), jnp.float32),
        compiler_params=pltpu.CompilerParams(
            dimension_semantics=("parallel",)),
    )(xf, w.astype(jnp.bfloat16),
      scale.reshape(1, cout).astype(jnp.float32),
      bias.reshape(1, cout).astype(jnp.float32))

    return out[:m].reshape(n, h, wdt, cout)


def conv3x3_bn_lrelu(x_nhwc, w, scale, bias, neg_slope, tile_h=8):
    """3x3 conv (pad=1) + folded BN + LeakyReLU on a pre-merged feature map.

    Grid is (batch, row_tile); each grid cell receives one bf16 row strip with
    its +1/-1 halo already included (strips built once in XLA), so the kernel
    input is a single tensor and BlockSpec pipelining double-buffers the DMA.
    """
    n, h, wdt, c = x_nhwc.shape
    th = tile_h if h >= tile_h else h
    h_pad = _round_up(h, th)
    nt = h_pad // th

    # zero-pad once (spatial halo + row padding to a multiple of th)
    xp = jnp.pad(x_nhwc.astype(jnp.bfloat16),
                 ((0, 0), (1, 1 + h_pad - h), (1, 1), (0, 0)))
    # overlapping row strips: (n, nt, th+2, w+2, c)
    ridx = jnp.arange(nt)[:, None] * th + jnp.arange(th + 2)[None, :]
    strips = xp[:, ridx]

    w9 = w.reshape(9, c, c).astype(jnp.bfloat16)

    out = pl.pallas_call(
        functools.partial(_merge3x3_bn_lrelu_kernel,
                          TH=th, W=wdt, C=c, neg_slope=neg_slope),
        grid=(n, nt),
        in_specs=[
            pl.BlockSpec((1, 1, th + 2, wdt + 2, c),
                         lambda b, t: (b, t, 0, 0, 0)),
            pl.BlockSpec((9, c, c), lambda b, t: (0, 0, 0)),
            pl.BlockSpec((1, c), lambda b, t: (0, 0)),
            pl.BlockSpec((1, c), lambda b, t: (0, 0)),
        ],
        out_specs=pl.BlockSpec((1, 1, th * wdt, c),
                               lambda b, t: (b, t, 0, 0)),
        out_shape=jax.ShapeDtypeStruct((n, nt, th * wdt, c), jnp.float32),
        scratch_shapes=[pltpu.VMEM((th * wdt, c), jnp.float32)],
        compiler_params=pltpu.CompilerParams(
            dimension_semantics=("parallel", "parallel")),
    )(strips, w9,
      scale.reshape(1, c).astype(jnp.float32),
      bias.reshape(1, c).astype(jnp.float32))

    return out.reshape(n, h_pad, wdt, c)[:, :h]


def nearest_upsample(x_nhwc, out_h, out_w):
    # F.interpolate(mode='nearest'): src_idx = floor(dst_idx * in / out)
    _, h, w, _ = x_nhwc.shape
    rows = (jnp.arange(out_h) * h) // out_h
    cols = (jnp.arange(out_w) * w) // out_w
    return x_nhwc[:, rows][:, :, cols]


# ---------------------------------------------------------------------------
# Parameter init (deterministic, synthetic)
# ---------------------------------------------------------------------------
def init_params(key, in_channels_list, out_channels):
    names = ["output1", "output2", "output3", "merge1", "merge2"]
    cins = [in_channels_list[0], in_channels_list[1], in_channels_list[2],
            out_channels, out_channels]
    ksizes = [1, 1, 1, 3, 3]
    keys = jax.random.split(key, 2 * len(names))
    params = {}
    for i, (nm, cin, ksz) in enumerate(zip(names, cins, ksizes)):
        kw, kb = keys[2 * i], keys[2 * i + 1]
        if ksz == 1:
            w = 0.1 * jax.random.normal(kw, (cin, out_channels), jnp.float32)
        else:
            w = 0.1 * jax.random.normal(kw, (ksz, ksz, cin, out_channels),
                                        jnp.float32)
        kg, kbe, km, kv = jax.random.split(kb, 4)
        gamma = 0.5 + jax.random.uniform(kg, (out_channels,), jnp.float32)
        beta = 0.1 * jax.random.normal(kbe, (out_channels,), jnp.float32)
        mean = 0.1 * jax.random.normal(km, (out_channels,), jnp.float32)
        var = 0.5 + jax.random.uniform(kv, (out_channels,), jnp.float32)
        scale = gamma / jnp.sqrt(var + EPS)          # folded BN (inference)
        bias = beta - mean * scale
        params[nm] = (w, scale, bias)
    return params


# ---------------------------------------------------------------------------
# FPN forward (mirrors the PyTorch module semantics)
# ---------------------------------------------------------------------------
def fpn_forward(inputs_nchw, params, out_channels):
    neg = 0.1 if out_channels <= 64 else 0.0
    xs = [jnp.transpose(x, (0, 2, 3, 1)) for x in inputs_nchw]  # NCHW -> NHWC

    o1 = conv1x1_bn_lrelu(xs[0], *params["output1"], neg)
    o2 = conv1x1_bn_lrelu(xs[1], *params["output2"], neg)
    o3 = conv1x1_bn_lrelu(xs[2], *params["output3"], neg)

    # skip-add done once in f32 XLA glue -> merge kernel gets ONE input tensor
    up3 = nearest_upsample(o3, o2.shape[1], o2.shape[2])
    o2 = conv3x3_bn_lrelu(o2 + up3, *params["merge2"], neg)

    up2 = nearest_upsample(o2, o1.shape[1], o1.shape[2])
    o1 = conv3x3_bn_lrelu(o1 + up2, *params["merge1"], neg)

    # back to NCHW to match PyTorch outputs
    return [jnp.transpose(o, (0, 3, 1, 2)) for o in (o1, o2, o3)]


if __name__ == "__main__":
    key = jax.random.PRNGKey(0)
    k1, k2, k3, kp = jax.random.split(key, 4)

    in_channels_list = [8, 16, 32]
    out_channels = 16
    N = 2
    # three pyramid levels (NCHW, as in the PyTorch module)
    x1 = jax.random.normal(k1, (N, in_channels_list[0], 16, 16), jnp.float32)
    x2 = jax.random.normal(k2, (N, in_channels_list[1], 8, 8), jnp.float32)
    x3 = jax.random.normal(k3, (N, in_channels_list[2], 4, 4), jnp.float32)

    params = init_params(kp, in_channels_list, out_channels)

    fwd = jax.jit(lambda a, b, c: fpn_forward([a, b, c], params, out_channels))
    outs = fwd(x1, x2, x3)
    for o in outs:
        jax.block_until_ready(o)

    assert outs[0].shape == (N, out_channels, 16, 16)
    assert outs[1].shape == (N, out_channels, 8, 8)
    assert outs[2].shape == (N, out_channels, 4, 4)
    for o in outs:
        assert bool(jnp.all(jnp.isfinite(o)))
    print("KERNEL_OK")
</pallas_src>

<mosaic_0001>
module attributes {stable_mosaic.version = 11 : i64} {
  func.func @_conv1x1_bn_lrelu_kernel(%arg0: i32, %arg1: memref<32x32xbf16, #tpu.memory_space<vmem>>, %arg2: memref<32x16xbf16, #tpu.memory_space<vmem>>, %arg3: memref<1x16xf32, #tpu.memory_space<vmem>>, %arg4: memref<1x16xf32, #tpu.memory_space<vmem>>, %arg5: memref<32x16xf32, #tpu.memory_space<vmem>>) attributes {dimension_semantics = [#tpu.dimension_semantics<parallel>], iteration_bounds = array<i64: 1>, scalar_prefetch = 0 : i64, scratch_operands = 0 : i64, tpu.core_type = #tpu.core_type<tc>, window_params = [{transform_indices = @transform_0, window_bounds = array<i64: 32, 32>}, {pipeline_mode = #tpu.pipeline_mode<synchronous>, transform_indices = @transform_1, window_bounds = array<i64: 32, 16>}, {pipeline_mode = #tpu.pipeline_mode<synchronous>, transform_indices = @transform_2, window_bounds = array<i64: 1, 16>}, {pipeline_mode = #tpu.pipeline_mode<synchronous>, transform_indices = @transform_3, window_bounds = array<i64: 1, 16>}, {transform_indices = @transform_4, window_bounds = array<i64: 32, 16>}]} {
    %c0 = arith.constant 0 : index
    %c0_0 = arith.constant 0 : index
    %0 = vector.load %arg1[%c0, %c0_0] : memref<32x32xbf16, #tpu.memory_space<vmem>>, vector<32x32xbf16>
    %c0_1 = arith.constant 0 : index
    %c0_2 = arith.constant 0 : index
    %1 = vector.load %arg2[%c0_1, %c0_2] : memref<32x16xbf16, #tpu.memory_space<vmem>>, vector<32x16xbf16>
    %cst = arith.constant dense<0.000000e+00> : vector<32x16xf32>
    %2 = tpu.matmul %0, %1, %cst {dimension_numbers = #tpu.dot_dimension_numbers<[1], [0], [0], [1], [0, 0, 1, 1], [], []>} : vector<32x32xbf16>, vector<32x16xbf16>, vector<32x16xf32> -> vector<32x16xf32>
    %c0_3 = arith.constant 0 : index
    %c0_4 = arith.constant 0 : index
    %3 = vector.load %arg3[%c0_3, %c0_4] : memref<1x16xf32, #tpu.memory_space<vmem>>, vector<1x16xf32>
    %4 = vector.broadcast %3 : vector<1x16xf32> to vector<32x16xf32>
    %5 = arith.mulf %2, %4 : vector<32x16xf32>
    %c0_5 = arith.constant 0 : index
    %c0_6 = arith.constant 0 : index
    %6 = vector.load %arg4[%c0_5, %c0_6] : memref<1x16xf32, #tpu.memory_space<vmem>>, vector<1x16xf32>
    %7 = vector.broadcast %6 : vector<1x16xf32> to vector<32x16xf32>
    %8 = arith.addf %5, %7 : vector<32x16xf32>
    %cst_7 = arith.constant 0.000000e+00 : f32
    %9 = vector.broadcast %cst_7 : f32 to vector<32x16xf32>
    %10 = arith.cmpf oge, %8, %9 : vector<32x16xf32>
    %cst_8 = arith.constant 1.000000e-01 : f32
    %11 = vector.broadcast %cst_8 : f32 to vector<32x16xf32>
    %12 = arith.mulf %11, %8 : vector<32x16xf32>
    %13 = arith.select %10, %8, %12 : vector<32x16xi1>, vector<32x16xf32>
    %c0_9 = arith.constant 0 : index
    %c0_10 = arith.constant 0 : index
    %14 = vector.load %arg5[%c0_9, %c0_10] : memref<32x16xf32, #tpu.memory_space<vmem>>, vector<32x16xf32>
    tpu.vector_store %arg5[%c0_9, %c0_10], %13 {strides = array<i32>} : memref<32x16xf32, #tpu.memory_space<vmem>>, vector<32x16xf32>,
    return
  }
  func.func @transform_0(%arg0: i32) -> (i32, i32) {
    %c0_i32 = arith.constant 0 : i32
    %c0_i32_0 = arith.constant 0 : i32
    return %arg0, %c0_i32 : i32, i32
  }
  func.func @transform_1(%arg0: i32) -> (i32, i32) {
    %c0_i32 = arith.constant 0 : i32
    %c0_i32_0 = arith.constant 0 : i32
    %c0_i32_1 = arith.constant 0 : i32
    return %c0_i32, %c0_i32_0 : i32, i32
  }
  func.func @transform_2(%arg0: i32) -> (i32, i32) {
    %c0_i32 = arith.constant 0 : i32
    %c0_i32_0 = arith.constant 0 : i32
    %c0_i32_1 = arith.constant 0 : i32
    return %c0_i32, %c0_i32_0 : i32, i32
  }
  func.func @transform_3(%arg0: i32) -> (i32, i32) {
    %c0_i32 = arith.constant 0 : i32
    %c0_i32_0 = arith.constant 0 : i32
    %c0_i32_1 = arith.constant 0 : i32
    return %c0_i32, %c0_i32_0 : i32, i32
  }
  func.func @transform_4(%arg0: i32) -> (i32, i32) {
    %c0_i32 = arith.constant 0 : i32
    %c0_i32_0 = arith.constant 0 : i32
    return %arg0, %c0_i32 : i32, i32
  }
}

module attributes {stable_mosaic.version = 11 : i64} {
  func.func @_conv1x1_bn_lrelu_kernel(%arg0: i32, %arg1: memref<128x16xbf16, #tpu.memory_space<vmem>>, %arg2: memref<16x16xbf16, #tpu.memory_space<vmem>>, %arg3: memref<1x16xf32, #tpu.memory_space<vmem>>, %arg4: memref<1x16xf32, #tpu.memory_space<vmem>>, %arg5: memref<128x16xf32, #tpu.memory_space<vmem>>) attributes {dimension_semantics = [#tpu.dimension_semantics<parallel>], iteration_bounds = array<i64: 1>, scalar_prefetch = 0 : i64, scratch_operands = 0 : i64, tpu.core_type = #tpu.core_type<tc>, window_params = [{transform_indices = @transform_0, window_bounds = array<i64: 128, 16>}, {pipeline_mode = #tpu.pipeline_mode<synchronous>, transform_indices = @transform_1, window_bounds = array<i64: 16, 16>}, {pipeline_mode = #tpu.pipeline_mode<synchronous>, transform_indices = @transform_2, window_bounds = array<i64: 1, 16>}, {pipeline_mode = #tpu.pipeline_mode<synchronous>, transform_indices = @transform_3, window_bounds = array<i64: 1, 16>}, {transform_indices = @transform_4, window_bounds = array<i64: 128, 16>}]} {
    %c0 = arith.constant 0 : index
    %c0_0 = arith.constant 0 : index
    %0 = vector.load %arg1[%c0, %c0_0] : memref<128x16xbf16, #tpu.memory_space<vmem>>, vector<128x16xbf16>
    %c0_1 = arith.constant 0 : index
    %c0_2 = arith.constant 0 : index
    %1 = vector.load %arg2[%c0_1, %c0_2] : memref<16x16xbf16, #tpu.memory_space<vmem>>, vector<16x16xbf16>
    %cst = arith.constant dense<0.000000e+00> : vector<128x16xf32>
    %2 = tpu.matmul %0, %1, %cst {dimension_numbers = #tpu.dot_dimension_numbers<[1], [0], [0], [1], [0, 0, 1, 1], [], []>} : vector<128x16xbf16>, vector<16x16xbf16>, vector<128x16xf32> -> vector<128x16xf32>
    %c0_3 = arith.constant 0 : index
    %c0_4 = arith.constant 0 : index
    %3 = vector.load %arg3[%c0_3, %c0_4] : memref<1x16xf32, #tpu.memory_space<vmem>>, vector<1x16xf32>
    %4 = vector.broadcast %3 : vector<1x16xf32> to vector<128x16xf32>
    %5 = arith.mulf %2, %4 : vector<128x16xf32>
    %c0_5 = arith.constant 0 : index
    %c0_6 = arith.constant 0 : index
    %6 = vector.load %arg4[%c0_5, %c0_6] : memref<1x16xf32, #tpu.memory_space<vmem>>, vector<1x16xf32>
    %7 = vector.broadcast %6 : vector<1x16xf32> to vector<128x16xf32>
    %8 = arith.addf %5, %7 : vector<128x16xf32>
    %cst_7 = arith.constant 0.000000e+00 : f32
    %9 = vector.broadcast %cst_7 : f32 to vector<128x16xf32>
    %10 = arith.cmpf oge, %8, %9 : vector<128x16xf32>
    %cst_8 = arith.constant 1.000000e-01 : f32
    %11 = vector.broadcast %cst_8 : f32 to vector<128x16xf32>
    %12 = arith.mulf %11, %8 : vector<128x16xf32>
    %13 = arith.select %10, %8, %12 : vector<128x16xi1>, vector<128x16xf32>
    %c0_9 = arith.constant 0 : index
    %c0_10 = arith.constant 0 : index
    %14 = vector.load %arg5[%c0_9, %c0_10] : memref<128x16xf32, #tpu.memory_space<vmem>>, vector<128x16xf32>
    tpu.vector_store %arg5[%c0_9, %c0_10], %13 {strides = array<i32>} : memref<128x16xf32, #tpu.memory_space<vmem>>, vector<128x16xf32>,
    return
  }
  func.func @transform_0(%arg0: i32) -> (i32, i32) {
    %c0_i32 = arith.constant 0 : i32
    %c0_i32_0 = arith.constant 0 : i32
    return %arg0, %c0_i32 : i32, i32
  }
  func.func @transform_1(%arg0: i32) -> (i32, i32) {
    %c0_i32 = arith.constant 0 : i32
    %c0_i32_0 = arith.constant 0 : i32
    %c0_i32_1 = arith.constant 0 : i32
    return %c0_i32, %c0_i32_0 : i32, i32
  }
  func.func @transform_2(%arg0: i32) -> (i32, i32) {
    %c0_i32 = arith.constant 0 : i32
    %c0_i32_0 = arith.constant 0 : i32
    %c0_i32_1 = arith.constant 0 : i32
    return %c0_i32, %c0_i32_0 : i32, i32
  }
  func.func @transform_3(%arg0: i32) -> (i32, i32) {
    %c0_i32 = arith.constant 0 : i32
    %c0_i32_0 = arith.constant 0 : i32
    %c0_i32_1 = arith.constant 0 : i32
    return %c0_i32, %c0_i32_0 : i32, i32
  }
  func.func @transform_4(%arg0: i32) -> (i32, i32) {
    %c0_i32 = arith.constant 0 : i32
    %c0_i32_0 = arith.constant 0 : i32
    return %arg0, %c0_i32 : i32, i32
  }
}

module attributes {stable_mosaic.version = 11 : i64} {
  func.func @_merge3x3_bn_lrelu_kernel(%arg0: i32, %arg1: i32, %arg2: memref<1x1x10x10x16xbf16, #tpu.memory_space<vmem>>, %arg3: memref<9x16x16xbf16, #tpu.memory_space<vmem>>, %arg4: memref<1x16xf32, #tpu.memory_space<vmem>>, %arg5: memref<1x16xf32, #tpu.memory_space<vmem>>, %arg6: memref<1x1x64x16xf32, #tpu.memory_space<vmem>>, %arg7: memref<64x16xf32, #tpu.memory_space<vmem>>) attributes {dimension_semantics = [#tpu.dimension_semantics<parallel>, #tpu.dimension_semantics<parallel>], iteration_bounds = array<i64: 2, 1>, scalar_prefetch = 0 : i64, scratch_operands = 1 : i64, tpu.core_type = #tpu.core_type<tc>, window_params = [{transform_indices = @transform_0, window_bounds = array<i64: 1, 1, 10, 10, 16>}, {pipeline_mode = #tpu.pipeline_mode<synchronous>, transform_indices = @transform_1, window_bounds = array<i64: 9, 16, 16>}, {pipeline_mode = #tpu.pipeline_mode<synchronous>, transform_indices = @transform_2, window_bounds = array<i64: 1, 16>}, {pipeline_mode = #tpu.pipeline_mode<synchronous>, transform_indices = @transform_3, window_bounds = array<i64: 1, 16>}, {transform_indices = @transform_4, window_bounds = array<i64: 1, 1, 64, 16>}]} {
    %c0 = arith.constant 0 : index
    %c0_0 = arith.constant 0 : index
    %c0_1 = arith.constant 0 : index
    %c0_2 = arith.constant 0 : index
    %c0_3 = arith.constant 0 : index
    %0 = vector.load %arg2[%c0, %c0_0, %c0_1, %c0_2, %c0_3] : memref<1x1x10x10x16xbf16, #tpu.memory_space<vmem>>, vector<1x1x10x10x16xbf16>
    %1 = vector.shape_cast %0 : vector<1x1x10x10x16xbf16> to vector<10x10x16xbf16>
    %2 = vector.extract_strided_slice %1 {offsets = [0, 0, 0], sizes = [8, 8, 16], strides = [1, 1, 1]} : vector<10x10x16xbf16> to vector<8x8x16xbf16>
    %3 = vector.shape_cast %2 : vector<8x8x16xbf16> to vector<64x16xbf16>
    %c0_4 = arith.constant 0 : index
    %c0_5 = arith.constant 0 : index
    %c0_6 = arith.constant 0 : index
    %4 = vector.load %arg3[%c0_4, %c0_5, %c0_6] : memref<9x16x16xbf16, #tpu.memory_space<vmem>>, vector<1x16x16xbf16>
    %5 = vector.shape_cast %4 : vector<1x16x16xbf16> to vector<16x16xbf16>
    %cst = arith.constant dense<0.000000e+00> : vector<64x16xf32>
    %6 = tpu.matmul %3, %5, %cst {dimension_numbers = #tpu.dot_dimension_numbers<[1], [0], [0], [1], [0, 0, 1, 1], [], []>} : vector<64x16xbf16>, vector<16x16xbf16>, vector<64x16xf32> -> vector<64x16xf32>
    %c0_7 = arith.constant 0 : index
    %c0_8 = arith.constant 0 : index
    %7 = vector.load %arg7[%c0_7, %c0_8] : memref<64x16xf32, #tpu.memory_space<vmem>>, vector<64x16xf32>
    tpu.vector_store %arg7[%c0_7, %c0_8], %6 {strides = array<i32>} : memref<64x16xf32, #tpu.memory_space<vmem>>, vector<64x16xf32>,
    %c0_9 = arith.constant 0 : index
    %c0_10 = arith.constant 0 : index
    %8 = vector.load %arg7[%c0_9, %c0_10] : memref<64x16xf32, #tpu.memory_space<vmem>>, vector<64x16xf32>
    %9 = vector.extract_strided_slice %1 {offsets = [0, 1, 0], sizes = [8, 8, 16], strides = [1, 1, 1]} : vector<10x10x16xbf16> to vector<8x8x16xbf16>
    %10 = vector.shape_cast %9 : vector<8x8x16xbf16> to vector<64x16xbf16>
    %c1 = arith.constant 1 : index
    %c0_11 = arith.constant 0 : index
    %c0_12 = arith.constant 0 : index
    %11 = vector.load %arg3[%c1, %c0_11, %c0_12] : memref<9x16x16xbf16, #tpu.memory_space<vmem>>, vector<1x16x16xbf16>
    %12 = vector.shape_cast %11 : vector<1x16x16xbf16> to vector<16x16xbf16>
    %cst_13 = arith.constant dense<0.000000e+00> : vector<64x16xf32>
    %13 = tpu.matmul %10, %12, %cst_13 {dimension_numbers = #tpu.dot_dimension_numbers<[1], [0], [0], [1], [0, 0, 1, 1], [], []>} : vector<64x16xbf16>, vector<16x16xbf16>, vector<64x16xf32> -> vector<64x16xf32>
    %14 = arith.addf %8, %13 : vector<64x16xf32>
    %c0_14 = arith.constant 0 : index
    %c0_15 = arith.constant 0 : index
    %15 = vector.load %arg7[%c0_14, %c0_15] : memref<64x16xf32, #tpu.memory_space<vmem>>, vector<64x16xf32>
    tpu.vector_store %arg7[%c0_14, %c0_15], %14 {strides = array<i32>} : memref<64x16xf32, #tpu.memory_space<vmem>>, vector<64x16xf32>,
    %c0_16 = arith.constant 0 : index
    %c0_17 = arith.constant 0 : index
    %16 = vector.load %arg7[%c0_16, %c0_17] : memref<64x16xf32, #tpu.memory_space<vmem>>, vector<64x16xf32>
    %17 = vector.extract_strided_slice %1 {offsets = [0, 2, 0], sizes = [8, 8, 16], strides = [1, 1, 1]} : vector<10x10x16xbf16> to vector<8x8x16xbf16>
    %18 = vector.shape_cast %17 : vector<8x8x16xbf16> to vector<64x16xbf16>
    %c2 = arith.constant 2 : index
    %c0_18 = arith.constant 0 : index
    %c0_19 = arith.constant 0 : index
    %19 = vector.load %arg3[%c2, %c0_18, %c0_19] : memref<9x16x16xbf16, #tpu.memory_space<vmem>>, vector<1x16x16xbf16>
    %20 = vector.shape_cast %19 : vector<1x16x16xbf16> to vector<16x16xbf16>
    %cst_20 = arith.constant dense<0.000000e+00> : vector<64x16xf32>
    %21 = tpu.matmul %18, %20, %cst_20 {dimension_numbers = #tpu.dot_dimension_numbers<[1], [0], [0], [1], [0, 0, 1, 1], [], []>} : vector<64x16xbf16>, vector<16x16xbf16>, vector<64x16xf32> -> vector<64x16xf32>
    %22 = arith.addf %16, %21 : vector<64x16xf32>
    %c0_21 = arith.constant 0 : index
    %c0_22 = arith.constant 0 : index
    %23 = vector.load %arg7[%c0_21, %c0_22] : memref<64x16xf32, #tpu.memory_space<vmem>>, vector<64x16xf32>
    tpu.vector_store %arg7[%c0_21, %c0_22], %22 {strides = array<i32>} : memref<64x16xf32, #tpu.memory_space<vmem>>, vector<64x16xf32>,
    %c0_23 = arith.constant 0 : index
    %c0_24 = arith.constant 0 : index
    %24 = vector.load %arg7[%c0_23, %c0_24] : memref<64x16xf32, #tpu.memory_space<vmem>>, vector<64x16xf32>
    %25 = vector.extract_strided_slice %1 {offsets = [1, 0, 0], sizes = [8, 8, 16], strides = [1, 1, 1]} : vector<10x10x16xbf16> to vector<8x8x16xbf16>
    %26 = vector.shape_cast %25 : vector<8x8x16xbf16> to vector<64x16xbf16>
    %c3 = arith.constant 3 : index
    %c0_25 = arith.constant 0 : index
    %c0_26 = arith.constant 0 : index
    %27 = vector.load %arg3[%c3, %c0_25, %c0_26] : memref<9x16x16xbf16, #tpu.memory_space<vmem>>, vector<1x16x16xbf16>
    %28 = vector.shape_cast %27 : vector<1x16x16xbf16> to vector<16x16xbf16>
    %cst_27 = arith.constant dense<0.000000e+00> : vector<64x16xf32>
    %29 = tpu.matmul %26, %28, %cst_27 {dimension_numbers = #tpu.dot_dimension_numbers<[1], [0], [0], [1], [0, 0, 1, 1], [], []>} : vector<64x16xbf16>, vector<16x16xbf16>, vector<64x16xf32> -> vector<64x16xf32>
    %30 = arith.addf %24, %29 : vector<64x16xf32>
    %c0_28 = arith.constant 0 : index
    %c0_29 = arith.constant 0 : index
    %31 = vector.load %arg7[%c0_28, %c0_29] : memref<64x16xf32, #tpu.memory_space<vmem>>, vector<64x16xf32>
    tpu.vector_store %arg7[%c0_28, %c0_29], %30 {strides = array<i32>} : memref<64x16xf32, #tpu.memory_space<vmem>>, vector<64x16xf32>,
    %c0_30 = arith.constant 0 : index
    %c0_31 = arith.constant 0 : index
    %32 = vector.load %arg7[%c0_30, %c0_31] : memref<64x16xf32, #tpu.memory_space<vmem>>, vector<64x16xf32>
    %33 = vector.extract_strided_slice %1 {offsets = [1, 1, 0], sizes = [8, 8, 16], strides = [1, 1, 1]} : vector<10x10x16xbf16> to vector<8x8x16xbf16>
    %34 = vector.shape_cast %33 : vector<8x8x16xbf16> to vector<64x16xbf16>
    %c4 = arith.constant 4 : index
    %c0_32 = arith.constant 0 : index
    %c0_33 = arith.constant 0 : index
    %35 = vector.load %arg3[%c4, %c0_32, %c0_33] : memref<9x16x16xbf16, #tpu.memory_space<vmem>>, vector<1x16x16xbf16>
    %36 = vector.shape_cast %35 : vector<1x16x16xbf16> to vector<16x16xbf16>
    %cst_34 = arith.constant dense<0.000000e+00> : vector<64x16xf32>
    %37 = tpu.matmul %34, %36, %cst_34 {dimension_numbers = #tpu.dot_dimension_numbers<[1], [0], [0], [1], [0, 0, 1, 1], [], []>} : vector<64x16xbf16>, vector<16x16xbf16>, vector<64x16xf32> -> vector<64x16xf32>
    %38 = arith.addf %32, %37 : vector<64x16xf32>
    %c0_35 = arith.constant 0 : index
    %c0_36 = arith.constant 0 : index
    %39 = vector.load %arg7[%c0_35, %c0_36] : memref<64x16xf32, #tpu.memory_space<vmem>>, vector<64x16xf32>
    tpu.vector_store %arg7[%c0_35, %c0_36], %38 {strides = array<i32>} : memref<64x16xf32, #tpu.memory_space<vmem>>, vector<64x16xf32>,
    %c0_37 = arith.constant 0 : index
    %c0_38 = arith.constant 0 : index
    %40 = vector.load %arg7[%c0_37, %c0_38] : memref<64x16xf32, #tpu.memory_space<vmem>>, vector<64x16xf32>
    %41 = vector.extract_strided_slice %1 {offsets = [1, 2, 0], sizes = [8, 8, 16], strides = [1, 1, 1]} : vector<10x10x16xbf16> to vector<8x8x16xbf16>
    %42 = vector.shape_cast %41 : vector<8x8x16xbf16> to vector<64x16xbf16>
    %c5 = arith.constant 5 : index
    %c0_39 = arith.constant 0 : index
    %c0_40 = arith.constant 0 : index
    %43 = vector.load %arg3[%c5, %c0_39, %c0_40] : memref<9x16x16xbf16, #tpu.memory_space<vmem>>, vector<1x16x16xbf16>
    %44 = vector.shape_cast %43 : vector<1x16x16xbf16> to vector<16x16xbf16>
    %cst_41 = arith.constant dense<0.000000e+00> : vector<64x16xf32>
    %45 = tpu.matmul %42, %44, %cst_41 {dimension_numbers = #tpu.dot_dimension_numbers<[1], [0], [0], [1], [0, 0, 1, 1], [], []>} : vector<64x16xbf16>, vector<16x16xbf16>, vector<64x16xf32> -> vector<64x16xf32>
    %46 = arith.addf %40, %45 : vector<64x16xf32>
    %c0_42 = arith.constant 0 : index
    %c0_43 = arith.constant 0 : index
    %47 = vector.load %arg7[%c0_42, %c0_43] : memref<64x16xf32, #tpu.memory_space<vmem>>, vector<64x16xf32>
    tpu.vector_store %arg7[%c0_42, %c0_43], %46 {strides = array<i32>} : memref<64x16xf32, #tpu.memory_space<vmem>>, vector<64x16xf32>,
    %c0_44 = arith.constant 0 : index
    %c0_45 = arith.constant 0 : index
    %48 = vector.load %arg7[%c0_44, %c0_45] : memref<64x16xf32, #tpu.memory_space<vmem>>, vector<64x16xf32>
    %49 = vector.extract_strided_slice %1 {offsets = [2, 0, 0], sizes = [8, 8, 16], strides = [1, 1, 1]} : vector<10x10x16xbf16> to vector<8x8x16xbf16>
    %50 = vector.shape_cast %49 : vector<8x8x16xbf16> to vector<64x16xbf16>
    %c6 = arith.constant 6 : index
    %c0_46 = arith.constant 0 : index
    %c0_47 = arith.constant 0 : index
    %51 = vector.load %arg3[%c6, %c0_46, %c0_47] : memref<9x16x16xbf16, #tpu.memory_space<vmem>>, vector<1x16x16xbf16>
    %52 = vector.shape_cast %51 : vector<1x16x16xbf16> to vector<16x16xbf16>
    %cst_48 = arith.constant dense<0.000000e+00> : vector<64x16xf32>
    %53 = tpu.matmul %50, %52, %cst_48 {dimension_numbers = #tpu.dot_dimension_numbers<[1], [0], [0], [1], [0, 0, 1, 1], [], []>} : vector<64x16xbf16>, vector<16x16xbf16>, vector<64x16xf32> -> vector<64x16xf32>
    %54 = arith.addf %48, %53 : vector<64x16xf32>
    %c0_49 = arith.constant 0 : index
    %c0_50 = arith.constant 0 : index
    %55 = vector.load %arg7[%c0_49, %c0_50] : memref<64x16xf32, #tpu.memory_space<vmem>>, vector<64x16xf32>
    tpu.vector_store %arg7[%c0_49, %c0_50], %54 {strides = array<i32>} : memref<64x16xf32, #tpu.memory_space<vmem>>, vector<64x16xf32>,
    %c0_51 = arith.constant 0 : index
    %c0_52 = arith.constant 0 : index
    %56 = vector.load %arg7[%c0_51, %c0_52] : memref<64x16xf32, #tpu.memory_space<vmem>>, vector<64x16xf32>
    %57 = vector.extract_strided_slice %1 {offsets = [2, 1, 0], sizes = [8, 8, 16], strides = [1, 1, 1]} : vector<10x10x16xbf16> to vector<8x8x16xbf16>
    %58 = vector.shape_cast %57 : vector<8x8x16xbf16> to vector<64x16xbf16>
    %c7 = arith.constant 7 : index
    %c0_53 = arith.constant 0 : index
    %c0_54 = arith.constant 0 : index
    %59 = vector.load %arg3[%c7, %c0_53, %c0_54] : memref<9x16x16xbf16, #tpu.memory_space<vmem>>, vector<1x16x16xbf16>
    %60 = vector.shape_cast %59 : vector<1x16x16xbf16> to vector<16x16xbf16>
    %cst_55 = arith.constant dense<0.000000e+00> : vector<64x16xf32>
    %61 = tpu.matmul %58, %60, %cst_55 {dimension_numbers = #tpu.dot_dimension_numbers<[1], [0], [0], [1], [0, 0, 1, 1], [], []>} : vector<64x16xbf16>, vector<16x16xbf16>, vector<64x16xf32> -> vector<64x16xf32>
    %62 = arith.addf %56, %61 : vector<64x16xf32>
    %c0_56 = arith.constant 0 : index
    %c0_57 = arith.constant 0 : index
    %63 = vector.load %arg7[%c0_56, %c0_57] : memref<64x16xf32, #tpu.memory_space<vmem>>, vector<64x16xf32>
    tpu.vector_store %arg7[%c0_56, %c0_57], %62 {strides = array<i32>} : memref<64x16xf32, #tpu.memory_space<vmem>>, vector<64x16xf32>,
    %c0_58 = arith.constant 0 : index
    %c0_59 = arith.constant 0 : index
    %64 = vector.load %arg7[%c0_58, %c0_59] : memref<64x16xf32, #tpu.memory_space<vmem>>, vector<64x16xf32>
    %65 = vector.extract_strided_slice %1 {offsets = [2, 2, 0], sizes = [8, 8, 16], strides = [1, 1, 1]} : vector<10x10x16xbf16> to vector<8x8x16xbf16>
    %66 = vector.shape_cast %65 : vector<8x8x16xbf16> to vector<64x16xbf16>
    %c8 = arith.constant 8 : index
    %c0_60 = arith.constant 0 : index
    %c0_61 = arith.constant 0 : index
    %67 = vector.load %arg3[%c8, %c0_60, %c0_61] : memref<9x16x16xbf16, #tpu.memory_space<vmem>>, vector<1x16x16xbf16>
    %68 = vector.shape_cast %67 : vector<1x16x16xbf16> to vector<16x16xbf16>
    %cst_62 = arith.constant dense<0.000000e+00> : vector<64x16xf32>
    %69 = tpu.matmul %66, %68, %cst_62 {dimension_numbers = #tpu.dot_dimension_numbers<[1], [0], [0], [1], [0, 0, 1, 1], [], []>} : vector<64x16xbf16>, vector<16x16xbf16>, vector<64x16xf32> -> vector<64x16xf32>
    %70 = arith.addf %64, %69 : vector<64x16xf32>
    %c0_63 = arith.constant 0 : index
    %c0_64 = arith.constant 0 : index
    %71 = vector.load %arg7[%c0_63, %c0_64] : memref<64x16xf32, #tpu.memory_space<vmem>>, vector<64x16xf32>
    tpu.vector_store %arg7[%c0_63, %c0_64], %70 {strides = array<i32>} : memref<64x16xf32, #tpu.memory_space<vmem>>, vector<64x16xf32>,
    %c0_65 = arith.constant 0 : index
    %c0_66 = arith.constant 0 : index
    %72 = vector.load %arg7[%c0_65, %c0_66] : memref<64x16xf32, #tpu.memory_space<vmem>>, vector<64x16xf32>
    %c0_67 = arith.constant 0 : index
    %c0_68 = arith.constant 0 : index
    %73 = vector.load %arg4[%c0_67, %c0_68] : memref<1x16xf32, #tpu.memory_space<vmem>>, vector<1x16xf32>
    %74 = vector.broadcast %73 : vector<1x16xf32> to vector<64x16xf32>
    %75 = arith.mulf %72, %74 : vector<64x16xf32>
    %c0_69 = arith.constant 0 : index
    %c0_70 = arith.constant 0 : index
    %76 = vector.load %arg5[%c0_69, %c0_70] : memref<1x16xf32, #tpu.memory_space<vmem>>, vector<1x16xf32>
    %77 = vector.broadcast %76 : vector<1x16xf32> to vector<64x16xf32>
    %78 = arith.addf %75, %77 : vector<64x16xf32>
    %cst_71 = arith.constant 0.000000e+00 : f32
    %79 = vector.broadcast %cst_71 : f32 to vector<64x16xf32>
    %80 = arith.cmpf oge, %78, %79 : vector<64x16xf32>
    %cst_72 = arith.constant 1.000000e-01 : f32
    %81 = vector.broadcast %cst_72 : f32 to vector<64x16xf32>
    %82 = arith.mulf %81, %78 : vector<64x16xf32>
    %83 = arith.select %80, %78, %82 : vector<64x16xi1>, vector<64x16xf32>
    %c0_73 = arith.constant 0 : index
    %c0_74 = arith.constant 0 : index
    %c0_75 = arith.constant 0 : index
    %c0_76 = arith.constant 0 : index
    %84 = vector.load %arg6[%c0_73, %c0_74, %c0_75, %c0_76] : memref<1x1x64x16xf32, #tpu.memory_space<vmem>>, vector<1x1x64x16xf32>
    %85 = vector.shape_cast %84 : vector<1x1x64x16xf32> to vector<64x16xf32>
    %86 = vector.shape_cast %83 : vector<64x16xf32> to vector<1x1x64x16xf32>
    tpu.vector_store %arg6[%c0_73, %c0_74, %c0_75, %c0_76], %86 {strides = array<i32>} : memref<1x1x64x16xf32, #tpu.memory_space<vmem>>, vector<1x1x64x16xf32>,
    return
  }
  func.func @transform_0(%arg0: i32, %arg1: i32) -> (i32, i32, i32, i32, i32) {
    %c0_i32 = arith.constant 0 : i32
    %c0_i32_0 = arith.constant 0 : i32
    %c0_i32_1 = arith.constant 0 : i32
    %c0_i32_2 = arith.constant 0 : i32
    return %arg0, %arg1, %c0_i32, %c0_i32_0, %c0_i32_1 : i32, i32, i32, i32, i32
  }
  func.func @transform_1(%arg0: i32, %arg1: i32) -> (i32, i32, i32) {
    %c0_i32 = arith.constant 0 : i32
    %c0_i32_0 = arith.constant 0 : i32
    %c0_i32_1 = arith.constant 0 : i32
    %c0_i32_2 = arith.constant 0 : i32
    return %c0_i32, %c0_i32_0, %c0_i32_1 : i32, i32, i32
  }
  func.func @transform_2(%arg0: i32, %arg1: i32) -> (i32, i32) {
    %c0_i32 = arith.constant 0 : i32
    %c0_i32_0 = arith.constant 0 : i32
    %c0_i32_1 = arith.constant 0 : i32
    return %c0_i32, %c0_i32_0 : i32, i32
  }
  func.func @transform_3(%arg0: i32, %arg1: i32) -> (i32, i32) {
    %c0_i32 = arith.constant 0 : i32
    %c0_i32_0 = arith.constant 0 : i32
    %c0_i32_1 = arith.constant 0 : i32
    return %c0_i32, %c0_i32_0 : i32, i32
  }
  func.func @transform_4(%arg0: i32, %arg1: i32) -> (i32, i32, i32, i32) {
    %c0_i32 = arith.constant 0 : i32
    %c0_i32_0 = arith.constant 0 : i32
    %c0_i32_1 = arith.constant 0 : i32
    return %arg0, %arg1, %c0_i32, %c0_i32_0 : i32, i32, i32, i32
  }
}

module attributes {stable_mosaic.version = 11 : i64} {
  func.func @_conv1x1_bn_lrelu_kernel(%arg0: i32, %arg1: memref<512x8xbf16, #tpu.memory_space<vmem>>, %arg2: memref<8x16xbf16, #tpu.memory_space<vmem>>, %arg3: memref<1x16xf32, #tpu.memory_space<vmem>>, %arg4: memref<1x16xf32, #tpu.memory_space<vmem>>, %arg5: memref<512x16xf32, #tpu.memory_space<vmem>>) attributes {dimension_semantics = [#tpu.dimension_semantics<parallel>], iteration_bounds = array<i64: 1>, scalar_prefetch = 0 : i64, scratch_operands = 0 : i64, tpu.core_type = #tpu.core_type<tc>, window_params = [{transform_indices = @transform_0, window_bounds = array<i64: 512, 8>}, {pipeline_mode = #tpu.pipeline_mode<synchronous>, transform_indices = @transform_1, window_bounds = array<i64: 8, 16>}, {pipeline_mode = #tpu.pipeline_mode<synchronous>, transform_indices = @transform_2, window_bounds = array<i64: 1, 16>}, {pipeline_mode = #tpu.pipeline_mode<synchronous>, transform_indices = @transform_3, window_bounds = array<i64: 1, 16>}, {transform_indices = @transform_4, window_bounds = array<i64: 512, 16>}]} {
    %c0 = arith.constant 0 : index
    %c0_0 = arith.constant 0 : index
    %0 = vector.load %arg1[%c0, %c0_0] : memref<512x8xbf16, #tpu.memory_space<vmem>>, vector<512x8xbf16>
    %c0_1 = arith.constant 0 : index
    %c0_2 = arith.constant 0 : index
    %1 = vector.load %arg2[%c0_1, %c0_2] : memref<8x16xbf16, #tpu.memory_space<vmem>>, vector<8x16xbf16>
    %cst = arith.constant dense<0.000000e+00> : vector<512x16xf32>
    %2 = tpu.matmul %0, %1, %cst {dimension_numbers = #tpu.dot_dimension_numbers<[1], [0], [0], [1], [0, 0, 1, 1], [], []>} : vector<512x8xbf16>, vector<8x16xbf16>, vector<512x16xf32> -> vector<512x16xf32>
    %c0_3 = arith.constant 0 : index
    %c0_4 = arith.constant 0 : index
    %3 = vector.load %arg3[%c0_3, %c0_4] : memref<1x16xf32, #tpu.memory_space<vmem>>, vector<1x16xf32>
    %4 = vector.broadcast %3 : vector<1x16xf32> to vector<512x16xf32>
    %5 = arith.mulf %2, %4 : vector<512x16xf32>
    %c0_5 = arith.constant 0 : index
    %c0_6 = arith.constant 0 : index
    %6 = vector.load %arg4[%c0_5, %c0_6] : memref<1x16xf32, #tpu.memory_space<vmem>>, vector<1x16xf32>
    %7 = vector.broadcast %6 : vector<1x16xf32> to vector<512x16xf32>
    %8 = arith.addf %5, %7 : vector<512x16xf32>
    %cst_7 = arith.constant 0.000000e+00 : f32
    %9 = vector.broadcast %cst_7 : f32 to vector<512x16xf32>
    %10 = arith.cmpf oge, %8, %9 : vector<512x16xf32>
    %cst_8 = arith.constant 1.000000e-01 : f32
    %11 = vector.broadcast %cst_8 : f32 to vector<512x16xf32>
    %12 = arith.mulf %11, %8 : vector<512x16xf32>
    %13 = arith.select %10, %8, %12 : vector<512x16xi1>, vector<512x16xf32>
    %c0_9 = arith.constant 0 : index
    %c0_10 = arith.constant 0 : index
    %14 = vector.load %arg5[%c0_9, %c0_10] : memref<512x16xf32, #tpu.memory_space<vmem>>, vector<512x16xf32>
    tpu.vector_store %arg5[%c0_9, %c0_10], %13 {strides = array<i32>} : memref<512x16xf32, #tpu.memory_space<vmem>>, vector<512x16xf32>,
    return
  }
  func.func @transform_0(%arg0: i32) -> (i32, i32) {
    %c0_i32 = arith.constant 0 : i32
    %c0_i32_0 = arith.constant 0 : i32
    return %arg0, %c0_i32 : i32, i32
  }
  func.func @transform_1(%arg0: i32) -> (i32, i32) {
    %c0_i32 = arith.constant 0 : i32
    %c0_i32_0 = arith.constant 0 : i32
    %c0_i32_1 = arith.constant 0 : i32
    return %c0_i32, %c0_i32_0 : i32, i32
  }
  func.func @transform_2(%arg0: i32) -> (i32, i32) {
    %c0_i32 = arith.constant 0 : i32
    %c0_i32_0 = arith.constant 0 : i32
    %c0_i32_1 = arith.constant 0 : i32
    return %c0_i32, %c0_i32_0 : i32, i32
  }
  func.func @transform_3(%arg0: i32) -> (i32, i32) {
    %c0_i32 = arith.constant 0 : i32
    %c0_i32_0 = arith.constant 0 : i32
    %c0_i32_1 = arith.constant 0 : i32
    return %c0_i32, %c0_i32_0 : i32, i32
  }
  func.func @transform_4(%arg0: i32) -> (i32, i32) {
    %c0_i32 = arith.constant 0 : i32
    %c0_i32_0 = arith.constant 0 : i32
    return %arg0, %c0_i32 : i32, i32
  }
}

module attributes {stable_mosaic.version = 11 : i64} {
  func.func @_merge3x3_bn_lrelu_kernel(%arg0: i32, %arg1: i32, %arg2: memref<1x1x10x18x16xbf16, #tpu.memory_space<vmem>>, %arg3: memref<9x16x16xbf16, #tpu.memory_space<vmem>>, %arg4: memref<1x16xf32, #tpu.memory_space<vmem>>, %arg5: memref<1x16xf32, #tpu.memory_space<vmem>>, %arg6: memref<1x1x128x16xf32, #tpu.memory_space<vmem>>, %arg7: memref<128x16xf32, #tpu.memory_space<vmem>>) attributes {dimension_semantics = [#tpu.dimension_semantics<parallel>, #tpu.dimension_semantics<parallel>], iteration_bounds = array<i64: 2, 2>, scalar_prefetch = 0 : i64, scratch_operands = 1 : i64, tpu.core_type = #tpu.core_type<tc>, window_params = [{transform_indices = @transform_0, window_bounds = array<i64: 1, 1, 10, 18, 16>}, {pipeline_mode = #tpu.pipeline_mode<synchronous>, transform_indices = @transform_1, window_bounds = array<i64: 9, 16, 16>}, {pipeline_mode = #tpu.pipeline_mode<synchronous>, transform_indices = @transform_2, window_bounds = array<i64: 1, 16>}, {pipeline_mode = #tpu.pipeline_mode<synchronous>, transform_indices = @transform_3, window_bounds = array<i64: 1, 16>}, {transform_indices = @transform_4, window_bounds = array<i64: 1, 1, 128, 16>}]} {
    %c0 = arith.constant 0 : index
    %c0_0 = arith.constant 0 : index
    %c0_1 = arith.constant 0 : index
    %c0_2 = arith.constant 0 : index
    %c0_3 = arith.constant 0 : index
    %0 = vector.load %arg2[%c0, %c0_0, %c0_1, %c0_2, %c0_3] : memref<1x1x10x18x16xbf16, #tpu.memory_space<vmem>>, vector<1x1x10x18x16xbf16>
    %1 = vector.shape_cast %0 : vector<1x1x10x18x16xbf16> to vector<10x18x16xbf16>
    %2 = vector.extract_strided_slice %1 {offsets = [0, 0, 0], sizes = [8, 16, 16], strides = [1, 1, 1]} : vector<10x18x16xbf16> to vector<8x16x16xbf16>
    %3 = vector.shape_cast %2 : vector<8x16x16xbf16> to vector<128x16xbf16>
    %c0_4 = arith.constant 0 : index
    %c0_5 = arith.constant 0 : index
    %c0_6 = arith.constant 0 : index
    %4 = vector.load %arg3[%c0_4, %c0_5, %c0_6] : memref<9x16x16xbf16, #tpu.memory_space<vmem>>, vector<1x16x16xbf16>
    %5 = vector.shape_cast %4 : vector<1x16x16xbf16> to vector<16x16xbf16>
    %cst = arith.constant dense<0.000000e+00> : vector<128x16xf32>
    %6 = tpu.matmul %3, %5, %cst {dimension_numbers = #tpu.dot_dimension_numbers<[1], [0], [0], [1], [0, 0, 1, 1], [], []>} : vector<128x16xbf16>, vector<16x16xbf16>, vector<128x16xf32> -> vector<128x16xf32>
    %c0_7 = arith.constant 0 : index
    %c0_8 = arith.constant 0 : index
    %7 = vector.load %arg7[%c0_7, %c0_8] : memref<128x16xf32, #tpu.memory_space<vmem>>, vector<128x16xf32>
    tpu.vector_store %arg7[%c0_7, %c0_8], %6 {strides = array<i32>} : memref<128x16xf32, #tpu.memory_space<vmem>>, vector<128x16xf32>,
    %c0_9 = arith.constant 0 : index
    %c0_10 = arith.constant 0 : index
    %8 = vector.load %arg7[%c0_9, %c0_10] : memref<128x16xf32, #tpu.memory_space<vmem>>, vector<128x16xf32>
    %9 = vector.extract_strided_slice %1 {offsets = [0, 1, 0], sizes = [8, 16, 16], strides = [1, 1, 1]} : vector<10x18x16xbf16> to vector<8x16x16xbf16>
    %10 = vector.shape_cast %9 : vector<8x16x16xbf16> to vector<128x16xbf16>
    %c1 = arith.constant 1 : index
    %c0_11 = arith.constant 0 : index
    %c0_12 = arith.constant 0 : index
    %11 = vector.load %arg3[%c1, %c0_11, %c0_12] : memref<9x16x16xbf16, #tpu.memory_space<vmem>>, vector<1x16x16xbf16>
    %12 = vector.shape_cast %11 : vector<1x16x16xbf16> to vector<16x16xbf16>
    %cst_13 = arith.constant dense<0.000000e+00> : vector<128x16xf32>
    %13 = tpu.matmul %10, %12, %cst_13 {dimension_numbers = #tpu.dot_dimension_numbers<[1], [0], [0], [1], [0, 0, 1, 1], [], []>} : vector<128x16xbf16>, vector<16x16xbf16>, vector<128x16xf32> -> vector<128x16xf32>
    %14 = arith.addf %8, %13 : vector<128x16xf32>
    %c0_14 = arith.constant 0 : index
    %c0_15 = arith.constant 0 : index
    %15 = vector.load %arg7[%c0_14, %c0_15] : memref<128x16xf32, #tpu.memory_space<vmem>>, vector<128x16xf32>
    tpu.vector_store %arg7[%c0_14, %c0_15], %14 {strides = array<i32>} : memref<128x16xf32, #tpu.memory_space<vmem>>, vector<128x16xf32>,
    %c0_16 = arith.constant 0 : index
    %c0_17 = arith.constant 0 : index
    %16 = vector.load %arg7[%c0_16, %c0_17] : memref<128x16xf32, #tpu.memory_space<vmem>>, vector<128x16xf32>
    %17 = vector.extract_strided_slice %1 {offsets = [0, 2, 0], sizes = [8, 16, 16], strides = [1, 1, 1]} : vector<10x18x16xbf16> to vector<8x16x16xbf16>
    %18 = vector.shape_cast %17 : vector<8x16x16xbf16> to vector<128x16xbf16>
    %c2 = arith.constant 2 : index
    %c0_18 = arith.constant 0 : index
    %c0_19 = arith.constant 0 : index
    %19 = vector.load %arg3[%c2, %c0_18, %c0_19] : memref<9x16x16xbf16, #tpu.memory_space<vmem>>, vector<1x16x16xbf16>
    %20 = vector.shape_cast %19 : vector<1x16x16xbf16> to vector<16x16xbf16>
    %cst_20 = arith.constant dense<0.000000e+00> : vector<128x16xf32>
    %21 = tpu.matmul %18, %20, %cst_20 {dimension_numbers = #tpu.dot_dimension_numbers<[1], [0], [0], [1], [0, 0, 1, 1], [], []>} : vector<128x16xbf16>, vector<16x16xbf16>, vector<128x16xf32> -> vector<128x16xf32>
    %22 = arith.addf %16, %21 : vector<128x16xf32>
    %c0_21 = arith.constant 0 : index
    %c0_22 = arith.constant 0 : index
    %23 = vector.load %arg7[%c0_21, %c0_22] : memref<128x16xf32, #tpu.memory_space<vmem>>, vector<128x16xf32>
    tpu.vector_store %arg7[%c0_21, %c0_22], %22 {strides = array<i32>} : memref<128x16xf32, #tpu.memory_space<vmem>>, vector<128x16xf32>,
    %c0_23 = arith.constant 0 : index
    %c0_24 = arith.constant 0 : index
    %24 = vector.load %arg7[%c0_23, %c0_24] : memref<128x16xf32, #tpu.memory_space<vmem>>, vector<128x16xf32>
    %25 = vector.extract_strided_slice %1 {offsets = [1, 0, 0], sizes = [8, 16, 16], strides = [1, 1, 1]} : vector<10x18x16xbf16> to vector<8x16x16xbf16>
    %26 = vector.shape_cast %25 : vector<8x16x16xbf16> to vector<128x16xbf16>
    %c3 = arith.constant 3 : index
    %c0_25 = arith.constant 0 : index
    %c0_26 = arith.constant 0 : index
    %27 = vector.load %arg3[%c3, %c0_25, %c0_26] : memref<9x16x16xbf16, #tpu.memory_space<vmem>>, vector<1x16x16xbf16>
    %28 = vector.shape_cast %27 : vector<1x16x16xbf16> to vector<16x16xbf16>
    %cst_27 = arith.constant dense<0.000000e+00> : vector<128x16xf32>
    %29 = tpu.matmul %26, %28, %cst_27 {dimension_numbers = #tpu.dot_dimension_numbers<[1], [0], [0], [1], [0, 0, 1, 1], [], []>} : vector<128x16xbf16>, vector<16x16xbf16>, vector<128x16xf32> -> vector<128x16xf32>
    %30 = arith.addf %24, %29 : vector<128x16xf32>
    %c0_28 = arith.constant 0 : index
    %c0_29 = arith.constant 0 : index
    %31 = vector.load %arg7[%c0_28, %c0_29] : memref<128x16xf32, #tpu.memory_space<vmem>>, vector<128x16xf32>
    tpu.vector_store %arg7[%c0_28, %c0_29], %30 {strides = array<i32>} : memref<128x16xf32, #tpu.memory_space<vmem>>, vector<128x16xf32>,
    %c0_30 = arith.constant 0 : index
    %c0_31 = arith.constant 0 : index
    %32 = vector.load %arg7[%c0_30, %c0_31] : memref<128x16xf32, #tpu.memory_space<vmem>>, vector<128x16xf32>
    %33 = vector.extract_strided_slice %1 {offsets = [1, 1, 0], sizes = [8, 16, 16], strides = [1, 1, 1]} : vector<10x18x16xbf16> to vector<8x16x16xbf16>
    %34 = vector.shape_cast %33 : vector<8x16x16xbf16> to vector<128x16xbf16>
    %c4 = arith.constant 4 : index
    %c0_32 = arith.constant 0 : index
    %c0_33 = arith.constant 0 : index
    %35 = vector.load %arg3[%c4, %c0_32, %c0_33] : memref<9x16x16xbf16, #tpu.memory_space<vmem>>, vector<1x16x16xbf16>
    %36 = vector.shape_cast %35 : vector<1x16x16xbf16> to vector<16x16xbf16>
    %cst_34 = arith.constant dense<0.000000e+00> : vector<128x16xf32>
    %37 = tpu.matmul %34, %36, %cst_34 {dimension_numbers = #tpu.dot_dimension_numbers<[1], [0], [0], [1], [0, 0, 1, 1], [], []>} : vector<128x16xbf16>, vector<16x16xbf16>, vector<128x16xf32> -> vector<128x16xf32>
    %38 = arith.addf %32, %37 : vector<128x16xf32>
    %c0_35 = arith.constant 0 : index
    %c0_36 = arith.constant 0 : index
    %39 = vector.load %arg7[%c0_35, %c0_36] : memref<128x16xf32, #tpu.memory_space<vmem>>, vector<128x16xf32>
    tpu.vector_store %arg7[%c0_35, %c0_36], %38 {strides = array<i32>} : memref<128x16xf32, #tpu.memory_space<vmem>>, vector<128x16xf32>,
    %c0_37 = arith.constant 0 : index
    %c0_38 = arith.constant 0 : index
    %40 = vector.load %arg7[%c0_37, %c0_38] : memref<128x16xf32, #tpu.memory_space<vmem>>, vector<128x16xf32>
    %41 = vector.extract_strided_slice %1 {offsets = [1, 2, 0], sizes = [8, 16, 16], strides = [1, 1, 1]} : vector<10x18x16xbf16> to vector<8x16x16xbf16>
    %42 = vector.shape_cast %41 : vector<8x16x16xbf16> to vector<128x16xbf16>
    %c5 = arith.constant 5 : index
    %c0_39 = arith.constant 0 : index
    %c0_40 = arith.constant 0 : index
    %43 = vector.load %arg3[%c5, %c0_39, %c0_40] : memref<9x16x16xbf16, #tpu.memory_space<vmem>>, vector<1x16x16xbf16>
    %44 = vector.shape_cast %43 : vector<1x16x16xbf16> to vector<16x16xbf16>
    %cst_41 = arith.constant dense<0.000000e+00> : vector<128x16xf32>
    %45 = tpu.matmul %42, %44, %cst_41 {dimension_numbers = #tpu.dot_dimension_numbers<[1], [0], [0], [1], [0, 0, 1, 1], [], []>} : vector<128x16xbf16>, vector<16x16xbf16>, vector<128x16xf32> -> vector<128x16xf32>
    %46 = arith.addf %40, %45 : vector<128x16xf32>
    %c0_42 = arith.constant 0 : index
    %c0_43 = arith.constant 0 : index
    %47 = vector.load %arg7[%c0_42, %c0_43] : memref<128x16xf32, #tpu.memory_space<vmem>>, vector<128x16xf32>
    tpu.vector_store %arg7[%c0_42, %c0_43], %46 {strides = array<i32>} : memref<128x16xf32, #tpu.memory_space<vmem>>, vector<128x16xf32>,
    %c0_44 = arith.constant 0 : index
    %c0_45 = arith.constant 0 : index
    %48 = vector.load %arg7[%c0_44, %c0_45] : memref<128x16xf32, #tpu.memory_space<vmem>>, vector<128x16xf32>
    %49 = vector.extract_strided_slice %1 {offsets = [2, 0, 0], sizes = [8, 16, 16], strides = [1, 1, 1]} : vector<10x18x16xbf16> to vector<8x16x16xbf16>
    %50 = vector.shape_cast %49 : vector<8x16x16xbf16> to vector<128x16xbf16>
    %c6 = arith.constant 6 : index
    %c0_46 = arith.constant 0 : index
    %c0_47 = arith.constant 0 : index
    %51 = vector.load %arg3[%c6, %c0_46, %c0_47] : memref<9x16x16xbf16, #tpu.memory_space<vmem>>, vector<1x16x16xbf16>
    %52 = vector.shape_cast %51 : vector<1x16x16xbf16> to vector<16x16xbf16>
    %cst_48 = arith.constant dense<0.000000e+00> : vector<128x16xf32>
    %53 = tpu.matmul %50, %52, %cst_48 {dimension_numbers = #tpu.dot_dimension_numbers<[1], [0], [0], [1], [0, 0, 1, 1], [], []>} : vector<128x16xbf16>, vector<16x16xbf16>, vector<128x16xf32> -> vector<128x16xf32>
    %54 = arith.addf %48, %53 : vector<128x16xf32>
    %c0_49 = arith.constant 0 : index
    %c0_50 = arith.constant 0 : index
    %55 = vector.load %arg7[%c0_49, %c0_50] : memref<128x16xf32, #tpu.memory_space<vmem>>, vector<128x16xf32>
    tpu.vector_store %arg7[%c0_49, %c0_50], %54 {strides = array<i32>} : memref<128x16xf32, #tpu.memory_space<vmem>>, vector<128x16xf32>,
    %c0_51 = arith.constant 0 : index
    %c0_52 = arith.constant 0 : index
    %56 = vector.load %arg7[%c0_51, %c0_52] : memref<128x16xf32, #tpu.memory_space<vmem>>, vector<128x16xf32>
    %57 = vector.extract_strided_slice %1 {offsets = [2, 1, 0], sizes = [8, 16, 16], strides = [1, 1, 1]} : vector<10x18x16xbf16> to vector<8x16x16xbf16>
    %58 = vector.shape_cast %57 : vector<8x16x16xbf16> to vector<128x16xbf16>
    %c7 = arith.constant 7 : index
    %c0_53 = arith.constant 0 : index
    %c0_54 = arith.constant 0 : index
    %59 = vector.load %arg3[%c7, %c0_53, %c0_54] : memref<9x16x16xbf16, #tpu.memory_space<vmem>>, vector<1x16x16xbf16>
    %60 = vector.shape_cast %59 : vector<1x16x16xbf16> to vector<16x16xbf16>
    %cst_55 = arith.constant dense<0.000000e+00> : vector<128x16xf32>
    %61 = tpu.matmul %58, %60, %cst_55 {dimension_numbers = #tpu.dot_dimension_numbers<[1], [0], [0], [1], [0, 0, 1, 1], [], []>} : vector<128x16xbf16>, vector<16x16xbf16>, vector<128x16xf32> -> vector<128x16xf32>
    %62 = arith.addf %56, %61 : vector<128x16xf32>
    %c0_56 = arith.constant 0 : index
    %c0_57 = arith.constant 0 : index
    %63 = vector.load %arg7[%c0_56, %c0_57] : memref<128x16xf32, #tpu.memory_space<vmem>>, vector<128x16xf32>
    tpu.vector_store %arg7[%c0_56, %c0_57], %62 {strides = array<i32>} : memref<128x16xf32, #tpu.memory_space<vmem>>, vector<128x16xf32>,
    %c0_58 = arith.constant 0 : index
    %c0_59 = arith.constant 0 : index
    %64 = vector.load %arg7[%c0_58, %c0_59] : memref<128x16xf32, #tpu.memory_space<vmem>>, vector<128x16xf32>
    %65 = vector.extract_strided_slice %1 {offsets = [2, 2, 0], sizes = [8, 16, 16], strides = [1, 1, 1]} : vector<10x18x16xbf16> to vector<8x16x16xbf16>
    %66 = vector.shape_cast %65 : vector<8x16x16xbf16> to vector<128x16xbf16>
    %c8 = arith.constant 8 : index
    %c0_60 = arith.constant 0 : index
    %c0_61 = arith.constant 0 : index
    %67 = vector.load %arg3[%c8, %c0_60, %c0_61] : memref<9x16x16xbf16, #tpu.memory_space<vmem>>, vector<1x16x16xbf16>
    %68 = vector.shape_cast %67 : vector<1x16x16xbf16> to vector<16x16xbf16>
    %cst_62 = arith.constant dense<0.000000e+00> : vector<128x16xf32>
    %69 = tpu.matmul %66, %68, %cst_62 {dimension_numbers = #tpu.dot_dimension_numbers<[1], [0], [0], [1], [0, 0, 1, 1], [], []>} : vector<128x16xbf16>, vector<16x16xbf16>, vector<128x16xf32> -> vector<128x16xf32>
    %70 = arith.addf %64, %69 : vector<128x16xf32>
    %c0_63 = arith.constant 0 : index
    %c0_64 = arith.constant 0 : index
    %71 = vector.load %arg7[%c0_63, %c0_64] : memref<128x16xf32, #tpu.memory_space<vmem>>, vector<128x16xf32>
    tpu.vector_store %arg7[%c0_63, %c0_64], %70 {strides = array<i32>} : memref<128x16xf32, #tpu.memory_space<vmem>>, vector<128x16xf32>,
    %c0_65 = arith.constant 0 : index
    %c0_66 = arith.constant 0 : index
    %72 = vector.load %arg7[%c0_65, %c0_66] : memref<128x16xf32, #tpu.memory_space<vmem>>, vector<128x16xf32>
    %c0_67 = arith.constant 0 : index
    %c0_68 = arith.constant 0 : index
    %73 = vector.load %arg4[%c0_67, %c0_68] : memref<1x16xf32, #tpu.memory_space<vmem>>, vector<1x16xf32>
    %74 = vector.broadcast %73 : vector<1x16xf32> to vector<128x16xf32>
    %75 = arith.mulf %72, %74 : vector<128x16xf32>
    %c0_69 = arith.constant 0 : index
    %c0_70 = arith.constant 0 : index
    %76 = vector.load %arg5[%c0_69, %c0_70] : memref<1x16xf32, #tpu.memory_space<vmem>>, vector<1x16xf32>
    %77 = vector.broadcast %76 : vector<1x16xf32> to vector<128x16xf32>
    %78 = arith.addf %75, %77 : vector<128x16xf32>
    %cst_71 = arith.constant 0.000000e+00 : f32
    %79 = vector.broadcast %cst_71 : f32 to vector<128x16xf32>
    %80 = arith.cmpf oge, %78, %79 : vector<128x16xf32>
    %cst_72 = arith.constant 1.000000e-01 : f32
    %81 = vector.broadcast %cst_72 : f32 to vector<128x16xf32>
    %82 = arith.mulf %81, %78 : vector<128x16xf32>
    %83 = arith.select %80, %78, %82 : vector<128x16xi1>, vector<128x16xf32>
    %c0_73 = arith.constant 0 : index
    %c0_74 = arith.constant 0 : index
    %c0_75 = arith.constant 0 : index
    %c0_76 = arith.constant 0 : index
    %84 = vector.load %arg6[%c0_73, %c0_74, %c0_75, %c0_76] : memref<1x1x128x16xf32, #tpu.memory_space<vmem>>, vector<1x1x128x16xf32>
    %85 = vector.shape_cast %84 : vector<1x1x128x16xf32> to vector<128x16xf32>
    %86 = vector.shape_cast %83 : vector<128x16xf32> to vector<1x1x128x16xf32>
    tpu.vector_store %arg6[%c0_73, %c0_74, %c0_75, %c0_76], %86 {strides = array<i32>} : memref<1x1x128x16xf32, #tpu.memory_space<vmem>>, vector<1x1x128x16xf32>,
    return
  }
  func.func @transform_0(%arg0: i32, %arg1: i32) -> (i32, i32, i32, i32, i32) {
    %c0_i32 = arith.constant 0 : i32
    %c0_i32_0 = arith.constant 0 : i32
    %c0_i32_1 = arith.constant 0 : i32
    %c0_i32_2 = arith.constant 0 : i32
    return %arg0, %arg1, %c0_i32, %c0_i32_0, %c0_i32_1 : i32, i32, i32, i32, i32
  }
  func.func @transform_1(%arg0: i32, %arg1: i32) -> (i32, i32, i32) {
    %c0_i32 = arith.constant 0 : i32
    %c0_i32_0 = arith.constant 0 : i32
    %c0_i32_1 = arith.constant 0 : i32
    %c0_i32_2 = arith.constant 0 : i32
    return %c0_i32, %c0_i32_0, %c0_i32_1 : i32, i32, i32
  }
  func.func @transform_2(%arg0: i32, %arg1: i32) -> (i32, i32) {
    %c0_i32 = arith.constant 0 : i32
    %c0_i32_0 = arith.constant 0 : i32
    %c0_i32_1 = arith.constant 0 : i32
    return %c0_i32, %c0_i32_0 : i32, i32
  }
  func.func @transform_3(%arg0: i32, %arg1: i32) -> (i32, i32) {
    %c0_i32 = arith.constant 0 : i32
    %c0_i32_0 = arith.constant 0 : i32
    %c0_i32_1 = arith.constant 0 : i32
    return %c0_i32, %c0_i32_0 : i32, i32
  }
  func.func @transform_4(%arg0: i32, %arg1: i32) -> (i32, i32, i32, i32) {
    %c0_i32 = arith.constant 0 : i32
    %c0_i32_0 = arith.constant 0 : i32
    %c0_i32_1 = arith.constant 0 : i32
    return %arg0, %arg1, %c0_i32, %c0_i32_0 : i32, i32, i32, i32
  }
}

</mosaic_0001>

<bundles_post_ra>
// kernel: _lambda_.7
= control target key start
LH: loop header
LB: loop body
LE: loop exit
PB: predicated region body
PF: predicated region fallthrough
CT: control target
= control target key end

     0   :  { %vm48_vm0 = vcmask 261120   ;;  %vm138_vm1 = vcmask 130048   ;;  %s230_s1 = inlined_call_operand.vmem [shape: bf16[32,16], index: 1, kind: input, shape index: {}]   ;;  %s231_s0 = inlined_call_operand.vmem [shape: bf16[32,32], index: 0, kind: input, shape index: {}]   ;;  %s232_s2 = inlined_call_operand.vmem [shape: f32[1,16], index: 2, kind: input, shape index: {}]   ;;  %s233_s3 = inlined_call_operand.vmem [shape: f32[1,16], index: 3, kind: input, shape index: {}]   ;;  %s234_s4 = inlined_call_operand.vmem [shape: f32[32,16], index: 4, kind: output, shape index: {}]  }
   0x1   :  { %v167_v0 = vld [vmem:[%s230_s1 + $0x8] sm:$0xff]   ;;  %v168_v1 = vld [vmem:[%s230_s1] sm:$0xff]  }
   0x2   :  { %159 = vmatprep.subr.bf16.mxu0 %v167_v0  ;;  %v169_v2 = vld [vmem:[%s231_s0] sm:$0xff]   ;;  %v170_v3 = vld [vmem:[%s231_s0 + $0x8] sm:$0xff]  }
   0x3   :  { %160 = vmatpush3.bf16.msra.mxu0 %v167_v0  ;;  %163 = vmatprep.mubr.msk.bf16.mxu0 %vm48_vm0, %v169_v2  ;;  %v153_v4 = vld [vmem:[%s232_s2] ss:$0 sm:$0xff] }
   0x4   :  { %161 = vmatprep.subr.bf16.mxu0 %v168_v1  ;;  %v154_v6 = vld [vmem:[%s233_s3] ss:$0 sm:$0xff] }
   0x7   :  { %162 = vmatpush3.bf16.msra.mxu0 %v168_v1 }
   0xa   :  { %164 = vmatmul.mubr.msk.bf16.vlgmr.msra.gmra.mxu0 %vm48_vm0, %v170_v3 }
  0xca   :  { %v165_v5 = vpop.f32.mrf.mxu0 }
  0xcb   :  { %v113_v7 = vmul.f32 %v165_v5, %v153_v4 }
  0xcc   :  { %v89_v8 = vpop.f32.mrf.mxu0 }
  0xcd   :  { %v124_v9 = vadd.f32 %v154_v6, %v113_v7  ;;  %v111_v10 = vmul.f32 %v153_v4, %v89_v8 }
  0xce   :  { %v166_v11 = vpop.f32.mrf.mxu0 }
  0xcf   :  { %vm128_vm2 = vcmp.ge.f32.partialorder %v124_v9, 0.0  ;;  %v132_v12 = vmul.f32 0.1, %v124_v9  ;;  %v122_v13 = vadd.f32 %v154_v6, %v111_v10  ;;  %v114_v14 = vmul.f32 %v166_v11, %v153_v4 }
  0xd0   :  { %v92_v15 = vpop.f32.mrf.mxu0 }
  0xd1   :  { %v136_v16 = vsel %vm128_vm2, %v124_v9, %v132_v12  ;;  %vm126_vm3 = vcmp.ge.f32.partialorder %v122_v13, 0.0  ;;  %v130_v17 = vmul.f32 0.1, %v122_v13  ;;  %v125_v18 = vadd.f32 %v154_v6, %v114_v14 }
  0xd2   :  { %141 = vst.msk [vmem:[%s234_s4 + $0x10] sm:$0xff] %vm138_vm1, %v136_v16  ;;  %v112_v19 = vmul.f32 %v153_v4, %v92_v15 }
  0xd3   :  { %v134_v20 = vsel %vm126_vm3, %v122_v13, %v130_v17  ;;  %vm129_vm4 = vcmp.ge.f32.partialorder %v125_v18, 0.0  ;;  %v133_v21 = vmul.f32 0.1, %v125_v18 }
  0xd4   :  { %139 = vst.msk [vmem:[%s234_s4] sm:$0xff] %vm138_vm1, %v134_v20  ;;  %v123_v22 = vadd.f32 %v154_v6, %v112_v19 }
  0xd5   :  { %v137_v23 = vsel %vm129_vm4, %v125_v18, %v133_v21 }
  0xd6   :  { %142 = vst.msk [vmem:[%s234_s4 + $0x18] sm:$0xff] %vm138_vm1, %v137_v23  ;;  %vm127_vm5 = vcmp.ge.f32.partialorder %v123_v22, 0.0  ;;  %v131_v24 = vmul.f32 0.1, %v123_v22 }
  0xd8   :  { %v135_v25 = vsel %vm127_vm5, %v123_v22, %v131_v24 }
  0xd9   :  { %140 = vst.msk [vmem:[%s234_s4 + $0x8] sm:$0xff] %vm138_vm1, %v135_v25 }

// kernel: _lambda_.6
= control target key start
LH: loop header
LB: loop body
LE: loop exit
PB: predicated region body
PF: predicated region fallthrough
CT: control target
= control target key end

     0   :  { %vm82_vm0 = vcmask 130048   ;;  %s541_s1 = inlined_call_operand.vmem [shape: bf16[16,16], index: 1, kind: input, shape index: {}]   ;;  %s542_s0 = inlined_call_operand.vmem [shape: bf16[128,16], index: 0, kind: input, shape index: {}]   ;;  %s543_s2 = inlined_call_operand.vmem [shape: f32[1,16], index: 2, kind: input, shape index: {}]   ;;  %s544_s3 = inlined_call_operand.vmem [shape: f32[1,16], index: 3, kind: input, shape index: {}]   ;;  %s545_s4 = inlined_call_operand.vmem [shape: f32[128,16], index: 4, kind: output, shape index: {}]  }
   0x1   :  { %v366_v0 = vld [vmem:[%s541_s1] sm:$0xff]   ;;  %v369_v3 = vld [vmem:[%s542_s0 + $0x8] sm:$0xff]   ;;  %v371_v5 = vld [vmem:[%s542_s0 + $0x10] sm:$0xff]  }
   0x2   :  { %v367_v1 = vld [vmem:[%s542_s0] sm:$0xff]   ;;  %346 = vmatprep.subr.bf16.mxu0 %v366_v0  ;;  %364 = vmatprep.subr.bf16.mxu1 %v366_v0  ;;  %v370_v4 = vld [vmem:[%s542_s0 + $0x28] sm:$0xff]   ;;  %v372_v6 = vld [vmem:[%s542_s0 + $0x30] sm:$0xff]  }
   0x3   :  { %v368_v2 = vld [vmem:[%s542_s0 + $0x20] sm:$0xff]   ;;  %347 = vmatpush3.bf16.msra.mxu0 %v366_v0  ;;  %365 = vmatpush3.bf16.msra.mxu1 %v366_v0  ;;  %v373_v7 = vld [vmem:[%s542_s0 + $0x18] sm:$0xff]  }
   0x4   :  { %348 = vmatprep.mubr.msk.bf16.mxu0 %vm82_vm0, %v367_v1  ;;  %356 = vmatprep.mubr.msk.bf16.mxu1 %vm82_vm0, %v368_v2  ;;  %v374_v8 = vld [vmem:[%s542_s0 + $0x38] sm:$0xff]   ;;  %v438_v9 = vld [vmem:[%s543_s2] ss:$0 sm:$0xff] }
   0x5   :  { %v443_v11 = vld [vmem:[%s544_s3] ss:$0 sm:$0xff] }
   0x6   :  { %349 = vmatmul.mubr.msk.bf16.vlgmr.msra.gmra.mxu0 %vm82_vm0, %v369_v3  ;;  %357 = vmatmul.mubr.msk.bf16.vlgmr.msra.gmra.mxu1 %vm82_vm0, %v370_v4 }
   0x7   :  { %352 = vmatprep.mubr.msk.bf16.mxu0 %vm82_vm0, %v371_v5  ;;  %360 = vmatprep.mubr.msk.bf16.mxu1 %vm82_vm0, %v372_v6 }
   0xe   :  { %353 = vmatmul.mubr.msk.bf16.gmra.mxu0 %vm82_vm0, %v373_v7  ;;  %361 = vmatmul.mubr.msk.bf16.gmra.mxu1 %vm82_vm0, %v374_v8 }
  0xc6   :  { %v350_v10 = vpop.f32.mrf.mxu0  ;;  %v358_v12 = vpop.f32.mrf.mxu1 }
  0xc7   :  { %v213_v13 = vmul.f32 %v350_v10, %v438_v9  ;;  %v221_v14 = vmul.f32 %v358_v12, %v438_v9 }
  0xc8   :  { %v141_v15 = vpop.f32.mrf.mxu0  ;;  %v173_v16 = vpop.f32.mrf.mxu1 }
  0xc9   :  { %v236_v17 = vadd.f32 %v443_v11, %v213_v13  ;;  %v244_v18 = vadd.f32 %v443_v11, %v221_v14  ;;  %v211_v19 = vmul.f32 %v438_v9, %v141_v15  ;;  %v219_v20 = vmul.f32 %v438_v9, %v173_v16 }
  0xca   :  { %v351_v21 = vpop.f32.mrf.mxu0  ;;  %v359_v22 = vpop.f32.mrf.mxu1 }
  0xcb   :  { %vm252_vm1 = vcmp.ge.f32.partialorder %v236_v17, 0.0  ;;  %v268_v23 = vmul.f32 0.1, %v236_v17  ;;  %vm260_vm2 = vcmp.ge.f32.partialorder %v244_v18, 0.0  ;;  %v276_v24 = vmul.f32 0.1, %v244_v18 }
  0xcc   :  { %v234_v25 = vadd.f32 %v443_v11, %v211_v19  ;;  %v242_v26 = vadd.f32 %v443_v11, %v219_v20  ;;  %v214_v27 = vmul.f32 %v351_v21, %v438_v9  ;;  %v222_v28 = vmul.f32 %v359_v22, %v438_v9  ;;  %v144_v29 = vpop.f32.mrf.mxu0  ;;  %v176_v30 = vpop.f32.mrf.mxu1 }
  0xcd   :  { %v284_v31 = vsel %vm252_vm1, %v236_v17, %v268_v23  ;;  %v292_v32 = vsel %vm260_vm2, %v244_v18, %v276_v24  ;;  %v212_v33 = vmul.f32 %v438_v9, %v144_v29  ;;  %v220_v34 = vmul.f32 %v438_v9, %v176_v30 }
  0xce   :  { %300 = vst.msk [vmem:[%s545_s4 + $0x10] sm:$0xff] %vm82_vm0, %v284_v31  ;;  %308 = vst.msk [vmem:[%s545_s4 + $0x50] sm:$0xff] %vm82_vm0, %v292_v32  ;;  %vm250_vm3 = vcmp.ge.f32.partialorder %v234_v25, 0.0  ;;  %v266_v35 = vmul.f32 0.1, %v234_v25  ;;  %vm258_vm4 = vcmp.ge.f32.partialorder %v242_v26, 0.0  ;;  %v354_v37 = vpop.f32.mrf.mxu0  ;;  %v362_v38 = vpop.f32.mrf.mxu1  ;;  %v237_v39 = vadd.f32 %v443_v11, %v214_v27 }
  0xcf   :  { %v274_v36 = vmul.f32 0.1, %v242_v26  ;;  %v245_v40 = vadd.f32 %v443_v11, %v222_v28  ;;  %v235_v41 = vadd.f32 %v443_v11, %v212_v33  ;;  %v243_v42 = vadd.f32 %v443_v11, %v220_v34 }
  0xd0   :  { %v282_v43 = vsel %vm250_vm3, %v234_v25, %v266_v35  ;;  %v217_v45 = vmul.f32 %v354_v37, %v438_v9  ;;  %v225_v46 = vmul.f32 %v362_v38, %v438_v9  ;;  %v157_v47 = vpop.f32.mrf.mxu0  ;;  %v189_v48 = vpop.f32.mrf.mxu1  ;;  %vm253_vm5 = vcmp.ge.f32.partialorder %v237_v39, 0.0 }
  0xd1   :  { %v290_v44 = vsel %vm258_vm4, %v242_v26, %v274_v36  ;;  %298 = vst.msk [vmem:[%s545_s4] sm:$0xff] %vm82_vm0, %v282_v43  ;;  %v269_v49 = vmul.f32 0.1, %v237_v39  ;;  %vm261_vm6 = vcmp.ge.f32.partialorder %v245_v40, 0.0  ;;  %v277_v50 = vmul.f32 0.1, %v245_v40 }
  0xd2   :  { %306 = vst.msk [vmem:[%s545_s4 + $0x40] sm:$0xff] %vm82_vm0, %v290_v44  ;;  %vm251_vm7 = vcmp.ge.f32.partialorder %v235_v41, 0.0  ;;  %v267_v51 = vmul.f32 0.1, %v235_v41  ;;  %vm259_vm8 = vcmp.ge.f32.partialorder %v243_v42, 0.0  ;;  %v355_v53 = vpop.f32.mrf.mxu0  ;;  %v363_v54 = vpop.f32.mrf.mxu1  ;;  %v240_v57 = vadd.f32 %v443_v11, %v217_v45 }
  0xd3   :  { %v275_v52 = vmul.f32 0.1, %v243_v42  ;;  %v285_v55 = vsel %vm253_vm5, %v237_v39, %v269_v49  ;;  %v293_v56 = vsel %vm261_vm6, %v245_v40, %v277_v50  ;;  %v248_v58 = vadd.f32 %v443_v11, %v225_v46 }
  0xd4   :  { %301 = vst.msk [vmem:[%s545_s4 + $0x18] sm:$0xff] %vm82_vm0, %v285_v55  ;;  %309 = vst.msk [vmem:[%s545_s4 + $0x58] sm:$0xff] %vm82_vm0, %v293_v56  ;;  %v283_v59 = vsel %vm251_vm7, %v235_v41, %v267_v51  ;;  %v215_v61 = vmul.f32 %v438_v9, %v157_v47  ;;  %v223_v62 = vmul.f32 %v438_v9, %v189_v48  ;;  %v160_v63 = vpop.f32.mrf.mxu0  ;;  %v192_v0 = vpop.f32.mrf.mxu1  ;;  %vm256_vm9 = vcmp.ge.f32.partialorder %v240_v57, 0.0 }
  0xd5   :  { %v291_v60 = vsel %vm259_vm8, %v243_v42, %v275_v52  ;;  %299 = vst.msk [vmem:[%s545_s4 + $0x8] sm:$0xff] %vm82_vm0, %v283_v59  ;;  %v272_v1 = vmul.f32 0.1, %v240_v57  ;;  %vm264_vm10 = vcmp.ge.f32.partialorder %v248_v58, 0.0  ;;  %v280_v2 = vmul.f32 0.1, %v248_v58 }
  0xd6   :  { %307 = vst.msk [vmem:[%s545_s4 + $0x48] sm:$0xff] %vm82_vm0, %v291_v60  ;;  %v238_v3 = vadd.f32 %v443_v11, %v215_v61  ;;  %v246_v4 = vadd.f32 %v443_v11, %v223_v62  ;;  %v218_v5 = vmul.f32 %v355_v53, %v438_v9  ;;  %v226_v6 = vmul.f32 %v363_v54, %v438_v9 }
  0xd7   :  { %v288_v7 = vsel %vm256_vm9, %v240_v57, %v272_v1  ;;  %v296_v8 = vsel %vm264_vm10, %v248_v58, %v280_v2  ;;  %v216_v10 = vmul.f32 %v438_v9, %v160_v63  ;;  %v224_v12 = vmul.f32 %v438_v9, %v192_v0 }
  0xd8   :  { %304 = vst.msk [vmem:[%s545_s4 + $0x30] sm:$0xff] %vm82_vm0, %v288_v7  ;;  %312 = vst.msk [vmem:[%s545_s4 + $0x70] sm:$0xff] %vm82_vm0, %v296_v8  ;;  %vm254_vm11 = vcmp.ge.f32.partialorder %v238_v3, 0.0  ;;  %v270_v13 = vmul.f32 0.1, %v238_v3  ;;  %vm262_vm12 = vcmp.ge.f32.partialorder %v246_v4, 0.0  ;;  %v241_v15 = vadd.f32 %v443_v11, %v218_v5 }
  0xd9   :  { %v278_v14 = vmul.f32 0.1, %v246_v4  ;;  %v249_v16 = vadd.f32 %v443_v11, %v226_v6  ;;  %v239_v9 = vadd.f32 %v443_v11, %v216_v10  ;;  %v247_v17 = vadd.f32 %v443_v11, %v224_v12 }
  0xda   :  { %v286_v18 = vsel %vm254_vm11, %v238_v3, %v270_v13  ;;  %vm257_vm13 = vcmp.ge.f32.partialorder %v241_v15, 0.0  ;;  %v273_v20 = vmul.f32 0.1, %v241_v15 }
  0xdb   :  { %v294_v19 = vsel %vm262_vm12, %v246_v4, %v278_v14  ;;  %302 = vst.msk [vmem:[%s545_s4 + $0x20] sm:$0xff] %vm82_vm0, %v286_v18  ;;  %vm265_vm14 = vcmp.ge.f32.partialorder %v249_v16, 0.0  ;;  %v281_v21 = vmul.f32 0.1, %v249_v16  ;;  %vm255_vm15 = vcmp.ge.f32.partialorder %v239_v9, 0.0 }
  0xdc   :  { %310 = vst.msk [vmem:[%s545_s4 + $0x60] sm:$0xff] %vm82_vm0, %v294_v19  ;;  %v271_v22 = vmul.f32 0.1, %v239_v9  ;;  %vm263_vm1 = vcmp.ge.f32.partialorder %v247_v17, 0.0  ;;  %v279_v11 = vmul.f32 0.1, %v247_v17  ;;  %v289_v23 = vsel %vm257_vm13, %v241_v15, %v273_v20 }
  0xdd   :  { %v297_v24 = vsel %vm265_vm14, %v249_v16, %v281_v21  ;;  %305 = vst.msk [vmem:[%s545_s4 + $0x38] sm:$0xff] %vm82_vm0, %v289_v23 }
  0xde   :  { %313 = vst.msk [vmem:[%s545_s4 + $0x78] sm:$0xff] %vm82_vm0, %v297_v24  ;;  %v287_v25 = vsel %vm255_vm15, %v239_v9, %v271_v22  ;;  %v295_v26 = vsel %vm263_vm1, %v247_v17, %v279_v11 }
  0xdf   :  { %303 = vst.msk [vmem:[%s545_s4 + $0x28] sm:$0xff] %vm82_vm0, %v287_v25  ;;  %311 = vst.msk [vmem:[%s545_s4 + $0x68] sm:$0xff] %vm82_vm0, %v295_v26 }

// kernel: _lambda_.5
= control target key start
LH: loop header
LB: loop body
LE: loop exit
PB: predicated region body
PF: predicated region fallthrough
CT: control target
= control target key end

     0   :  { %vm340_vm0 = vcmask 1043456   ;;  %vm243_vm1 = vcmask 64512   ;;  %vm967_vm2 = vcmask 130048   ;;  %s1803_s1 = inlined_call_operand.vmem [shape: bf16[8,16], index: 1, kind: input, shape index: {}]   ;;  %s1804_s0 = inlined_call_operand.vmem [shape: bf16[512,8], index: 0, kind: input, shape index: {}]   ;;  %s1805_s2 = inlined_call_operand.vmem [shape: f32[1,16], index: 2, kind: input, shape index: {}]   ;;  %s1806_s3 = inlined_call_operand.vmem [shape: f32[1,16], index: 3, kind: input, shape index: {}]   ;;  %s1807_s4 = inlined_call_operand.vmem [shape: f32[512,16], index: 4, kind: output, shape index: {}]  }
   0x1   :  { %v82_v0 = vld [vmem:[%s1803_s1] sm:$0xf]  ;;  %v1207_v4 = vld [vmem:[%s1804_s0 + $0x8] sm:$0xff]   ;;  %v1209_v6 = vld [vmem:[%s1804_s0 + $0x10] sm:$0xff]  }
   0x2   :  { %1203 = vmatprep.subr.msk.bf16.mxu0 %vm340_vm0, %v82_v0  ;;  %1204 = vmatprep.subr.msk.bf16.mxu1 %vm340_vm0, %v82_v0  ;;  %v342_v1 = vsel %vm340_vm0, %v82_v0, 0  ;;  %v1205_v2 = vld [vmem:[%s1804_s0] sm:$0xff]   ;;  %v1208_v5 = vld [vmem:[%s1804_s0 + $0x88] sm:$0xff]   ;;  %v1210_v7 = vld [vmem:[%s1804_s0 + $0x90] sm:$0xff]  }
   0x3   :  { %1136 = vmatpush3.bf16.msra.mxu0 %v342_v1  ;;  %1202 = vmatpush3.bf16.msra.mxu1 %v342_v1  ;;  %v1206_v3 = vld [vmem:[%s1804_s0 + $0x80] sm:$0xff]   ;;  %v1211_v8 = vld [vmem:[%s1804_s0 + $0x18] sm:$0xff]   ;;  %v1215_v12 = vld [vmem:[%s1804_s0 + $0x28] sm:$0xff]  }
   0x4   :  { %1137 = vmatprep.mubr.msk.bf16.mxu0 %vm243_vm1, %v1205_v2  ;;  %1169 = vmatprep.mubr.msk.bf16.mxu1 %vm243_vm1, %v1206_v3  ;;  %v1212_v9 = vld [vmem:[%s1804_s0 + $0x98] sm:$0xff]   ;;  %v1213_v10 = vld [vmem:[%s1804_s0 + $0x20] sm:$0xff]   ;;  %v1216_v13 = vld [vmem:[%s1804_s0 + $0xa8] sm:$0xff]  }
   0x5   :  { %v1214_v11 = vld [vmem:[%s1804_s0 + $0xa0] sm:$0xff]   ;;  %v1217_v14 = vld [vmem:[%s1804_s0 + $0x30] sm:$0xff]   ;;  %v1219_v16 = vld [vmem:[%s1804_s0 + $0x38] sm:$0xff]  }
   0x6   :  { %1138 = vmatmul.mubr.msk.bf16.vlgmr.msra.gmra.mxu0 %vm243_vm1, %v1207_v4  ;;  %1170 = vmatmul.mubr.msk.bf16.vlgmr.msra.gmra.mxu1 %vm243_vm1, %v1208_v5  ;;  %v1218_v15 = vld [vmem:[%s1804_s0 + $0xb0] sm:$0xff]   ;;  %v1220_v17 = vld [vmem:[%s1804_s0 + $0xb8] sm:$0xff]   ;;  %v1221_v18 = vld [vmem:[%s1804_s0 + $0x40] sm:$0xff]  }
   0x7   :  { %1141 = vmatprep.mubr.msk.bf16.mxu0 %vm243_vm1, %v1209_v6  ;;  %1173 = vmatprep.mubr.msk.bf16.mxu1 %vm243_vm1, %v1210_v7  ;;  %v1222_v19 = vld [vmem:[%s1804_s0 + $0xc0] sm:$0xff]   ;;  %v1223_v20 = vld [vmem:[%s1804_s0 + $0x48] sm:$0xff]   ;;  %v1225_v22 = vld [vmem:[%s1804_s0 + $0x50] sm:$0xff]  }
   0x8   :  { %v1224_v21 = vld [vmem:[%s1804_s0 + $0xc8] sm:$0xff]   ;;  %v1226_v23 = vld [vmem:[%s1804_s0 + $0xd0] sm:$0xff]   ;;  %v1227_v24 = vld [vmem:[%s1804_s0 + $0x58] sm:$0xff]  }
   0x9   :  { %v1228_v25 = vld [vmem:[%s1804_s0 + $0xd8] sm:$0xff]   ;;  %v1229_v26 = vld [vmem:[%s1804_s0 + $0x60] sm:$0xff]   ;;  %v1231_v28 = vld [vmem:[%s1804_s0 + $0x68] sm:$0xff]  }
   0xa   :  { %v1230_v27 = vld [vmem:[%s1804_s0 + $0xe0] sm:$0xff]   ;;  %v1232_v29 = vld [vmem:[%s1804_s0 + $0xe8] sm:$0xff]   ;;  %v1233_v30 = vld [vmem:[%s1804_s0 + $0x70] sm:$0xff]  }
   0xb   :  { %v1234_v31 = vld [vmem:[%s1804_s0 + $0xf0] sm:$0xff]   ;;  %v1235_v32 = vld [vmem:[%s1804_s0 + $0x78] sm:$0xff]   ;;  %v1396_v34 = vld [vmem:[%s1805_s2] ss:$0 sm:$0xff] }
   0xc   :  { %v1236_v33 = vld [vmem:[%s1804_s0 + $0xf8] sm:$0xff]   ;;  %v1401_v36 = vld [vmem:[%s1806_s3] ss:$0 sm:$0xff] }
   0xe   :  { %1142 = vmatmul.mubr.msk.bf16.gmra.mxu0 %vm243_vm1, %v1211_v8  ;;  %1174 = vmatmul.mubr.msk.bf16.gmra.mxu1 %vm243_vm1, %v1212_v9 }
   0xf   :  { %1145 = vmatprep.mubr.msk.bf16.mxu0 %vm243_vm1, %v1213_v10  ;;  %1177 = vmatprep.mubr.msk.bf16.mxu1 %vm243_vm1, %v1214_v11 }
  0x16   :  { %1146 = vmatmul.mubr.msk.bf16.gmra.mxu0 %vm243_vm1, %v1215_v12  ;;  %1178 = vmatmul.mubr.msk.bf16.gmra.mxu1 %vm243_vm1, %v1216_v13 }
  0x17   :  { %1149 = vmatprep.mubr.msk.bf16.mxu0 %vm243_vm1, %v1217_v14  ;;  %1181 = vmatprep.mubr.msk.bf16.mxu1 %vm243_vm1, %v1218_v15 }
  0x1e   :  { %1150 = vmatmul.mubr.msk.bf16.gmra.mxu0 %vm243_vm1, %v1219_v16  ;;  %1182 = vmatmul.mubr.msk.bf16.gmra.mxu1 %vm243_vm1, %v1220_v17 }
  0x1f   :  { %1153 = vmatprep.mubr.msk.bf16.mxu0 %vm243_vm1, %v1221_v18  ;;  %1185 = vmatprep.mubr.msk.bf16.mxu1 %vm243_vm1, %v1222_v19 }
  0x26   :  { %1154 = vmatmul.mubr.msk.bf16.gmra.mxu0 %vm243_vm1, %v1223_v20  ;;  %1186 = vmatmul.mubr.msk.bf16.gmra.mxu1 %vm243_vm1, %v1224_v21 }
  0x27   :  { %1157 = vmatprep.mubr.msk.bf16.mxu0 %vm243_vm1, %v1225_v22  ;;  %1189 = vmatprep.mubr.msk.bf16.mxu1 %vm243_vm1, %v1226_v23 }
  0x2e   :  { %1158 = vmatmul.mubr.msk.bf16.gmra.mxu0 %vm243_vm1, %v1227_v24  ;;  %1190 = vmatmul.mubr.msk.bf16.gmra.mxu1 %vm243_vm1, %v1228_v25 }
  0x2f   :  { %1161 = vmatprep.mubr.msk.bf16.mxu0 %vm243_vm1, %v1229_v26  ;;  %1193 = vmatprep.mubr.msk.bf16.mxu1 %vm243_vm1, %v1230_v27 }
  0x36   :  { %1162 = vmatmul.mubr.msk.bf16.gmra.mxu0 %vm243_vm1, %v1231_v28  ;;  %1194 = vmatmul.mubr.msk.bf16.gmra.mxu1 %vm243_vm1, %v1232_v29 }
  0x37   :  { %1165 = vmatprep.mubr.msk.bf16.mxu0 %vm243_vm1, %v1233_v30  ;;  %1197 = vmatprep.mubr.msk.bf16.mxu1 %vm243_vm1, %v1234_v31 }
  0x3e   :  { %1166 = vmatmul.mubr.msk.bf16.gmra.mxu0 %vm243_vm1, %v1235_v32  ;;  %1198 = vmatmul.mubr.msk.bf16.gmra.mxu1 %vm243_vm1, %v1236_v33 }
  0xc6   :  { %v1139_v35 = vpop.f32.mrf.mxu0  ;;  %v1171_v38 = vpop.f32.mrf.mxu1 }
  0xc7   :  { %v642_v37 = vmul.f32 %v1139_v35, %v1396_v34  ;;  %v674_v39 = vmul.f32 %v1171_v38, %v1396_v34 }
  0xc8   :  { %v378_v40 = vpop.f32.mrf.mxu0  ;;  %v506_v43 = vpop.f32.mrf.mxu1 }
  0xc9   :  { %v713_v41 = vadd.f32 %v1401_v36, %v642_v37  ;;  %v640_v42 = vmul.f32 %v1396_v34, %v378_v40  ;;  %v745_v44 = vadd.f32 %v1401_v36, %v674_v39  ;;  %v672_v45 = vmul.f32 %v1396_v34, %v506_v43 }
  0xca   :  { %v1140_v46 = vpop.f32.mrf.mxu0  ;;  %v1172_v50 = vpop.f32.mrf.mxu1 }
  0xcb   :  { %vm777_vm3 = vcmp.ge.f32.partialorder %v713_v41, 0.0  ;;  %v841_v47 = vmul.f32 0.1, %v713_v41  ;;  %v711_v48 = vadd.f32 %v1401_v36, %v640_v42  ;;  %v643_v49 = vmul.f32 %v1140_v46, %v1396_v34 }
  0xcc   :  { %vm809_vm4 = vcmp.ge.f32.partialorder %v745_v44, 0.0  ;;  %v873_v51 = vmul.f32 0.1, %v745_v44  ;;  %v743_v52 = vadd.f32 %v1401_v36, %v672_v45  ;;  %v675_v53 = vmul.f32 %v1172_v50, %v1396_v34  ;;  %v381_v54 = vpop.f32.mrf.mxu0  ;;  %v509_v58 = vpop.f32.mrf.mxu1 }
  0xcd   :  { %v905_v55 = vsel %vm777_vm3, %v713_v41, %v841_v47  ;;  %vm775_vm5 = vcmp.ge.f32.partialorder %v711_v48, 0.0  ;;  %v839_v56 = vmul.f32 0.1, %v711_v48  ;;  %v714_v57 = vadd.f32 %v1401_v36, %v643_v49 }
  0xce   :  { %970 = vst.msk [vmem:[%s1807_s4 + $0x10] sm:$0xff] %vm967_vm2, %v905_v55  ;;  %v937_v59 = vsel %vm809_vm4, %v745_v44, %v873_v51  ;;  %vm807_vm6 = vcmp.ge.f32.partialorder %v743_v52, 0.0  ;;  %v871_v60 = vmul.f32 0.1, %v743_v52  ;;  %v746_v61 = vadd.f32 %v1401_v36, %v675_v53  ;;  %v1143_v62 = vpop.f32.mrf.mxu0  ;;  %v1175_v2 = vpop.f32.mrf.mxu1 }
  0xcf   :  { %1002 = vst.msk [vmem:[%s1807_s4 + $0x110] sm:$0xff] %vm967_vm2, %v937_v59  ;;  %v903_v63 = vsel %vm775_vm5, %v711_v48, %v839_v56  ;;  %vm778_vm7 = vcmp.ge.f32.partialorder %v714_v57, 0.0  ;;  %v842_v0 = vmul.f32 0.1, %v714_v57  ;;  %v641_v1 = vmul.f32 %v1396_v34, %v381_v54 }
  0xd0   :  { %968 = vst.msk [vmem:[%s1807_s4] sm:$0xff] %vm967_vm2, %v903_v63  ;;  %v935_v3 = vsel %vm807_vm6, %v743_v52, %v871_v60  ;;  %vm810_vm8 = vcmp.ge.f32.partialorder %v746_v61, 0.0  ;;  %v874_v4 = vmul.f32 0.1, %v746_v61  ;;  %v673_v5 = vmul.f32 %v1396_v34, %v509_v58  ;;  %v394_v6 = vpop.f32.mrf.mxu0  ;;  %v522_v11 = vpop.f32.mrf.mxu1 }
  0xd1   :  { %1000 = vst.msk [vmem:[%s1807_s4 + $0x100] sm:$0xff] %vm967_vm2, %v935_v3  ;;  %v906_v7 = vsel %vm778_vm7, %v714_v57, %v842_v0  ;;  %v712_v8 = vadd.f32 %v1401_v36, %v641_v1  ;;  %v646_v9 = vmul.f32 %v1143_v62, %v1396_v34  ;;  %v678_v10 = vmul.f32 %v1175_v2, %v1396_v34 }
  0xd2   :  { %971 = vst.msk [vmem:[%s1807_s4 + $0x18] sm:$0xff] %vm967_vm2, %v906_v7  ;;  %v938_v12 = vsel %vm810_vm8, %v746_v61, %v874_v4  ;;  %v744_v13 = vadd.f32 %v1401_v36, %v673_v5  ;;  %v644_v14 = vmul.f32 %v1396_v34, %v394_v6  ;;  %v676_v15 = vmul.f32 %v1396_v34, %v522_v11  ;;  %v1144_v16 = vpop.f32.mrf.mxu0  ;;  %v1176_v20 = vpop.f32.mrf.mxu1 }
  0xd3   :  { %1003 = vst.msk [vmem:[%s1807_s4 + $0x118] sm:$0xff] %vm967_vm2, %v938_v12  ;;  %vm776_vm9 = vcmp.ge.f32.partialorder %v712_v8, 0.0  ;;  %v840_v17 = vmul.f32 0.1, %v712_v8  ;;  %v717_v18 = vadd.f32 %v1401_v36, %v646_v9  ;;  %v749_v19 = vadd.f32 %v1401_v36, %v678_v10 }
  0xd4   :  { %vm808_vm10 = vcmp.ge.f32.partialorder %v744_v13, 0.0  ;;  %v872_v21 = vmul.f32 0.1, %v744_v13  ;;  %v715_v22 = vadd.f32 %v1401_v36, %v644_v14  ;;  %v747_v23 = vadd.f32 %v1401_v36, %v676_v15  ;;  %v397_v24 = vpop.f32.mrf.mxu0  ;;  %v525_v27 = vpop.f32.mrf.mxu1 }
  0xd5   :  { %v904_v25 = vsel %vm776_vm9, %v712_v8, %v840_v17  ;;  %vm781_vm11 = vcmp.ge.f32.partialorder %v717_v18, 0.0  ;;  %v845_v26 = vmul.f32 0.1, %v717_v18  ;;  %vm813_vm12 = vcmp.ge.f32.partialorder %v749_v19, 0.0 }
  0xd6   :  { %969 = vst.msk [vmem:[%s1807_s4 + $0x8] sm:$0xff] %vm967_vm2, %v904_v25  ;;  %v936_v28 = vsel %vm808_vm10, %v744_v13, %v872_v21  ;;  %v877_v29 = vmul.f32 0.1, %v749_v19  ;;  %vm779_vm13 = vcmp.ge.f32.partialorder %v715_v22, 0.0  ;;  %v843_v30 = vmul.f32 0.1, %v715_v22  ;;  %v1147_v31 = vpop.f32.mrf.mxu0  ;;  %v1179_v37 = vpop.f32.mrf.mxu1 }
  0xd7   :  { %1001 = vst.msk [vmem:[%s1807_s4 + $0x108] sm:$0xff] %vm967_vm2, %v936_v28  ;;  %v909_v32 = vsel %vm781_vm11, %v717_v18, %v845_v26  ;;  %vm811_vm14 = vcmp.ge.f32.partialorder %v747_v23, 0.0  ;;  %v875_v33 = vmul.f32 0.1, %v747_v23  ;;  %v647_v35 = vmul.f32 %v1144_v16, %v1396_v34 }
  0xd8   :  { %974 = vst.msk [vmem:[%s1807_s4 + $0x30] sm:$0xff] %vm967_vm2, %v909_v32  ;;  %v941_v38 = vsel %vm813_vm12, %v749_v19, %v877_v29  ;;  %v907_v39 = vsel %vm779_vm13, %v715_v22, %v843_v30  ;;  %v679_v40 = vmul.f32 %v1176_v20, %v1396_v34  ;;  %v645_v41 = vmul.f32 %v1396_v34, %v397_v24  ;;  %v410_v42 = vpop.f32.mrf.mxu0  ;;  %v538_v47 = vpop.f32.mrf.mxu1 }
  0xd9   :  { %1006 = vst.msk [vmem:[%s1807_s4 + $0x130] sm:$0xff] %vm967_vm2, %v941_v38  ;;  %972 = vst.msk [vmem:[%s1807_s4 + $0x20] sm:$0xff] %vm967_vm2, %v907_v39  ;;  %v939_v43 = vsel %vm811_vm14, %v747_v23, %v875_v33  ;;  %v718_v44 = vadd.f32 %v1401_v36, %v647_v35  ;;  %v677_v45 = vmul.f32 %v1396_v34, %v525_v27 }
  0xda   :  { %v650_v46 = vmul.f32 %v1147_v31, %v1396_v34  ;;  %1004 = vst.msk [vmem:[%s1807_s4 + $0x120] sm:$0xff] %vm967_vm2, %v939_v43  ;;  %v750_v48 = vadd.f32 %v1401_v36, %v679_v40  ;;  %v716_v49 = vadd.f32 %v1401_v36, %v645_v41  ;;  %v682_v50 = vmul.f32 %v1179_v37, %v1396_v34  ;;  %v1148_v52 = vpop.f32.mrf.mxu0  ;;  %v1180_v56 = vpop.f32.mrf.mxu1 }
  0xdb   :  { %v648_v51 = vmul.f32 %v1396_v34, %v410_v42  ;;  %vm782_vm15 = vcmp.ge.f32.partialorder %v718_v44, 0.0  ;;  %v846_v53 = vmul.f32 0.1, %v718_v44  ;;  %v748_v54 = vadd.f32 %v1401_v36, %v677_v45 }
  0xdc   :  { %v721_v55 = vadd.f32 %v1401_v36, %v650_v46  ;;  %vm814_vm0 = vcmp.ge.f32.partialorder %v750_v48, 0.0  ;;  %v878_v57 = vmul.f32 0.1, %v750_v48  ;;  %vm780_vm1 = vcmp.ge.f32.partialorder %v716_v49, 0.0  ;;  %v413_v59 = vpop.f32.mrf.mxu0  ;;  %v541_v62 = vpop.f32.mrf.mxu1 }
  0xdd   :  { %v844_v58 = vmul.f32 0.1, %v716_v49  ;;  %v910_v60 = vsel %vm782_vm15, %v718_v44, %v846_v53  ;;  %vm812_vm3 = vcmp.ge.f32.partialorder %v748_v54, 0.0  ;;  %v876_v61 = vmul.f32 0.1, %v748_v54 }
  0xde   :  { %vm785_vm4 = vcmp.ge.f32.partialorder %v721_v55, 0.0  ;;  %975 = vst.msk [vmem:[%s1807_s4 + $0x38] sm:$0xff] %vm967_vm2, %v910_v60  ;;  %v942_v63 = vsel %vm814_vm0, %v750_v48, %v878_v57  ;;  %v849_v1 = vmul.f32 0.1, %v721_v55  ;;  %v753_v2 = vadd.f32 %v1401_v36, %v682_v50  ;;  %v1151_v3 = vpop.f32.mrf.mxu0  ;;  %v1183_v8 = vpop.f32.mrf.mxu1 }
  0xdf   :  { %v908_v0 = vsel %vm780_vm1, %v716_v49, %v844_v58  ;;  %1007 = vst.msk [vmem:[%s1807_s4 + $0x138] sm:$0xff] %vm967_vm2, %v942_v63  ;;  %v940_v4 = vsel %vm812_vm3, %v748_v54, %v876_v61  ;;  %v719_v5 = vadd.f32 %v1401_v36, %v648_v51  ;;  %v680_v6 = vmul.f32 %v1396_v34, %v538_v47 }
  0xe0   :  { %973 = vst.msk [vmem:[%s1807_s4 + $0x28] sm:$0xff] %vm967_vm2, %v908_v0  ;;  %v651_v7 = vmul.f32 %v1148_v52, %v1396_v34  ;;  %1005 = vst.msk [vmem:[%s1807_s4 + $0x128] sm:$0xff] %vm967_vm2, %v940_v4  ;;  %v913_v9 = vsel %vm785_vm4, %v721_v55, %v849_v1  ;;  %vm817_vm5 = vcmp.ge.f32.partialorder %v753_v2, 0.0  ;;  %v881_v10 = vmul.f32 0.1, %v753_v2  ;;  %v426_v12 = vpop.f32.mrf.mxu0  ;;  %v554_v16 = vpop.f32.mrf.mxu1 }
  0xe1   :  { %v683_v11 = vmul.f32 %v1180_v56, %v1396_v34  ;;  %978 = vst.msk [vmem:[%s1807_s4 + $0x50] sm:$0xff] %vm967_vm2, %v913_v9  ;;  %vm783_vm6 = vcmp.ge.f32.partialorder %v719_v5, 0.0  ;;  %v847_v13 = vmul.f32 0.1, %v719_v5  ;;  %v751_v14 = vadd.f32 %v1401_v36, %v680_v6 }
  0xe2   :  { %v722_v15 = vadd.f32 %v1401_v36, %v651_v7  ;;  %v945_v17 = vsel %vm817_vm5, %v753_v2, %v881_v10  ;;  %v649_v19 = vmul.f32 %v1396_v34, %v413_v59  ;;  %v681_v20 = vmul.f32 %v1396_v34, %v541_v62  ;;  %v1152_v21 = vpop.f32.mrf.mxu0  ;;  %v1184_v24 = vpop.f32.mrf.mxu1 }
  0xe3   :  { %v754_v18 = vadd.f32 %v1401_v36, %v683_v11  ;;  %1010 = vst.msk [vmem:[%s1807_s4 + $0x150] sm:$0xff] %vm967_vm2, %v945_v17  ;;  %v911_v22 = vsel %vm783_vm6, %v719_v5, %v847_v13  ;;  %vm815_vm7 = vcmp.ge.f32.partialorder %v751_v14, 0.0  ;;  %v879_v23 = vmul.f32 0.1, %v751_v14 }
  0xe4   :  { %vm786_vm8 = vcmp.ge.f32.partialorder %v722_v15, 0.0  ;;  %976 = vst.msk [vmem:[%s1807_s4 + $0x40] sm:$0xff] %vm967_vm2, %v911_v22  ;;  %v850_v25 = vmul.f32 0.1, %v722_v15  ;;  %v720_v27 = vadd.f32 %v1401_v36, %v649_v19  ;;  %v429_v28 = vpop.f32.mrf.mxu0  ;;  %v752_v30 = vadd.f32 %v1401_v36, %v681_v20  ;;  %v557_v33 = vpop.f32.mrf.mxu1 }
  0xe5   :  { %vm818_vm9 = vcmp.ge.f32.partialorder %v754_v18, 0.0  ;;  %v882_v26 = vmul.f32 0.1, %v754_v18  ;;  %v943_v29 = vsel %vm815_vm7, %v751_v14, %v879_v23  ;;  %v654_v31 = vmul.f32 %v1151_v3, %v1396_v34 }
  0xe6   :  { %v686_v32 = vmul.f32 %v1183_v8, %v1396_v34  ;;  %1008 = vst.msk [vmem:[%s1807_s4 + $0x140] sm:$0xff] %vm967_vm2, %v943_v29  ;;  %v914_v35 = vsel %vm786_vm8, %v722_v15, %v850_v25  ;;  %vm784_vm10 = vcmp.ge.f32.partialorder %v720_v27, 0.0  ;;  %v848_v38 = vmul.f32 0.1, %v720_v27  ;;  %v1155_v39 = vpop.f32.mrf.mxu0  ;;  %v1187_v43 = vpop.f32.mrf.mxu1 }
  0xe7   :  { %v946_v37 = vsel %vm818_vm9, %v754_v18, %v882_v26  ;;  %979 = vst.msk [vmem:[%s1807_s4 + $0x58] sm:$0xff] %vm967_vm2, %v914_v35  ;;  %vm816_vm11 = vcmp.ge.f32.partialorder %v752_v30, 0.0  ;;  %v880_v40 = vmul.f32 0.1, %v752_v30  ;;  %v725_v41 = vadd.f32 %v1401_v36, %v654_v31 }
  0xe8   :  { %1011 = vst.msk [vmem:[%s1807_s4 + $0x158] sm:$0xff] %vm967_vm2, %v946_v37  ;;  %v757_v42 = vadd.f32 %v1401_v36, %v686_v32  ;;  %v912_v44 = vsel %vm784_vm10, %v720_v27, %v848_v38  ;;  %v652_v45 = vmul.f32 %v1396_v34, %v426_v12  ;;  %v684_v46 = vmul.f32 %v1396_v34, %v554_v16  ;;  %v442_v48 = vpop.f32.mrf.mxu0  ;;  %v570_v51 = vpop.f32.mrf.mxu1 }
  0xe9   :  { %v655_v47 = vmul.f32 %v1152_v21, %v1396_v34  ;;  %977 = vst.msk [vmem:[%s1807_s4 + $0x48] sm:$0xff] %vm967_vm2, %v912_v44  ;;  %v944_v49 = vsel %vm816_vm11, %v752_v30, %v880_v40  ;;  %vm789_vm12 = vcmp.ge.f32.partialorder %v725_v41, 0.0  ;;  %v853_v50 = vmul.f32 0.1, %v725_v41 }
  0xea   :  { %vm821_vm13 = vcmp.ge.f32.partialorder %v757_v42, 0.0  ;;  %1009 = vst.msk [vmem:[%s1807_s4 + $0x148] sm:$0xff] %vm967_vm2, %v944_v49  ;;  %v885_v52 = vmul.f32 0.1, %v757_v42  ;;  %v723_v53 = vadd.f32 %v1401_v36, %v652_v45  ;;  %v755_v54 = vadd.f32 %v1401_v36, %v684_v46  ;;  %v1156_v56 = vpop.f32.mrf.mxu0  ;;  %v1188_v61 = vpop.f32.mrf.mxu1 }
  0xeb   :  { %v726_v55 = vadd.f32 %v1401_v36, %v655_v47  ;;  %v917_v57 = vsel %vm789_vm12, %v725_v41, %v853_v50  ;;  %v687_v58 = vmul.f32 %v1184_v24, %v1396_v34  ;;  %v653_v59 = vmul.f32 %v1396_v34, %v429_v28 }
  0xec   :  { %v685_v60 = vmul.f32 %v1396_v34, %v557_v33  ;;  %982 = vst.msk [vmem:[%s1807_s4 + $0x70] sm:$0xff] %vm967_vm2, %v917_v57  ;;  %v949_v62 = vsel %vm821_vm13, %v757_v42, %v885_v52  ;;  %vm787_vm14 = vcmp.ge.f32.partialorder %v723_v53, 0.0  ;;  %v851_v63 = vmul.f32 0.1, %v723_v53  ;;  %v445_v0 = vpop.f32.mrf.mxu0  ;;  %v573_v4 = vpop.f32.mrf.mxu1 }
  0xed   :  { %vm819_vm15 = vcmp.ge.f32.partialorder %v755_v54, 0.0  ;;  %1014 = vst.msk [vmem:[%s1807_s4 + $0x170] sm:$0xff] %vm967_vm2, %v949_v62  ;;  %v883_v1 = vmul.f32 0.1, %v755_v54  ;;  %vm790_vm0 = vcmp.ge.f32.partialorder %v726_v55, 0.0  ;;  %v758_v3 = vadd.f32 %v1401_v36, %v687_v58 }
  0xee   :  { %v854_v2 = vmul.f32 0.1, %v726_v55  ;;  %v915_v5 = vsel %vm787_vm14, %v723_v53, %v851_v63  ;;  %v724_v6 = vadd.f32 %v1401_v36, %v653_v59  ;;  %v756_v7 = vadd.f32 %v1401_v36, %v685_v60  ;;  %v1159_v9 = vpop.f32.mrf.mxu0  ;;  %v1577_v13 = vpop.f32.mrf.mxu1 }
  0xef   :  { %v658_v8 = vmul.f32 %v1155_v39, %v1396_v34  ;;  %980 = vst.msk [vmem:[%s1807_s4 + $0x60] sm:$0xff] %vm967_vm2, %v915_v5  ;;  %v947_v10 = vsel %vm819_vm15, %v755_v54, %v883_v1  ;;  %vm822_vm1 = vcmp.ge.f32.partialorder %v758_v3, 0.0  ;;  %v886_v12 = vmul.f32 0.1, %v758_v3 }
  0xf0   :  { %v918_v11 = vsel %vm790_vm0, %v726_v55, %v854_v2  ;;  %1012 = vst.msk [vmem:[%s1807_s4 + $0x160] sm:$0xff] %vm967_vm2, %v947_v10  ;;  %vm788_vm3 = vcmp.ge.f32.partialorder %v724_v6, 0.0  ;;  %v852_v14 = vmul.f32 0.1, %v724_v6  ;;  %vm820_vm4 = vcmp.ge.f32.partialorder %v756_v7, 0.0  ;;  %v458_v16 = vpop.f32.mrf.mxu0  ;;  %v586_v21 = vpop.f32.mrf.mxu1 }
  0xf1   :  { %983 = vst.msk [vmem:[%s1807_s4 + $0x78] sm:$0xff] %vm967_vm2, %v918_v11  ;;  %v884_v15 = vmul.f32 0.1, %v756_v7  ;;  %v950_v17 = vsel %vm822_vm1, %v758_v3, %v886_v12  ;;  %v729_v18 = vadd.f32 %v1401_v36, %v658_v8  ;;  %v690_v19 = vmul.f32 %v1187_v43, %v1396_v34 }
  0xf2   :  { %v656_v20 = vmul.f32 %v1396_v34, %v442_v48  ;;  %1015 = vst.msk [vmem:[%s1807_s4 + $0x178] sm:$0xff] %vm967_vm2, %v950_v17  ;;  %v916_v22 = vsel %vm788_vm3, %v724_v6, %v852_v14  ;;  %v688_v24 = vmul.f32 %v1396_v34, %v570_v51  ;;  %v659_v25 = vmul.f32 %v1156_v56, %v1396_v34  ;;  %v1160_v26 = vpop.f32.mrf.mxu0  ;;  %v1192_v30 = vpop.f32.mrf.mxu1 }
  0xf3   :  { %v948_v23 = vsel %vm820_vm4, %v756_v7, %v884_v15  ;;  %981 = vst.msk [vmem:[%s1807_s4 + $0x68] sm:$0xff] %vm967_vm2, %v916_v22  ;;  %vm793_vm5 = vcmp.ge.f32.partialorder %v729_v18, 0.0  ;;  %v857_v27 = vmul.f32 0.1, %v729_v18  ;;  %v761_v28 = vadd.f32 %v1401_v36, %v690_v19 }
  0xf4   :  { %1013 = vst.msk [vmem:[%s1807_s4 + $0x168] sm:$0xff] %vm967_vm2, %v948_v23  ;;  %v727_v29 = vadd.f32 %v1401_v36, %v656_v20  ;;  %v759_v31 = vadd.f32 %v1401_v36, %v688_v24  ;;  %v730_v32 = vadd.f32 %v1401_v36, %v659_v25  ;;  %v691_v33 = vmul.f32 %v1188_v61, %v1396_v34  ;;  %v461_v37 = vpop.f32.mrf.mxu0  ;;  %v1610_v40 = vpop.f32.mrf.mxu1 }
  0xf5   :  { %v657_v35 = vmul.f32 %v1396_v34, %v445_v0  ;;  %v921_v38 = vsel %vm793_vm5, %v729_v18, %v857_v27  ;;  %vm825_vm6 = vcmp.ge.f32.partialorder %v761_v28, 0.0  ;;  %v889_v39 = vmul.f32 0.1, %v761_v28 }
  0xf6   :  { %vm791_vm7 = vcmp.ge.f32.partialorder %v727_v29, 0.0  ;;  %986 = vst.msk [vmem:[%s1807_s4 + $0x90] sm:$0xff] %vm967_vm2, %v921_v38  ;;  %v855_v41 = vmul.f32 0.1, %v727_v29  ;;  %vm823_vm8 = vcmp.ge.f32.partialorder %v759_v31, 0.0  ;;  %vm794_vm9 = vcmp.ge.f32.partialorder %v730_v32, 0.0  ;;  %v1616_v43 = vpop.f32.mrf.mxu0  ;;  %v1620_v48 = vpop.f32.mrf.mxu1 }
  0xf7   :  { %v887_v42 = vmul.f32 0.1, %v759_v31  ;;  %v953_v44 = vsel %vm825_vm6, %v761_v28, %v889_v39  ;;  %v858_v45 = vmul.f32 0.1, %v730_v32  ;;  %v762_v46 = vadd.f32 %v1401_v36, %v691_v33 }
  0xf8   :  { %v728_v47 = vadd.f32 %v1401_v36, %v657_v35  ;;  %1018 = vst.msk [vmem:[%s1807_s4 + $0x190] sm:$0xff] %vm967_vm2, %v953_v44  ;;  %v919_v49 = vsel %vm791_vm7, %v727_v29, %v855_v41  ;;  %v689_v51 = vmul.f32 %v1396_v34, %v573_v4  ;;  %v662_v52 = vmul.f32 %v1159_v9, %v1396_v34  ;;  %v1628_v53 = vpop.f32.mrf.mxu0  ;;  %v602_v0 = vpop.f32.mrf.mxu1 }
  0xf9   :  { %v951_v50 = vsel %vm823_vm8, %v759_v31, %v887_v42  ;;  %984 = vst.msk [vmem:[%s1807_s4 + $0x80] sm:$0xff] %vm967_vm2, %v919_v49  ;;  %v922_v54 = vsel %vm794_vm9, %v730_v32, %v858_v45  ;;  %vm826_vm10 = vcmp.ge.f32.partialorder %v762_v46, 0.0  ;;  %v890_v55 = vmul.f32 0.1, %v762_v46 }
  0xfa   :  { %1016 = vst.msk [vmem:[%s1807_s4 + $0x180] sm:$0xff] %vm967_vm2, %v951_v50  ;;  %vm792_vm11 = vcmp.ge.f32.partialorder %v728_v47, 0.0  ;;  %987 = vst.msk [vmem:[%s1807_s4 + $0x98] sm:$0xff] %vm967_vm2, %v922_v54  ;;  %v856_v56 = vmul.f32 0.1, %v728_v47  ;;  %v760_v57 = vadd.f32 %v1401_v36, %v689_v51  ;;  %v733_v58 = vadd.f32 %v1401_v36, %v662_v52  ;;  %v1164_v1 = vpop.f32.mrf.mxu0  ;;  %v1196_v14 = vpop.f32.mrf.mxu1 }
  0xfb   :  { %v694_v59 = vmul.f32 %v1577_v13, %v1396_v34  ;;  %v954_v60 = vsel %vm826_vm10, %v762_v46, %v890_v55  ;;  %v660_v61 = vmul.f32 %v1396_v34, %v458_v16  ;;  %v692_v62 = vmul.f32 %v1396_v34, %v586_v21 }
  0xfc   :  { %v663_v63 = vmul.f32 %v1160_v26, %v1396_v34  ;;  %1019 = vst.msk [vmem:[%s1807_s4 + $0x198] sm:$0xff] %vm967_vm2, %v954_v60  ;;  %v920_v2 = vsel %vm792_vm11, %v728_v47, %v856_v56  ;;  %vm824_vm12 = vcmp.ge.f32.partialorder %v760_v57, 0.0  ;;  %v888_v3 = vmul.f32 0.1, %v760_v57  ;;  %v477_v15 = vpop.f32.mrf.mxu0  ;;  %v605_v28 = vpop.f32.mrf.mxu1 }
  0xfd   :  { %vm797_vm13 = vcmp.ge.f32.partialorder %v733_v58, 0.0  ;;  %985 = vst.msk [vmem:[%s1807_s4 + $0x88] sm:$0xff] %vm967_vm2, %v920_v2  ;;  %v861_v4 = vmul.f32 0.1, %v733_v58  ;;  %v765_v5 = vadd.f32 %v1401_v36, %v694_v59  ;;  %v731_v6 = vadd.f32 %v1401_v36, %v660_v61 }
  0xfe   :  { %v763_v7 = vadd.f32 %v1401_v36, %v692_v62  ;;  %v952_v8 = vsel %vm824_vm12, %v760_v57, %v888_v3  ;;  %v734_v9 = vadd.f32 %v1401_v36, %v663_v63  ;;  %v695_v10 = vmul.f32 %v1192_v30, %v1396_v34  ;;  %v1167_v29 = vpop.f32.mrf.mxu0  ;;  %v1199_v46 = vpop.f32.mrf.mxu1 }
  0xff   :  { %v661_v11 = vmul.f32 %v1396_v34, %v461_v37  ;;  %1017 = vst.msk [vmem:[%s1807_s4 + $0x188] sm:$0xff] %vm967_vm2, %v952_v8  ;;  %v925_v12 = vsel %vm797_vm13, %v733_v58, %v861_v4  ;;  %vm829_vm14 = vcmp.ge.f32.partialorder %v765_v5, 0.0  ;;  %v893_v13 = vmul.f32 0.1, %v765_v5 }
 0x100   :  { %vm795_vm15 = vcmp.ge.f32.partialorder %v731_v6, 0.0  ;;  %990 = vst.msk [vmem:[%s1807_s4 + $0xb0] sm:$0xff] %vm967_vm2, %v925_v12  ;;  %v859_v16 = vmul.f32 0.1, %v731_v6  ;;  %vm827_vm0 = vcmp.ge.f32.partialorder %v763_v7, 0.0  ;;  %vm798_vm1 = vcmp.ge.f32.partialorder %v734_v9, 0.0  ;;  %v490_v47 = vpop.f32.mrf.mxu0  ;;  %v618_v60 = vpop.f32.mrf.mxu1 }
 0x101   :  { %v891_v17 = vmul.f32 0.1, %v763_v7  ;;  %v957_v18 = vsel %vm829_vm14, %v765_v5, %v893_v13  ;;  %v862_v19 = vmul.f32 0.1, %v734_v9  ;;  %v766_v20 = vadd.f32 %v1401_v36, %v695_v10 }
 0x102   :  { %v732_v21 = vadd.f32 %v1401_v36, %v661_v11  ;;  %1022 = vst.msk [vmem:[%s1807_s4 + $0x1b0] sm:$0xff] %vm967_vm2, %v957_v18  ;;  %v923_v22 = vsel %vm795_vm15, %v731_v6, %v859_v16  ;;  %v693_v24 = vmul.f32 %v1396_v34, %v1610_v40  ;;  %v666_v25 = vmul.f32 %v1616_v43, %v1396_v34  ;;  %v1168_v61 = vpop.f32.mrf.mxu0  ;;  %v1200_v12 = vpop.f32.mrf.mxu1 }
 0x103   :  { %v955_v23 = vsel %vm827_vm0, %v763_v7, %v891_v17  ;;  %988 = vst.msk [vmem:[%s1807_s4 + $0xa0] sm:$0xff] %vm967_vm2, %v923_v22  ;;  %v926_v26 = vsel %vm798_vm1, %v734_v9, %v862_v19  ;;  %vm830_vm3 = vcmp.ge.f32.partialorder %v766_v20, 0.0  ;;  %v894_v27 = vmul.f32 0.1, %v766_v20 }
 0x104   :  { %1020 = vst.msk [vmem:[%s1807_s4 + $0x1a0] sm:$0xff] %vm967_vm2, %v955_v23  ;;  %vm796_vm4 = vcmp.ge.f32.partialorder %v732_v21, 0.0  ;;  %991 = vst.msk [vmem:[%s1807_s4 + $0xb8] sm:$0xff] %vm967_vm2, %v926_v26  ;;  %v860_v30 = vmul.f32 0.1, %v732_v21  ;;  %v764_v31 = vadd.f32 %v1401_v36, %v693_v24  ;;  %v737_v32 = vadd.f32 %v1401_v36, %v666_v25  ;;  %v493_v13 = vpop.f32.mrf.mxu0  ;;  %v621_v26 = vpop.f32.mrf.mxu1 }
 0x105   :  { %v698_v33 = vmul.f32 %v1620_v48, %v1396_v34  ;;  %v958_v35 = vsel %vm830_vm3, %v766_v20, %v894_v27  ;;  %v664_v37 = vmul.f32 %v1396_v34, %v1628_v53  ;;  %v696_v38 = vmul.f32 %v1396_v34, %v602_v0 }
 0x106   :  { %v667_v39 = vmul.f32 %v1164_v1, %v1396_v34  ;;  %1023 = vst.msk [vmem:[%s1807_s4 + $0x1b8] sm:$0xff] %vm967_vm2, %v958_v35  ;;  %v924_v40 = vsel %vm796_vm4, %v732_v21, %v860_v30  ;;  %vm828_vm5 = vcmp.ge.f32.partialorder %v764_v31, 0.0  ;;  %v892_v41 = vmul.f32 0.1, %v764_v31 }
 0x107   :  { %vm801_vm6 = vcmp.ge.f32.partialorder %v737_v32, 0.0  ;;  %989 = vst.msk [vmem:[%s1807_s4 + $0xa8] sm:$0xff] %vm967_vm2, %v924_v40  ;;  %v865_v42 = vmul.f32 0.1, %v737_v32  ;;  %v769_v43 = vadd.f32 %v1401_v36, %v698_v33  ;;  %v735_v44 = vadd.f32 %v1401_v36, %v664_v37 }
 0x108   :  { %v767_v45 = vadd.f32 %v1401_v36, %v696_v38  ;;  %v956_v48 = vsel %vm828_vm5, %v764_v31, %v892_v41  ;;  %v738_v49 = vadd.f32 %v1401_v36, %v667_v39  ;;  %v699_v50 = vmul.f32 %v1196_v14, %v1396_v34 }
 0x109   :  { %v665_v51 = vmul.f32 %v1396_v34, %v477_v15  ;;  %1021 = vst.msk [vmem:[%s1807_s4 + $0x1a8] sm:$0xff] %vm967_vm2, %v956_v48  ;;  %v929_v52 = vsel %vm801_vm6, %v737_v32, %v865_v42  ;;  %vm833_vm7 = vcmp.ge.f32.partialorder %v769_v43, 0.0  ;;  %v897_v53 = vmul.f32 0.1, %v769_v43 }
 0x10a   :  { %vm799_vm8 = vcmp.ge.f32.partialorder %v735_v44, 0.0  ;;  %994 = vst.msk [vmem:[%s1807_s4 + $0xd0] sm:$0xff] %vm967_vm2, %v929_v52  ;;  %v863_v54 = vmul.f32 0.1, %v735_v44  ;;  %vm831_vm9 = vcmp.ge.f32.partialorder %v767_v45, 0.0  ;;  %vm802_vm10 = vcmp.ge.f32.partialorder %v738_v49, 0.0 }
 0x10b   :  { %v895_v55 = vmul.f32 0.1, %v767_v45  ;;  %v961_v56 = vsel %vm833_vm7, %v769_v43, %v897_v53  ;;  %v866_v57 = vmul.f32 0.1, %v738_v49  ;;  %v770_v58 = vadd.f32 %v1401_v36, %v699_v50 }
 0x10c   :  { %v736_v59 = vadd.f32 %v1401_v36, %v665_v51  ;;  %1026 = vst.msk [vmem:[%s1807_s4 + $0x1d0] sm:$0xff] %vm967_vm2, %v961_v56  ;;  %v927_v62 = vsel %vm799_vm8, %v735_v44, %v863_v54  ;;  %v697_v0 = vmul.f32 %v1396_v34, %v605_v28  ;;  %v670_v1 = vmul.f32 %v1167_v29, %v1396_v34 }
 0x10d   :  { %v959_v63 = vsel %vm831_vm9, %v767_v45, %v895_v55  ;;  %992 = vst.msk [vmem:[%s1807_s4 + $0xc0] sm:$0xff] %vm967_vm2, %v927_v62  ;;  %v930_v2 = vsel %vm802_vm10, %v738_v49, %v866_v57  ;;  %vm834_vm11 = vcmp.ge.f32.partialorder %v770_v58, 0.0  ;;  %v898_v3 = vmul.f32 0.1, %v770_v58 }
 0x10e   :  { %1024 = vst.msk [vmem:[%s1807_s4 + $0x1c0] sm:$0xff] %vm967_vm2, %v959_v63  ;;  %vm800_vm12 = vcmp.ge.f32.partialorder %v736_v59, 0.0  ;;  %995 = vst.msk [vmem:[%s1807_s4 + $0xd8] sm:$0xff] %vm967_vm2, %v930_v2  ;;  %v864_v4 = vmul.f32 0.1, %v736_v59  ;;  %v768_v5 = vadd.f32 %v1401_v36, %v697_v0  ;;  %v741_v6 = vadd.f32 %v1401_v36, %v670_v1 }
 0x10f   :  { %v702_v7 = vmul.f32 %v1199_v46, %v1396_v34  ;;  %v962_v8 = vsel %vm834_vm11, %v770_v58, %v898_v3  ;;  %v668_v9 = vmul.f32 %v1396_v34, %v490_v47  ;;  %v700_v10 = vmul.f32 %v1396_v34, %v618_v60 }
 0x110   :  { %v671_v11 = vmul.f32 %v1168_v61, %v1396_v34  ;;  %1027 = vst.msk [vmem:[%s1807_s4 + $0x1d8] sm:$0xff] %vm967_vm2, %v962_v8  ;;  %v928_v14 = vsel %vm800_vm12, %v736_v59, %v864_v4  ;;  %vm832_vm13 = vcmp.ge.f32.partialorder %v768_v5, 0.0  ;;  %v896_v15 = vmul.f32 0.1, %v768_v5 }
 0x111   :  { %vm805_vm14 = vcmp.ge.f32.partialorder %v741_v6, 0.0  ;;  %993 = vst.msk [vmem:[%s1807_s4 + $0xc8] sm:$0xff] %vm967_vm2, %v928_v14  ;;  %v869_v16 = vmul.f32 0.1, %v741_v6  ;;  %v773_v17 = vadd.f32 %v1401_v36, %v702_v7  ;;  %v739_v18 = vadd.f32 %v1401_v36, %v668_v9 }
 0x112   :  { %v771_v19 = vadd.f32 %v1401_v36, %v700_v10  ;;  %v960_v20 = vsel %vm832_vm13, %v768_v5, %v896_v15  ;;  %v742_v21 = vadd.f32 %v1401_v36, %v671_v11  ;;  %v703_v22 = vmul.f32 %v1200_v12, %v1396_v34 }
 0x113   :  { %v669_v23 = vmul.f32 %v1396_v34, %v493_v13  ;;  %1025 = vst.msk [vmem:[%s1807_s4 + $0x1c8] sm:$0xff] %vm967_vm2, %v960_v20  ;;  %v933_v24 = vsel %vm805_vm14, %v741_v6, %v869_v16  ;;  %vm837_vm15 = vcmp.ge.f32.partialorder %v773_v17, 0.0  ;;  %v901_v25 = vmul.f32 0.1, %v773_v17 }
 0x114   :  { %vm803_vm0 = vcmp.ge.f32.partialorder %v739_v18, 0.0  ;;  %998 = vst.msk [vmem:[%s1807_s4 + $0xf0] sm:$0xff] %vm967_vm2, %v933_v24  ;;  %v867_v27 = vmul.f32 0.1, %v739_v18  ;;  %vm835_vm1 = vcmp.ge.f32.partialorder %v771_v19, 0.0  ;;  %vm806_vm3 = vcmp.ge.f32.partialorder %v742_v21, 0.0 }
 0x115   :  { %v899_v28 = vmul.f32 0.1, %v771_v19  ;;  %v965_v29 = vsel %vm837_vm15, %v773_v17, %v901_v25  ;;  %v870_v30 = vmul.f32 0.1, %v742_v21  ;;  %v774_v31 = vadd.f32 %v1401_v36, %v703_v22 }
 0x116   :  { %v740_v32 = vadd.f32 %v1401_v36, %v669_v23  ;;  %1030 = vst.msk [vmem:[%s1807_s4 + $0x1f0] sm:$0xff] %vm967_vm2, %v965_v29  ;;  %v931_v33 = vsel %vm803_vm0, %v739_v18, %v867_v27  ;;  %v701_v37 = vmul.f32 %v1396_v34, %v621_v26 }
 0x117   :  { %v963_v35 = vsel %vm835_vm1, %v771_v19, %v899_v28  ;;  %996 = vst.msk [vmem:[%s1807_s4 + $0xe0] sm:$0xff] %vm967_vm2, %v931_v33  ;;  %v934_v38 = vsel %vm806_vm3, %v742_v21, %v870_v30  ;;  %vm838_vm4 = vcmp.ge.f32.partialorder %v774_v31, 0.0  ;;  %v902_v39 = vmul.f32 0.1, %v774_v31 }
 0x118   :  { %1028 = vst.msk [vmem:[%s1807_s4 + $0x1e0] sm:$0xff] %vm967_vm2, %v963_v35  ;;  %vm804_vm5 = vcmp.ge.f32.partialorder %v740_v32, 0.0  ;;  %999 = vst.msk [vmem:[%s1807_s4 + $0xf8] sm:$0xff] %vm967_vm2, %v934_v38  ;;  %v868_v34 = vmul.f32 0.1, %v740_v32  ;;  %v772_v40 = vadd.f32 %v1401_v36, %v701_v37 }
 0x119   :  { %v966_v41 = vsel %vm838_vm4, %v774_v31, %v902_v39 }
 0x11a   :  { %1031 = vst.msk [vmem:[%s1807_s4 + $0x1f8] sm:$0xff] %vm967_vm2, %v966_v41  ;;  %v932_v42 = vsel %vm804_vm5, %v740_v32, %v868_v34  ;;  %vm836_vm6 = vcmp.ge.f32.partialorder %v772_v40, 0.0  ;;  %v900_v43 = vmul.f32 0.1, %v772_v40 }
 0x11b   :  { %997 = vst.msk [vmem:[%s1807_s4 + $0xe8] sm:$0xff] %vm967_vm2, %v932_v42 }
 0x11c   :  { %v964_v44 = vsel %vm836_vm6, %v772_v40, %v900_v43 }
 0x11d   :  { %1029 = vst.msk [vmem:[%s1807_s4 + $0x1e8] sm:$0xff] %vm967_vm2, %v964_v44 }

// kernel: _lambda_.8
= control target key start
LH: loop header
LB: loop body
LE: loop exit
PB: predicated region body
PF: predicated region fallthrough
CT: control target
= control target key end

     0   :  { %s1967_s15 = smov 0   ;;  %s1969_s16 = smov 0   ;;  %s2445_s0 = inlined_call_operand.vmem [shape: bf16[2,1,10,10,16], index: 0, kind: input, shape index: {}]   ;;  %s2446_s1 = inlined_call_operand.vmem [shape: bf16[9,16,16], index: 1, kind: input, shape index: {}]   ;;  %s2447_s2 = inlined_call_operand.vmem [shape: f32[1,16], index: 2, kind: input, shape index: {}]   ;;  %s2448_s3 = inlined_call_operand.vmem [shape: f32[1,16], index: 3, kind: input, shape index: {}]   ;;  %s2449_s4 = inlined_call_operand.vmem [shape: f32[2,1,64,16], index: 4, kind: output, shape index: {}]  }
   0x1   :  { %s1971_s17 = smov 0  }
   0x2 LB: > { %s26_s18 = sadd.s32 1, %s1936_s16  ;;  %p1631_p0 = scmp.ge.s32.totalorder %s1940_s17, 1  ;;  %s1940_s17 = sphi %s1971_s17, %s14_s17   ;;  %s1936_s16 = sphi %s1969_s16, %s2455_s16   ;;  %s1932_s15 = sphi %s1967_s15, %s2454_s15  }
   0x3   : > { %p28_p1 = scmp.ge.s32.totalorder %s26_s18, 2  ;;  %p182_p2 = scmp.lt.s32.totalorder %s1940_s17, 3 }
   0x5   : > { %s2457_s18 = smov (%p28_p1, %s26_s18), 0  ;;  %p183_p3 = pnand %p1631_p0, %p182_p2 }
   0x6   : > { %p216_p4 = scmp.lt.s32.totalorder (!%p183_p3), %s1932_s15, 1 }
   0x7   : > { %186 = sbr.rel (%p183_p3) target bundleno = 334 (0x14e), region = 36 }
   0xc   : > { %v1900_v0 = vld [vmem:[%s2446_s1] sm:$0xff]   ;;  %v1904_v1 = vld [vmem:[%s2446_s1 + $0x8] sm:$0xff]   ;;  %s2459_s15 = smov (!%p216_p4, %s1932_s15), 1  ;;  %v1996_v2 = vld [vmem:[%s2446_s1 + $0x10] sm:$0xff]   ;;  %vm283_vm0 = vcmask 130048   ;;  %vm622_vm3 = vcmask 1042432  }
   0xd   : > { %1873 = vmatprep.subr.bf16.mxu1 %v1900_v0  ;;  %1783 = vmatprep.subr.bf16.mxu0 %v1900_v0  ;;  %s1875_s25 = smul.u32 80, %s2459_s15  ;;  %vm377_vm1 = vsmask.f32 3328  ;;  %vm378_vm2 = vsmask.f32 7440  ;;  %vm623_vm4 = vcmask 1046532  }
   0xe   : > { %1874 = vmatpush3.bf16.msra.mxu1 %v1900_v0  ;;  %1784 = vmatpush3.bf16.msra.mxu0 %v1900_v0  ;;  %v2047_v21 = vld [vmem:[%s2446_s1 + $0x18] sm:$0xff]   ;;  %v2068_v32 = vld [vmem:[%s2446_s1 + $0x20] sm:$0xff]   ;;  %vm2086_vm5 = vmor %vm377_vm1, %vm378_vm2  ;;  %s1737_s23 = sshll.u32 %s2459_s15, 6 }
   0xf   : > { %1793 = vmatprep.subr.bf16.mxu1 %v1904_v1  ;;  %1803 = vmatprep.subr.bf16.mxu0 %v1996_v2  ;;  %s2003_s28 = scalar_lea.vmem %s2445_s0, %s1875_s25  ;;  %vm2095_vm6 = vmor %vm622_vm3, %vm623_vm4  ;;  %s2401_s26 = scalar_lea.vmem %s2449_s4, %s1737_s23 }
  0x10   : > { %v2006_v3 = vld [vmem:[%s2003_s28 + $0x20] sm:$0xf]  ;;  %v2009_v4 = vld [vmem:[%s2003_s28 + $0x28] sm:$0xf]  ;;  %v2030_v15 = vld [vmem:[%s2003_s28 + $0x30] sm:$0xf] }
  0x11   : > { %v2012_v5 = vld [vmem:[%s2003_s28] sm:$0xf]  ;;  %v2016_v6 = vcombine.low %v2006_v3, %v2009_v4  ;;  %v437_v7 = vshrl.u32 %v2006_v3, 16  ;;  %v440_v8 = vshll.u32 %v2006_v3, 16  ;;  %v451_v9 = vshrl.u32 %v2009_v4, 16 }
  0x12   : > { %v2022_v10 = vld [vmem:[%s2003_s28 + $0x8] sm:$0xf]  ;;  %v454_v11 = vshll.u32 %v2009_v4, 16  ;;  %v381_v13 = vshrl.u32 %v2012_v5, 16  ;;  %v384_v14 = vshll.u32 %v2012_v5, 16  ;;  %v1655_v28 = vrot.slane %v2012_v5, 9 }
  0x13   : > { %v1635_v12 = vcombine.low %v2012_v5, %v2022_v10  ;;  %1789 = vmatprep.mubr.msk.bf16.mxu1 %vm283_vm0, %v2016_v6  ;;  %v2034_v16 = vrot.slane %v437_v7, 4  ;;  %v2036_v17 = vrot.slane %v440_v8, 5  ;;  %v2038_v18 = vrot.slane %v451_v9, 4  ;;  %v2042_v20 = vld [vmem:[%s2003_s28 + $0x38] sm:$0xf] }
  0x14   : > { %v395_v19 = vshrl.u32 %v2022_v10, 16  ;;  %v2049_v22 = vrot.slane %v454_v11, 5  ;;  %v383_v23 = vrot.slane %v381_v13, 4  ;;  %v386_v24 = vrot.slane %v384_v14, 5  ;;  %v2054_v26 = vld [vmem:[%s2003_s28 + $0x10] sm:$0xf] }
  0x15   : > { %1785 = vmatprep.mubr.msk.bf16.mxu0 %vm283_vm0, %v1635_v12  ;;  %v398_v25 = vshll.u32 %v2022_v10, 16  ;;  %v2059_v29 = vcombine.low %v2030_v15, %v2042_v20  ;;  %v2062_v30 = vld [vmem:[%s2003_s28 + $0x18] sm:$0xf]  ;;  %v409_v31 = vshrl.u32 %v2054_v26, 16  ;;  %v412_v36 = vshll.u32 %v2054_v26, 16 }
  0x16   : > { %v397_v27 = vrot.slane %v395_v19, 4  ;;  %v387_v33 = vor.u32 %v386_v24, %v383_v23  ;;  %v2072_v35 = vcombine.low %v2054_v26, %v2062_v30  ;;  %v236_v37 = vld [vmem:[%s2003_s28 + $0x4] sm:$0x1]  ;;  %v238_v38 = vld [vmem:[%s2003_s28 + $0xc] sm:$0x1]  ;;  %v423_v39 = vshrl.u32 %v2062_v30, 16 }
  0x17   : > { %v400_v34 = vrot.slane %v398_v25, 5  ;;  %1790 = vmatmul.mubr.msk.bf16.vlgmr.msra.gmra.mxu1 %vm283_vm0, %v2059_v29  ;;  %v426_v40 = vshll.u32 %v2062_v30, 16  ;;  %v390_v41 = vshll.u32 %v236_v37, 16  ;;  %v404_v42 = vshll.u32 %v238_v38, 16  ;;  %v240_v43 = vld [vmem:[%s2003_s28 + $0x14] sm:$0x1] }
  0x18   : > { %v388_v44 = vrot.slane %v387_v33, 4  ;;  %1786 = vmatmul.mubr.msk.bf16.vlgmr.msra.gmra.mxu0 %vm283_vm0, %v2072_v35  ;;  %1794 = vmatpush3.bf16.msra.mxu1 %v1904_v1  ;;  %v242_v47 = vld [vmem:[%s2003_s28 + $0x1c] sm:$0x1]  ;;  %v411_v48 = vrot.slane %v409_v31, 4  ;;  %v414_v49 = vrot.slane %v412_v36, 5  ;;  %v418_v52 = vshll.u32 %v240_v43, 16 }
  0x19   : > { %v401_v46 = vor.u32 %v400_v34, %v397_v27  ;;  %v392_v50 = vrot.slane %v390_v41, 5  ;;  %v406_v51 = vrot.slane %v404_v42, 5  ;;  %v425_v53 = vrot.slane %v423_v39, 4  ;;  %1804 = vmatpush3.bf16.msra.mxu0 %v1996_v2  ;;  %1813 = vmatprep.subr.bf16.mxu1 %v2047_v21  ;;  %v244_v5 = vld [vmem:[%s2003_s28 + $0x24] sm:$0x1] }
  0x1a   : > { %v415_v55 = vor.u32 %v414_v49, %v411_v48  ;;  %v428_v56 = vrot.slane %v426_v40, 5  ;;  %v432_v57 = vshll.u32 %v242_v47, 16  ;;  %1823 = vmatprep.subr.bf16.mxu0 %v2068_v32  ;;  %v420_v60 = vrot.slane %v418_v52, 5  ;;  %v2113_v12 = vld [vmem:[%s2003_s28 + $0x2c] sm:$0x1] }
  0x1b   : > { %v402_v54 = vrot.slane %v401_v46, 4  ;;  %v393_v59 = vsel %vm2086_vm5, %v388_v44, %v392_v50  ;;  %v627_v61 = vrot.slane %v236_v37, 5  ;;  %v1656_v62 = vrot.slane %v2022_v10, 9  ;;  %v248_v37 = vld [vmem:[%s2003_s28 + $0x34] sm:$0x1]  ;;  %v2150_v40 = vld [vmem:[%s2446_s1 + $0x28] sm:$0xff]  }
  0x1c   : > { %v416_v0 = vrot.slane %v415_v55, 4  ;;  %v429_v1 = vor.u32 %v428_v56, %v425_v53  ;;  %v434_v2 = vrot.slane %v432_v57, 5  ;;  %v631_v9 = vrot.slane %v238_v38, 5  ;;  %v250_v42 = vld [vmem:[%s2003_s28 + $0x3c] sm:$0x1]  ;;  %v2163_v44 = vld [vmem:[%s2446_s1 + $0x30] sm:$0xff]  }
  0x1d   : > { %v2105_v63 = vsel %vm2086_vm5, %v402_v54, %v406_v51  ;;  %v628_v8 = vsel %vm2095_vm6, %v1655_v28, %v627_v61  ;;  %v1657_v11 = vrot.slane %v2054_v26, 9  ;;  %v635_v19 = vrot.slane %v240_v43, 5 }
  0x1e   : > { %v1646_v7 = vcombine.low %v393_v59, %v2105_v63  ;;  %v2117_v13 = vsel %vm2086_vm5, %v416_v0, %v420_v60  ;;  %v430_v14 = vrot.slane %v429_v1, 4  ;;  %v1658_v23 = vrot.slane %v2062_v30, 9 }
  0x1f   : > { %v2123_v24 = vsel %vm2095_vm6, %v1656_v62, %v631_v9  ;;  %v639_v25 = vrot.slane %v242_v47, 5  ;;  %v443_v27 = vor.u32 %v2036_v17, %v2034_v16  ;;  %v446_v28 = vshll.u32 %v244_v5, 16 }
  0x20   : > { %1795 = vmatprep.mubr.msk.bf16.mxu1 %vm283_vm0, %v1646_v7  ;;  %v2129_v31 = vsel %vm2086_vm5, %v430_v14, %v434_v2  ;;  %v1665_v33 = vcombine.low %v628_v8, %v2123_v24  ;;  %v2134_v34 = vsel %vm2095_vm6, %v1657_v11, %v635_v19  ;;  %v457_v36 = vor.u32 %v2049_v22, %v2038_v18 }
  0x21   : > { %v2141_v38 = vcombine.low %v2117_v13, %v2129_v31  ;;  %v2145_v16 = vsel %vm2095_vm6, %v1658_v23, %v639_v25  ;;  %v444_v17 = vrot.slane %v443_v27, 4  ;;  %v448_v39 = vrot.slane %v446_v28, 5  ;;  %v2212_v28 = vld [vmem:[%s2003_s28 + $0x40] sm:$0xf] }
  0x22   : > { %1805 = vmatprep.mubr.msk.bf16.mxu0 %vm283_vm0, %v1665_v33  ;;  %v2155_v18 = vcombine.low %v2134_v34, %v2145_v16  ;;  %v458_v22 = vrot.slane %v457_v36, 4  ;;  %v460_v41 = vshll.u32 %v2113_v12, 16  ;;  %v465_v43 = vshrl.u32 %v2030_v15, 16 }
  0x23   : > { %1796 = vmatmul.mubr.msk.bf16.vlgmr.msra.gmra.mxu1 %vm283_vm0, %v2141_v38  ;;  %v468_v46 = vshll.u32 %v2030_v15, 16  ;;  %v474_v47 = vshll.u32 %v248_v37, 16  ;;  %v479_v48 = vshrl.u32 %v2042_v20, 16  ;;  %v2174_v49 = vsel %vm2086_vm5, %v444_v17, %v448_v39 }
  0x24   : > { %1806 = vmatmul.mubr.msk.bf16.vlgmr.msra.gmra.mxu0 %vm283_vm0, %v2155_v18  ;;  %1814 = vmatpush3.bf16.msra.mxu1 %v2047_v21  ;;  %v462_v50 = vrot.slane %v460_v41, 5  ;;  %v467_v51 = vrot.slane %v465_v43, 4  ;;  %v482_v52 = vshll.u32 %v2042_v20, 16  ;;  %v488_v56 = vshll.u32 %v250_v42, 16  ;;  %v252_v41 = vld [vmem:[%s2003_s28 + $0x44] sm:$0x1] }
  0x25   : > { %v470_v53 = vrot.slane %v468_v46, 5  ;;  %v476_v54 = vrot.slane %v474_v47, 5  ;;  %v481_v55 = vrot.slane %v479_v48, 4  ;;  %1824 = vmatpush3.bf16.msra.mxu0 %v2068_v32  ;;  %1833 = vmatprep.subr.bf16.mxu1 %v2150_v40  ;;  %v1659_v59 = vrot.slane %v2006_v3, 9  ;;  %v2238_v47 = vld [vmem:[%s2003_s28 + $0x4c] sm:$0x1] }
  0x26   : > { %v2181_v57 = vsel %vm2086_vm5, %v458_v22, %v462_v50  ;;  %v484_v21 = vrot.slane %v482_v52, 5  ;;  %v643_v60 = vrot.slane %v244_v5, 5  ;;  %1843 = vmatprep.subr.bf16.mxu0 %v2163_v44  ;;  %v490_v0 = vrot.slane %v488_v56, 5 }
  0x27   : > { %v2187_v61 = vcombine.low %v2174_v49, %v2181_v57  ;;  %v471_v62 = vor.u32 %v470_v53, %v467_v51  ;;  %v1660_v32 = vrot.slane %v2009_v4, 9  ;;  %v647_v7 = vrot.slane %v2113_v12, 5 }
  0x28   : > { %v485_v1 = vor.u32 %v484_v21, %v481_v55  ;;  %v2192_v2 = vsel %vm2095_vm6, %v1659_v59, %v643_v60  ;;  %v1661_v5 = vrot.slane %v2030_v15, 9  ;;  %v651_v9 = vrot.slane %v248_v37, 5 }
  0x29   : > { %1799 = vmatprep.mubr.msk.bf16.mxu1 %vm283_vm0, %v2187_v61  ;;  %v472_v8 = vrot.slane %v471_v62, 4  ;;  %v1662_v11 = vrot.slane %v2042_v20, 9  ;;  %v2201_v19 = vsel %vm2095_vm6, %v1660_v32, %v647_v7  ;;  %v655_v23 = vrot.slane %v250_v42, 5  ;;  %v2233_v42 = vld [vmem:[%s2003_s28 + $0x48] sm:$0xf]  ;;  %v1915_v32 = vld [vmem:[%s2446_s1 + $0x38] sm:$0xff]  }
  0x2a   : > { %v486_v14 = vrot.slane %v485_v1, 4  ;;  %v2207_v25 = vcombine.low %v2192_v2, %v2201_v19  ;;  %v652_v27 = vsel %vm2095_vm6, %v1661_v5, %v651_v9  ;;  %v1676_v37 = vcombine.low %v2022_v10, %v2054_v26 }
  0x2b   : > { %v477_v12 = vsel %vm2086_vm5, %v472_v8, %v476_v54  ;;  %v2218_v36 = vsel %vm2095_vm6, %v1662_v11, %v655_v23  ;;  %v1687_v17 = vcombine.low %v2105_v63, %v2117_v13  ;;  %v896_v43 = vshrl.u32 %v2212_v28, 16 }
  0x2c   : > { %v491_v33 = vsel %vm2086_vm5, %v486_v14, %v490_v0  ;;  %1809 = vmatprep.mubr.msk.bf16.mxu0 %vm283_vm0, %v2207_v25  ;;  %v2229_v22 = vcombine.low %v652_v27, %v2218_v36  ;;  %v899_v46 = vshll.u32 %v2212_v28, 16  ;;  %v905_v63 = vshll.u32 %v252_v41, 16 }
  0x2d   : > { %v2224_v39 = vcombine.low %v477_v12, %v491_v33  ;;  %v898_v10 = vrot.slane %v896_v43, 4  ;;  %v1249_v13 = vshrl.u32 %v2233_v42, 16  ;;  %v1252_v48 = vshll.u32 %v2233_v42, 16 }
  0x2e   : > { %1810 = vmatmul.mubr.msk.bf16.gmra.mxu0 %vm283_vm0, %v2229_v22  ;;  %v901_v26 = vrot.slane %v899_v46, 5  ;;  %v1258_v50 = vshll.u32 %v2238_v47, 16  ;;  %v1688_v53 = vcombine.low %v2129_v31, %v2174_v49  ;;  %v1677_v54 = vcombine.low %v2062_v30, %v2006_v3  ;;  %v1917_v31 = vld [vmem:[%s2446_s1 + $0x40] sm:$0xff]  }
  0x2f   : > { %1800 = vmatmul.mubr.msk.bf16.gmra.mxu1 %vm283_vm0, %v2224_v39  ;;  %1825 = vmatprep.mubr.msk.bf16.mxu0 %vm283_vm0, %v1687_v17  ;;  %v1251_v52 = vrot.slane %v1249_v13, 4  ;;  %v1254_v55 = vrot.slane %v1252_v48, 5  ;;  %v1678_v56 = vcombine.low %v2009_v4, %v2030_v15  ;;  %v907_v59 = vrot.slane %v905_v63, 5 }
  0x30   : > { %1815 = vmatprep.mubr.msk.bf16.mxu1 %vm283_vm0, %v1676_v37  ;;  %v902_v51 = vor.u32 %v901_v26, %v898_v10  ;;  %v1689_v60 = vcombine.low %v2181_v57, %v477_v12  ;;  %v1260_v0 = vrot.slane %v1258_v50, 5  ;;  %v1679_v30 = vcombine.low %v2042_v20, %v2212_v28 }
  0x31   : > { %v1255_v62 = vor.u32 %v1254_v55, %v1251_v52  ;;  %v1699_v57 = vcombine.low %v2123_v24, %v2134_v34  ;;  %v1700_v45 = vcombine.low %v2145_v16, %v2192_v2  ;;  %v1696_v20 = vrot.slane %v2212_v28, 9 }
  0x32   : > { %v903_v21 = vrot.slane %v902_v51, 4  ;;  %v1710_v34 = vcombine.low %v2212_v28, %v2233_v42 }
  0x33   : > { %v1256_v3 = vrot.slane %v1255_v62, 4 }
  0x34   : > { %v908_v4 = vsel %vm2086_vm5, %v903_v21, %v907_v59 }
  0x35   : > { %v1261_v15 = vsel %vm2086_vm5, %v1256_v3, %v1260_v0  ;;  %v1690_v49 = vcombine.low %v491_v33, %v908_v4 }
  0x36   : > { %1826 = vmatmul.mubr.msk.bf16.vlgmr.msra.gmra.mxu0 %vm283_vm0, %v1688_v53  ;;  %v1718_v16 = vcombine.low %v908_v4, %v1261_v15 }
  0x37   : > { %1816 = vmatmul.mubr.msk.bf16.vlgmr.msra.gmra.mxu1 %vm283_vm0, %v1677_v54  ;;  %1829 = vmatprep.mubr.msk.bf16.mxu0 %vm283_vm0, %v1689_v60 }
  0x38   : > { %1819 = vmatprep.mubr.msk.bf16.mxu1 %vm283_vm0, %v1678_v56  ;;  %1834 = vmatpush3.bf16.msra.mxu1 %v2150_v40  ;;  %v1701_v40 = vcombine.low %v2201_v19, %v652_v27 }
  0x39   : > { %1844 = vmatpush3.bf16.msra.mxu0 %v2163_v44  ;;  %1853 = vmatprep.subr.bf16.mxu1 %v1915_v32  ;;  %v1027_v44 = vrot.slane %v252_v41, 5 }
  0x3a   : > { %1863 = vmatprep.subr.bf16.mxu0 %v1917_v31 }
  0x3b   : > { %v1028_v24 = vsel %vm2095_vm6, %v1696_v20, %v1027_v44 }
  0x3e   : > { %1830 = vmatmul.mubr.msk.bf16.gmra.mxu0 %vm283_vm0, %v1690_v49 }
  0x3f   : > { %1820 = vmatmul.mubr.msk.bf16.gmra.mxu1 %vm283_vm0, %v1679_v30  ;;  %1845 = vmatprep.mubr.msk.bf16.mxu0 %vm283_vm0, %v2072_v35  ;;  %v1702_v35 = vcombine.low %v2218_v36, %v1028_v24 }
  0x40   : > { %1835 = vmatprep.mubr.msk.bf16.mxu1 %vm283_vm0, %v1699_v57 }
  0x46   : > { %1846 = vmatmul.mubr.msk.bf16.vlgmr.msra.gmra.mxu0 %vm283_vm0, %v2016_v6  ;;  %v1724_v6 = vrot.slane %v2233_v42, 9 }
  0x47   : > { %1836 = vmatmul.mubr.msk.bf16.vlgmr.msra.gmra.mxu1 %vm283_vm0, %v1700_v45  ;;  %1849 = vmatprep.mubr.msk.bf16.mxu0 %vm283_vm0, %v2059_v29  ;;  %v1368_v29 = vrot.slane %v2238_v47, 5 }
  0x48   : > { %1839 = vmatprep.mubr.msk.bf16.mxu1 %vm283_vm0, %v1701_v40  ;;  %1854 = vmatpush3.bf16.msra.mxu1 %v1915_v32 }
  0x49   : > { %1864 = vmatpush3.bf16.msra.mxu0 %v1917_v31 }
  0x4e   : > { %1850 = vmatmul.mubr.msk.bf16.gmra.mxu0 %vm283_vm0, %v1710_v34 }
  0x4f   : > { %1840 = vmatmul.mubr.msk.bf16.gmra.mxu1 %vm283_vm0, %v1702_v35  ;;  %1865 = vmatprep.mubr.msk.bf16.mxu0 %vm283_vm0, %v2155_v18 }
  0x50   : > { %1855 = vmatprep.mubr.msk.bf16.mxu1 %vm283_vm0, %v2141_v38  ;;  %v1369_v38 = vsel %vm2095_vm6, %v1724_v6, %v1368_v29 }
  0x51   : > { %v1727_v18 = vcombine.low %v1028_v24, %v1369_v38 }
  0x56   : > { %1866 = vmatmul.mubr.msk.bf16.vlgmr.msra.gmra.mxu0 %vm283_vm0, %v2207_v25 }
  0x57   : > { %1856 = vmatmul.mubr.msk.bf16.vlgmr.msra.gmra.mxu1 %vm283_vm0, %v2187_v61  ;;  %1869 = vmatprep.mubr.msk.bf16.mxu0 %vm283_vm0, %v2229_v22 }
  0x58   : > { %1859 = vmatprep.mubr.msk.bf16.mxu1 %vm283_vm0, %v2224_v39 }
  0x5e   : > { %1870 = vmatmul.mubr.msk.bf16.gmra.mxu0 %vm283_vm0, %v1727_v18 }
  0x5f   : > { %1860 = vmatmul.mubr.msk.bf16.gmra.mxu1 %vm283_vm0, %v1718_v16 }
  0xd7   : > { %v1791_v1 = vpop.f32.mrf.mxu1 }
  0xd8   : > { %367 = vst.msk [vmem:[#allocation2 + $0x30] sm:$0xff] %vm283_vm0, %v1791_v1  ;;  %v1787_v61 = vpop.f32.mrf.mxu0 }
  0xd9   : > { %363 = vst.msk [vmem:[#allocation2 + $0x10] sm:$0xff] %vm283_vm0, %v1787_v61  ;;  %v346_v2 = vpop.f32.mrf.mxu1 }
  0xda   : > { %365 = vst.msk [vmem:[#allocation2 + $0x20] sm:$0xff] %vm283_vm0, %v346_v2  ;;  %v330_v7 = vpop.f32.mrf.mxu0 }
  0xdb   : > { %361 = vst.msk [vmem:[#allocation2] sm:$0xff] %vm283_vm0, %v330_v7  ;;  %v1792_v58 = vpop.f32.mrf.mxu1 }
  0xdc   : > { %368 = vst.msk [vmem:[#allocation2 + $0x38] sm:$0xff] %vm283_vm0, %v1792_v58  ;;  %v1788_v5 = vpop.f32.mrf.mxu0 }
  0xdd   : > { %364 = vst.msk [vmem:[#allocation2 + $0x18] sm:$0xff] %vm283_vm0, %v1788_v5  ;;  %v349_v8 = vpop.f32.mrf.mxu1 }
  0xde   : > { %366 = vst.msk [vmem:[#allocation2 + $0x28] sm:$0xff] %vm283_vm0, %v349_v8  ;;  %v333_v9 = vpop.f32.mrf.mxu0 }
  0xdf   : > { %362 = vst.msk [vmem:[#allocation2 + $0x8] sm:$0xff] %vm283_vm0, %v333_v9  ;;  %v375_v10 = vld [vmem:[#allocation2 + $0x30] sm:$0xff] }
  0xe0   : > { %v371_v11 = vld [vmem:[#allocation2 + $0x10] sm:$0xff] }
  0xe1   : > { %v373_v51 = vld [vmem:[#allocation2 + $0x20] sm:$0xff] }
  0xe2   : > { %v369_v19 = vld [vmem:[#allocation2] sm:$0xff] }
  0xe3   : > { %v1797_v14 = vpop.f32.mrf.mxu1  ;;  %v376_v21 = vld [vmem:[#allocation2 + $0x38] sm:$0xff] }
  0xe4   : > { %v592_v23 = vadd.f32 %v1797_v14, %v371_v11  ;;  %v1807_v12 = vpop.f32.mrf.mxu0  ;;  %v372_v27 = vld [vmem:[#allocation2 + $0x18] sm:$0xff] }
  0xe5   : > { %v559_v25 = vpop.f32.mrf.mxu1  ;;  %v374_v32 = vld [vmem:[#allocation2 + $0x28] sm:$0xff] }
  0xe6   : > { %600 = vst.msk [vmem:[#allocation2 + $0x10] sm:$0xff] %vm283_vm0, %v592_v23  ;;  %v590_v28 = vadd.f32 %v559_v25, %v369_v19  ;;  %v724_v33 = vpop.f32.mrf.mxu0  ;;  %v370_v37 = vld [vmem:[#allocation2 + $0x8] sm:$0xff] }
  0xe7   : > { %v1798_v36 = vpop.f32.mrf.mxu1 }
  0xe8   : > { %598 = vst.msk [vmem:[#allocation2] sm:$0xff] %vm283_vm0, %v590_v28  ;;  %v593_v17 = vadd.f32 %v1798_v36, %v372_v27  ;;  %v1808_v39 = vpop.f32.mrf.mxu0 }
  0xe9   : > { %v562_v22 = vpop.f32.mrf.mxu1 }
  0xea   : > { %601 = vst.msk [vmem:[#allocation2 + $0x18] sm:$0xff] %vm283_vm0, %v593_v17  ;;  %v591_v41 = vadd.f32 %v562_v22, %v370_v37  ;;  %v727_v42 = vpop.f32.mrf.mxu0 }
  0xec   : > { %599 = vst.msk [vmem:[#allocation2 + $0x8] sm:$0xff] %vm283_vm0, %v591_v41 }
  0xed   : > { %v608_v43 = vld [vmem:[#allocation2 + $0x10] sm:$0xff] }
  0xee   : > { %v757_v46 = vadd.f32 %v1807_v12, %v608_v43  ;;  %v1811_v63 = vpop.f32.mrf.mxu0 }
  0xef   : > { %v606_v47 = vld [vmem:[#allocation2] sm:$0xff]  ;;  %v1801_v26 = vpop.f32.mrf.mxu1 }
  0xf0   : > { %765 = vst.msk [vmem:[#allocation2 + $0x10] sm:$0xff] %vm283_vm0, %v757_v46  ;;  %v755_v13 = vadd.f32 %v724_v33, %v606_v47  ;;  %v596_v48 = vadd.f32 %v1801_v26, %v375_v10  ;;  %v740_v53 = vpop.f32.mrf.mxu0 }
  0xf1   : > { %v609_v50 = vld [vmem:[#allocation2 + $0x18] sm:$0xff]  ;;  %v575_v52 = vpop.f32.mrf.mxu1 }
  0xf2   : > { %763 = vst.msk [vmem:[#allocation2] sm:$0xff] %vm283_vm0, %v755_v13  ;;  %604 = vst.msk [vmem:[#allocation2 + $0x30] sm:$0xff] %vm283_vm0, %v596_v48  ;;  %v758_v54 = vadd.f32 %v1808_v39, %v609_v50  ;;  %v594_v55 = vadd.f32 %v575_v52, %v373_v51  ;;  %v1812_v60 = vpop.f32.mrf.mxu0 }
  0xf3   : > { %v607_v56 = vld [vmem:[#allocation2 + $0x8] sm:$0xff]  ;;  %v1802_v59 = vpop.f32.mrf.mxu1 }
  0xf4   : > { %766 = vst.msk [vmem:[#allocation2 + $0x18] sm:$0xff] %vm283_vm0, %v758_v54  ;;  %602 = vst.msk [vmem:[#allocation2 + $0x20] sm:$0xff] %vm283_vm0, %v594_v55  ;;  %v756_v62 = vadd.f32 %v727_v42, %v607_v56  ;;  %v597_v0 = vadd.f32 %v1802_v59, %v376_v21  ;;  %v743_v3 = vpop.f32.mrf.mxu0 }
  0xf5   : > { %v578_v31 = vpop.f32.mrf.mxu1 }
  0xf6   : > { %764 = vst.msk [vmem:[#allocation2 + $0x8] sm:$0xff] %vm283_vm0, %v756_v62  ;;  %605 = vst.msk [vmem:[#allocation2 + $0x38] sm:$0xff] %vm283_vm0, %v597_v0  ;;  %v595_v4 = vadd.f32 %v578_v31, %v374_v32  ;;  %v1827_v49 = vpop.f32.mrf.mxu0 }
  0xf7   : > { %v773_v15 = vld [vmem:[#allocation2 + $0x10] sm:$0xff]  ;;  %v1817_v30 = vpop.f32.mrf.mxu1 }
  0xf8   : > { %603 = vst.msk [vmem:[#allocation2 + $0x28] sm:$0xff] %vm283_vm0, %v595_v4  ;;  %v873_v57 = vadd.f32 %v1817_v30, %v773_v15  ;;  %v969_v44 = vpop.f32.mrf.mxu0 }
  0xf9   : > { %v612_v45 = vld [vmem:[#allocation2 + $0x30] sm:$0xff]  ;;  %v771_v40 = vld [vmem:[#allocation2] sm:$0xff]  ;;  %v840_v20 = vpop.f32.mrf.mxu1 }
  0xfa   : > { %v761_v24 = vadd.f32 %v1811_v63, %v612_v45  ;;  %881 = vst.msk [vmem:[#allocation2 + $0x10] sm:$0xff] %vm283_vm0, %v873_v57  ;;  %v871_v35 = vadd.f32 %v840_v20, %v771_v40  ;;  %v1828_v38 = vpop.f32.mrf.mxu0 }
  0xfb   : > { %v610_v34 = vld [vmem:[#allocation2 + $0x20] sm:$0xff]  ;;  %v774_v6 = vld [vmem:[#allocation2 + $0x18] sm:$0xff]  ;;  %v1818_v29 = vpop.f32.mrf.mxu1 }
  0xfc   : > { %769 = vst.msk [vmem:[#allocation2 + $0x30] sm:$0xff] %vm283_vm0, %v761_v24  ;;  %v759_v16 = vadd.f32 %v740_v53, %v610_v34  ;;  %879 = vst.msk [vmem:[#allocation2] sm:$0xff] %vm283_vm0, %v871_v35  ;;  %v874_v18 = vadd.f32 %v1818_v29, %v774_v6  ;;  %v972_v7 = vpop.f32.mrf.mxu0 }
  0xfd   : > { %v613_v1 = vld [vmem:[#allocation2 + $0x38] sm:$0xff]  ;;  %v772_v61 = vld [vmem:[#allocation2 + $0x8] sm:$0xff]  ;;  %v843_v2 = vpop.f32.mrf.mxu1 }
  0xfe   : > { %767 = vst.msk [vmem:[#allocation2 + $0x20] sm:$0xff] %vm283_vm0, %v759_v16  ;;  %v762_v58 = vadd.f32 %v1812_v60, %v613_v1  ;;  %882 = vst.msk [vmem:[#allocation2 + $0x18] sm:$0xff] %vm283_vm0, %v874_v18  ;;  %v872_v5 = vadd.f32 %v843_v2, %v772_v61  ;;  %v1831_v11 = vpop.f32.mrf.mxu0 }
  0xff   : > { %v611_v8 = vld [vmem:[#allocation2 + $0x28] sm:$0xff]  ;;  %v1821_v9 = vpop.f32.mrf.mxu1 }
 0x100   : > { %770 = vst.msk [vmem:[#allocation2 + $0x38] sm:$0xff] %vm283_vm0, %v762_v58  ;;  %v760_v14 = vadd.f32 %v743_v3, %v611_v8  ;;  %880 = vst.msk [vmem:[#allocation2 + $0x8] sm:$0xff] %vm283_vm0, %v872_v5  ;;  %v985_v12 = vpop.f32.mrf.mxu0 }
 0x101   : > { %v889_v19 = vld [vmem:[#allocation2 + $0x10] sm:$0xff]  ;;  %v856_v23 = vpop.f32.mrf.mxu1 }
 0x102   : > { %768 = vst.msk [vmem:[#allocation2 + $0x28] sm:$0xff] %vm283_vm0, %v760_v14  ;;  %v1002_v25 = vadd.f32 %v1827_v49, %v889_v19  ;;  %v1832_v36 = vpop.f32.mrf.mxu0 }
 0x103   : > { %v777_v27 = vld [vmem:[#allocation2 + $0x30] sm:$0xff]  ;;  %v887_v28 = vld [vmem:[#allocation2] sm:$0xff]  ;;  %v1822_v33 = vpop.f32.mrf.mxu1 }
 0x104   : > { %v877_v37 = vadd.f32 %v1821_v9, %v777_v27  ;;  %1010 = vst.msk [vmem:[#allocation2 + $0x10] sm:$0xff] %vm283_vm0, %v1002_v25  ;;  %v1000_v17 = vadd.f32 %v969_v44, %v887_v28  ;;  %v988_v42 = vpop.f32.mrf.mxu0 }
 0x105   : > { %v775_v39 = vld [vmem:[#allocation2 + $0x20] sm:$0xff]  ;;  %v890_v22 = vld [vmem:[#allocation2 + $0x18] sm:$0xff]  ;;  %v859_v41 = vpop.f32.mrf.mxu1 }
 0x106   : > { %885 = vst.msk [vmem:[#allocation2 + $0x30] sm:$0xff] %vm283_vm0, %v877_v37  ;;  %v875_v43 = vadd.f32 %v856_v23, %v775_v39  ;;  %1008 = vst.msk [vmem:[#allocation2] sm:$0xff] %vm283_vm0, %v1000_v17  ;;  %v1003_v46 = vadd.f32 %v1828_v38, %v890_v22  ;;  %v1847_v63 = vpop.f32.mrf.mxu0 }
 0x107   : > { %v778_v47 = vld [vmem:[#allocation2 + $0x38] sm:$0xff]  ;;  %v888_v10 = vld [vmem:[#allocation2 + $0x8] sm:$0xff]  ;;  %v1837_v26 = vpop.f32.mrf.mxu1 }
 0x108   : > { %883 = vst.msk [vmem:[#allocation2 + $0x20] sm:$0xff] %vm283_vm0, %v875_v43  ;;  %v878_v13 = vadd.f32 %v1822_v33, %v778_v47  ;;  %1011 = vst.msk [vmem:[#allocation2 + $0x18] sm:$0xff] %vm283_vm0, %v1003_v46  ;;  %v1001_v48 = vadd.f32 %v972_v7, %v888_v10  ;;  %v1193_v52 = vpop.f32.mrf.mxu0 }
 0x109   : > { %v776_v50 = vld [vmem:[#allocation2 + $0x28] sm:$0xff]  ;;  %v1089_v51 = vpop.f32.mrf.mxu1 }
 0x10a   : > { %886 = vst.msk [vmem:[#allocation2 + $0x38] sm:$0xff] %vm283_vm0, %v878_v13  ;;  %v876_v53 = vadd.f32 %v859_v41, %v776_v50  ;;  %1009 = vst.msk [vmem:[#allocation2 + $0x8] sm:$0xff] %vm283_vm0, %v1001_v48  ;;  %v1848_v56 = vpop.f32.mrf.mxu0 }
 0x10b   : > { %v1018_v54 = vld [vmem:[#allocation2 + $0x10] sm:$0xff]  ;;  %v1838_v55 = vpop.f32.mrf.mxu1 }
 0x10c   : > { %884 = vst.msk [vmem:[#allocation2 + $0x28] sm:$0xff] %vm283_vm0, %v876_v53  ;;  %v1122_v21 = vadd.f32 %v1837_v26, %v1018_v54  ;;  %v1196_v0 = vpop.f32.mrf.mxu0 }
 0x10d   : > { %v893_v59 = vld [vmem:[#allocation2 + $0x30] sm:$0xff]  ;;  %v1016_v60 = vld [vmem:[#allocation2] sm:$0xff]  ;;  %v1092_v62 = vpop.f32.mrf.mxu1 }
 0x10e   : > { %v1006_v32 = vadd.f32 %v1831_v11, %v893_v59  ;;  %1130 = vst.msk [vmem:[#allocation2 + $0x10] sm:$0xff] %vm283_vm0, %v1122_v21  ;;  %v1120_v31 = vadd.f32 %v1089_v51, %v1016_v60  ;;  %v1851_v20 = vpop.f32.mrf.mxu0 }
 0x10f   : > { %v891_v3 = vld [vmem:[#allocation2 + $0x20] sm:$0xff]  ;;  %v1019_v4 = vld [vmem:[#allocation2 + $0x18] sm:$0xff]  ;;  %v1841_v15 = vpop.f32.mrf.mxu1 }
 0x110   : > { %1014 = vst.msk [vmem:[#allocation2 + $0x30] sm:$0xff] %vm283_vm0, %v1006_v32  ;;  %v1004_v30 = vadd.f32 %v985_v12, %v891_v3  ;;  %1128 = vst.msk [vmem:[#allocation2] sm:$0xff] %vm283_vm0, %v1120_v31  ;;  %v1123_v49 = vadd.f32 %v1838_v55, %v1019_v4  ;;  %v1209_v16 = vpop.f32.mrf.mxu0 }
 0x111   : > { %v894_v57 = vld [vmem:[#allocation2 + $0x38] sm:$0xff]  ;;  %v1017_v45 = vld [vmem:[#allocation2 + $0x8] sm:$0xff]  ;;  %v1105_v40 = vpop.f32.mrf.mxu1 }
 0x112   : > { %1012 = vst.msk [vmem:[#allocation2 + $0x20] sm:$0xff] %vm283_vm0, %v1004_v30  ;;  %v1007_v44 = vadd.f32 %v1832_v36, %v894_v57  ;;  %1131 = vst.msk [vmem:[#allocation2 + $0x18] sm:$0xff] %vm283_vm0, %v1123_v49  ;;  %v1121_v24 = vadd.f32 %v1092_v62, %v1017_v45  ;;  %v1852_v9 = vpop.f32.mrf.mxu0 }
 0x113   : > { %v892_v35 = vld [vmem:[#allocation2 + $0x28] sm:$0xff]  ;;  %v1842_v34 = vpop.f32.mrf.mxu1 }
 0x114   : > { %1015 = vst.msk [vmem:[#allocation2 + $0x38] sm:$0xff] %vm283_vm0, %v1007_v44  ;;  %v1005_v6 = vadd.f32 %v988_v42, %v892_v35  ;;  %1129 = vst.msk [vmem:[#allocation2 + $0x8] sm:$0xff] %vm283_vm0, %v1121_v24  ;;  %v1212_v33 = vpop.f32.mrf.mxu0 }
 0x115   : > { %v1138_v29 = vld [vmem:[#allocation2 + $0x10] sm:$0xff]  ;;  %v1108_v38 = vpop.f32.mrf.mxu1 }
 0x116   : > { %1013 = vst.msk [vmem:[#allocation2 + $0x28] sm:$0xff] %vm283_vm0, %v1005_v6  ;;  %v1226_v18 = vadd.f32 %v1847_v63, %v1138_v29  ;;  %v1867_v39 = vpop.f32.mrf.mxu0 }
 0x117   : > { %v1022_v1 = vld [vmem:[#allocation2 + $0x30] sm:$0xff]  ;;  %v1136_v61 = vld [vmem:[#allocation2] sm:$0xff]  ;;  %v1857_v2 = vpop.f32.mrf.mxu1 }
 0x118   : > { %v1126_v7 = vadd.f32 %v1841_v15, %v1022_v1  ;;  %1234 = vst.msk [vmem:[#allocation2 + $0x10] sm:$0xff] %vm283_vm0, %v1226_v18  ;;  %v1224_v58 = vadd.f32 %v1193_v52, %v1136_v61  ;;  %v1418_v63 = vpop.f32.mrf.mxu0  ;;  %v2391_v18 = vld [vmem:[%s2448_s3] ss:$0 sm:$0xff] }
 0x119   : > { %v1020_v5 = vld [vmem:[#allocation2 + $0x20] sm:$0xff]  ;;  %v1139_v8 = vld [vmem:[#allocation2 + $0x18] sm:$0xff]  ;;  %v1310_v11 = vpop.f32.mrf.mxu1 }
 0x11a   : > { %1134 = vst.msk [vmem:[#allocation2 + $0x30] sm:$0xff] %vm283_vm0, %v1126_v7  ;;  %v1124_v14 = vadd.f32 %v1105_v40, %v1020_v5  ;;  %1232 = vst.msk [vmem:[#allocation2] sm:$0xff] %vm283_vm0, %v1224_v58  ;;  %v1227_v19 = vadd.f32 %v1848_v56, %v1139_v8  ;;  %v1868_v56 = vpop.f32.mrf.mxu0 }
 0x11b   : > { %v1023_v23 = vld [vmem:[#allocation2 + $0x38] sm:$0xff]  ;;  %v1137_v12 = vld [vmem:[#allocation2 + $0x8] sm:$0xff]  ;;  %v1858_v36 = vpop.f32.mrf.mxu1 }
 0x11c   : > { %1132 = vst.msk [vmem:[#allocation2 + $0x20] sm:$0xff] %vm283_vm0, %v1124_v14  ;;  %v1127_v25 = vadd.f32 %v1842_v34, %v1023_v23  ;;  %1235 = vst.msk [vmem:[#allocation2 + $0x18] sm:$0xff] %vm283_vm0, %v1227_v19  ;;  %v1225_v27 = vadd.f32 %v1196_v0, %v1137_v12  ;;  %v1421_v31 = vpop.f32.mrf.mxu0  ;;  %v2384_v34 = vld [vmem:[%s2447_s2] ss:$0 sm:$0xff] }
 0x11d   : > { %v1021_v28 = vld [vmem:[#allocation2 + $0x28] sm:$0xff]  ;;  %v1313_v43 = vpop.f32.mrf.mxu1 }
 0x11e   : > { %1135 = vst.msk [vmem:[#allocation2 + $0x38] sm:$0xff] %vm283_vm0, %v1127_v25  ;;  %v1125_v37 = vadd.f32 %v1108_v38, %v1021_v28  ;;  %1233 = vst.msk [vmem:[#allocation2 + $0x8] sm:$0xff] %vm283_vm0, %v1225_v27  ;;  %v1871_v44 = vpop.f32.mrf.mxu0 }
 0x11f   : > { %v1242_v17 = vld [vmem:[#allocation2 + $0x10] sm:$0xff]  ;;  %v1861_v52 = vpop.f32.mrf.mxu1 }
 0x120   : > { %1133 = vst.msk [vmem:[#allocation2 + $0x28] sm:$0xff] %vm283_vm0, %v1125_v37  ;;  %v1343_v22 = vadd.f32 %v1857_v2, %v1242_v17  ;;  %v1434_v1 = vpop.f32.mrf.mxu0 }
 0x121   : > { %v1142_v41 = vld [vmem:[#allocation2 + $0x30] sm:$0xff]  ;;  %v1240_v42 = vld [vmem:[#allocation2] sm:$0xff]  ;;  %v1326_v59 = vpop.f32.mrf.mxu1 }
 0x122   : > { %v1230_v46 = vadd.f32 %v1851_v20, %v1142_v41  ;;  %1351 = vst.msk [vmem:[#allocation2 + $0x10] sm:$0xff] %vm283_vm0, %v1343_v22  ;;  %v1341_v47 = vadd.f32 %v1310_v11, %v1240_v42  ;;  %v1872_v14 = vpop.f32.mrf.mxu0 }
 0x123   : > { %v1140_v10 = vld [vmem:[#allocation2 + $0x20] sm:$0xff]  ;;  %v1243_v26 = vld [vmem:[#allocation2 + $0x18] sm:$0xff]  ;;  %v1862_v30 = vpop.f32.mrf.mxu1 }
 0x124   : > { %1238 = vst.msk [vmem:[#allocation2 + $0x30] sm:$0xff] %vm283_vm0, %v1230_v46  ;;  %v1228_v13 = vadd.f32 %v1209_v16, %v1140_v10  ;;  %1349 = vst.msk [vmem:[#allocation2] sm:$0xff] %vm283_vm0, %v1341_v47  ;;  %v1344_v48 = vadd.f32 %v1858_v36, %v1243_v26  ;;  %v1437_v41 = vpop.f32.mrf.mxu0 }
 0x125   : > { %v1143_v50 = vld [vmem:[#allocation2 + $0x38] sm:$0xff]  ;;  %v1241_v51 = vld [vmem:[#allocation2 + $0x8] sm:$0xff]  ;;  %v1329_v29 = vpop.f32.mrf.mxu1 }
 0x126   : > { %1236 = vst.msk [vmem:[#allocation2 + $0x20] sm:$0xff] %vm283_vm0, %v1228_v13  ;;  %v1231_v53 = vadd.f32 %v1852_v9, %v1143_v50  ;;  %1352 = vst.msk [vmem:[#allocation2 + $0x18] sm:$0xff] %vm283_vm0, %v1344_v48  ;;  %v1342_v54 = vadd.f32 %v1313_v43, %v1241_v51 }
 0x127   : > { %v1141_v55 = vld [vmem:[#allocation2 + $0x28] sm:$0xff] }
 0x128   : > { %1239 = vst.msk [vmem:[#allocation2 + $0x38] sm:$0xff] %vm283_vm0, %v1231_v53  ;;  %v1229_v21 = vadd.f32 %v1212_v33, %v1141_v55  ;;  %1350 = vst.msk [vmem:[#allocation2 + $0x8] sm:$0xff] %vm283_vm0, %v1342_v54 }
 0x129   : > { %v1359_v60 = vld [vmem:[#allocation2 + $0x10] sm:$0xff] }
 0x12a   : > { %1237 = vst.msk [vmem:[#allocation2 + $0x28] sm:$0xff] %vm283_vm0, %v1229_v21  ;;  %v1451_v62 = vadd.f32 %v1867_v39, %v1359_v60 }
 0x12b   : > { %v1246_v0 = vld [vmem:[#allocation2 + $0x30] sm:$0xff]  ;;  %v1357_v32 = vld [vmem:[#allocation2] sm:$0xff] }
 0x12c   : > { %v1347_v3 = vadd.f32 %v1861_v52, %v1246_v0  ;;  %1459 = vst.msk [vmem:[#allocation2 + $0x10] sm:$0xff] %vm283_vm0, %v1451_v62  ;;  %v1449_v4 = vadd.f32 %v1418_v63, %v1357_v32 }
 0x12d   : > { %v1244_v15 = vld [vmem:[#allocation2 + $0x20] sm:$0xff]  ;;  %v1360_v49 = vld [vmem:[#allocation2 + $0x18] sm:$0xff] }
 0x12e   : > { %1355 = vst.msk [vmem:[#allocation2 + $0x30] sm:$0xff] %vm283_vm0, %v1347_v3  ;;  %v1345_v57 = vadd.f32 %v1326_v59, %v1244_v15  ;;  %1457 = vst.msk [vmem:[#allocation2] sm:$0xff] %vm283_vm0, %v1449_v4  ;;  %v1452_v45 = vadd.f32 %v1868_v56, %v1360_v49 }
 0x12f   : > { %v1247_v40 = vld [vmem:[#allocation2 + $0x38] sm:$0xff]  ;;  %v1358_v20 = vld [vmem:[#allocation2 + $0x8] sm:$0xff] }
 0x130   : > { %1353 = vst.msk [vmem:[#allocation2 + $0x20] sm:$0xff] %vm283_vm0, %v1345_v57  ;;  %v1348_v24 = vadd.f32 %v1862_v30, %v1247_v40  ;;  %1460 = vst.msk [vmem:[#allocation2 + $0x18] sm:$0xff] %vm283_vm0, %v1452_v45  ;;  %v1450_v35 = vadd.f32 %v1421_v31, %v1358_v20 }
 0x131   : > { %v1245_v6 = vld [vmem:[#allocation2 + $0x28] sm:$0xff] }
 0x132   : > { %1356 = vst.msk [vmem:[#allocation2 + $0x38] sm:$0xff] %vm283_vm0, %v1348_v24  ;;  %v1346_v38 = vadd.f32 %v1329_v29, %v1245_v6  ;;  %1458 = vst.msk [vmem:[#allocation2 + $0x8] sm:$0xff] %vm283_vm0, %v1450_v35 }
 0x133   : > { %v1467_v16 = vld [vmem:[#allocation2 + $0x10] sm:$0xff] }
 0x134   : > { %v1482_v61 = vmul.f32 %v2384_v34, %v1467_v16  ;;  %1354 = vst.msk [vmem:[#allocation2 + $0x28] sm:$0xff] %vm283_vm0, %v1346_v38 }
 0x135   : > { %v1465_v2 = vld [vmem:[#allocation2] sm:$0xff]  ;;  %v1363_v7 = vld [vmem:[#allocation2 + $0x30] sm:$0xff] }
 0x136   : > { %v1497_v58 = vadd.f32 %v2391_v18, %v1482_v61  ;;  %v1480_v5 = vmul.f32 %v2384_v34, %v1465_v2  ;;  %v1455_v8 = vadd.f32 %v1871_v44, %v1363_v7 }
 0x137   : > { %v1468_v9 = vld [vmem:[#allocation2 + $0x18] sm:$0xff]  ;;  %v1361_v11 = vld [vmem:[#allocation2 + $0x20] sm:$0xff] }
 0x138   : > { %vm1505_vm7 = vcmp.ge.f32.partialorder %v1497_v58, 0.0  ;;  %v1513_v19 = vmul.f32 0.1, %v1497_v58  ;;  %v1495_v23 = vadd.f32 %v2391_v18, %v1480_v5  ;;  %v1483_v12 = vmul.f32 %v2384_v34, %v1468_v9  ;;  %1463 = vst.msk [vmem:[#allocation2 + $0x30] sm:$0xff] %vm283_vm0, %v1455_v8 }
 0x139   : > { %v1466_v25 = vld [vmem:[#allocation2 + $0x8] sm:$0xff]  ;;  %v1453_v27 = vadd.f32 %v1434_v1, %v1361_v11  ;;  %v1364_v28 = vld [vmem:[#allocation2 + $0x38] sm:$0xff] }
 0x13a   : > { %v1521_v33 = vsel %vm1505_vm7, %v1497_v58, %v1513_v19  ;;  %vm1503_vm8 = vcmp.ge.f32.partialorder %v1495_v23, 0.0  ;;  %v1511_v36 = vmul.f32 0.1, %v1495_v23  ;;  %v1498_v37 = vadd.f32 %v2391_v18, %v1483_v12 }
 0x13b   : > { %1529 = vst.msk [vmem:[%s2401_s26 + $0x10] sm:$0xff] %vm283_vm0, %v1521_v33  ;;  %v1481_v17 = vmul.f32 %v2384_v34, %v1466_v25  ;;  %1461 = vst.msk [vmem:[#allocation2 + $0x20] sm:$0xff] %vm283_vm0, %v1453_v27  ;;  %v1456_v39 = vadd.f32 %v1872_v14, %v1364_v28  ;;  %v1362_v22 = vld [vmem:[#allocation2 + $0x28] sm:$0xff] }
 0x13c   : > { %v1519_v42 = vsel %vm1503_vm8, %v1495_v23, %v1511_v36  ;;  %vm1506_vm9 = vcmp.ge.f32.partialorder %v1498_v37, 0.0  ;;  %v1514_v43 = vmul.f32 0.1, %v1498_v37  ;;  %v1454_v46 = vadd.f32 %v1437_v41, %v1362_v22 }
 0x13d   : > { %1527 = vst.msk [vmem:[%s2401_s26] sm:$0xff] %vm283_vm0, %v1519_v42  ;;  %v1496_v47 = vadd.f32 %v2391_v18, %v1481_v17  ;;  %1464 = vst.msk [vmem:[#allocation2 + $0x38] sm:$0xff] %vm283_vm0, %v1456_v39 }
 0x13e   : > { %v1522_v10 = vsel %vm1506_vm9, %v1498_v37, %v1514_v43  ;;  %1462 = vst.msk [vmem:[#allocation2 + $0x28] sm:$0xff] %vm283_vm0, %v1454_v46 }
 0x13f   : > { %1530 = vst.msk [vmem:[%s2401_s26 + $0x18] sm:$0xff] %vm283_vm0, %v1522_v10  ;;  %vm1504_vm10 = vcmp.ge.f32.partialorder %v1496_v47, 0.0  ;;  %v1512_v26 = vmul.f32 0.1, %v1496_v47  ;;  %v1471_v63 = vld [vmem:[#allocation2 + $0x30] sm:$0xff] }
 0x140   : > { %v1486_v13 = vmul.f32 %v2384_v34, %v1471_v63 }
 0x141   : > { %v1520_v48 = vsel %vm1504_vm10, %v1496_v47, %v1512_v26 }
 0x142   : > { %1528 = vst.msk [vmem:[%s2401_s26 + $0x8] sm:$0xff] %vm283_vm0, %v1520_v48  ;;  %v1501_v50 = vadd.f32 %v2391_v18, %v1486_v13  ;;  %v1469_v51 = vld [vmem:[#allocation2 + $0x20] sm:$0xff] }
 0x143   : > { %v1484_v52 = vmul.f32 %v2384_v34, %v1469_v51 }
 0x144   : > { %vm1509_vm11 = vcmp.ge.f32.partialorder %v1501_v50, 0.0  ;;  %v1517_v53 = vmul.f32 0.1, %v1501_v50  ;;  %v1472_v54 = vld [vmem:[#allocation2 + $0x38] sm:$0xff] }
 0x145   : > { %v1499_v55 = vadd.f32 %v2391_v18, %v1484_v52  ;;  %v1487_v56 = vmul.f32 %v2384_v34, %v1472_v54  ;;  %v1470_v21 = vld [vmem:[#allocation2 + $0x28] sm:$0xff] }
 0x146   : > { %v1525_v59 = vsel %vm1509_vm11, %v1501_v50, %v1517_v53  ;;  %v1485_v60 = vmul.f32 %v2384_v34, %v1470_v21 }
 0x147   : > { %1533 = vst.msk [vmem:[%s2401_s26 + $0x30] sm:$0xff] %vm283_vm0, %v1525_v59  ;;  %vm1507_vm12 = vcmp.ge.f32.partialorder %v1499_v55, 0.0  ;;  %v1515_v62 = vmul.f32 0.1, %v1499_v55  ;;  %v1502_v0 = vadd.f32 %v2391_v18, %v1487_v56 }
 0x148   : > { %v1500_v32 = vadd.f32 %v2391_v18, %v1485_v60 }
 0x149   : > { %v1523_v31 = vsel %vm1507_vm12, %v1499_v55, %v1515_v62  ;;  %vm1510_vm13 = vcmp.ge.f32.partialorder %v1502_v0, 0.0  ;;  %v1518_v3 = vmul.f32 0.1, %v1502_v0 }
 0x14a   : > { %1531 = vst.msk [vmem:[%s2401_s26 + $0x20] sm:$0xff] %vm283_vm0, %v1523_v31  ;;  %vm1508_vm14 = vcmp.ge.f32.partialorder %v1500_v32, 0.0  ;;  %v1516_v4 = vmul.f32 0.1, %v1500_v32 }
 0x14b   : > { %v1526_v15 = vsel %vm1510_vm13, %v1502_v0, %v1518_v3 }
 0x14c   : > { %1534 = vst.msk [vmem:[%s2401_s26 + $0x38] sm:$0xff] %vm283_vm0, %v1526_v15  ;;  %v1524_v30 = vsel %vm1508_vm14, %v1500_v32, %v1516_v4 }
 0x14d   : > { %1532 = vst.msk [vmem:[%s2401_s26 + $0x28] sm:$0xff] %vm283_vm0, %v1524_v30 }
 0x14e PF: > { %s14_s17 = sadd.s32 1, %s1940_s17   ;;  %s2454_s15 = smov %s1936_s16 }
 0x14f   : > { %p11_p5 = scmp.ge.s32.totalorder %s14_s17, 4   ;;  %s2455_s16 = smov %s2457_s18 }
 0x151   :  { %13 = sbr.rel (!%p11_p5) target bundleno = 2 (0x2), region = 74 }

// kernel: _lambda_.9
= control target key start
LH: loop header
LB: loop body
LE: loop exit
PB: predicated region body
PF: predicated region fallthrough
CT: control target
= control target key end

     0   :  { %s2887_s15 = smov 0   ;;  %s2889_s16 = smov 0   ;;  %s3708_s0 = inlined_call_operand.vmem [shape: bf16[2,2,10,18,16], index: 0, kind: input, shape index: {}]   ;;  %s3709_s1 = inlined_call_operand.vmem [shape: bf16[9,16,16], index: 1, kind: input, shape index: {}]   ;;  %s3710_s2 = inlined_call_operand.vmem [shape: f32[1,16], index: 2, kind: input, shape index: {}]   ;;  %s3711_s3 = inlined_call_operand.vmem [shape: f32[1,16], index: 3, kind: input, shape index: {}]   ;;  %s3712_s4 = inlined_call_operand.vmem [shape: f32[2,2,128,16], index: 4, kind: output, shape index: {}]  }
   0x1   :  { %s2891_s17 = smov 0   ;;  %s2893_s18 = smov 0  }
   0x2   :  { %s2895_s19 = smov 0  }
   0x3 LB: > { %s23_s20 = sadd.s32 1, %s2852_s17  ;;  %s26_s21 = sadd.s32 1, %s2856_s18  ;;  %s2860_s19 = sphi %s2895_s19, %s14_s19   ;;  %s2856_s18 = sphi %s2893_s18, %s3727_s18   ;;  %s2852_s17 = sphi %s2891_s17, %s3726_s17   ;;  %s2848_s16 = sphi %s2889_s16, %s3725_s16   ;;  %s2844_s15 = sphi %s2887_s15, %s3724_s15  }
   0x4   : > { %p24_p0 = scmp.ge.s32.totalorder %s23_s20, 2  ;;  %p2370_p1 = scmp.ge.s32.totalorder %s2860_s19, 1 }
   0x5   : > { %p182_p2 = scmp.lt.s32.totalorder %s2860_s19, 5 }
   0x6   : > { %s3729_s20 = smov (%p24_p0, %s23_s20), 0  ;;  %s3731_s21 = smov (!%p24_p0, %s26_s21), %s2856_s18 }
   0x7   : > { %p183_p3 = pnand %p2370_p1, %p182_p2  ;;  %p28_p4 = scmp.ge.s32.totalorder %s3731_s21, 2 }
   0x8   : > { %p216_p5 = scmp.lt.s32.totalorder (!%p183_p3), %s2848_s16, 1  ;;  %p218_p6 = scmp.lt.s32.totalorder (!%p183_p3), %s2844_s15, 1 }
   0x9   : > { %s3733_s21 = smov (%p28_p4, %s3731_s21), 0  ;;  %186 = sbr.rel (%p183_p3) target bundleno = 401 (0x191), region = 36 }
   0xe   : > { %v2803_v0 = vld [vmem:[%s3709_s1] sm:$0xff]   ;;  %s3735_s16 = smov (!%p216_p5, %s2848_s16), 1  ;;  %v2805_v1 = vld [vmem:[%s3709_s1 + $0x8] sm:$0xff]   ;;  %s3737_s15 = smov (!%p218_p6, %s2844_s15), 1  ;;  %v2930_v2 = vld [vmem:[%s3709_s1 + $0x10] sm:$0xff]   ;;  %vm313_vm0 = vcmask 130048  }
   0xf   : > { %2759 = vmatprep.subr.bf16.mxu1 %v2803_v0  ;;  %2597 = vmatprep.subr.bf16.mxu0 %v2803_v0  ;;  %s2762_s28 = smul.u32 60, %s3735_s16  ;;  %vm467_vm1 = vsmask.f32 3328  ;;  %vm468_vm2 = vsmask.f32 7440  ;;  %v2972_v16 = vld [vmem:[%s3709_s1 + $0x18] sm:$0xff]  }
  0x10   : > { %2760 = vmatpush3.bf16.msra.mxu1 %v2803_v0  ;;  %2598 = vmatpush3.bf16.msra.mxu0 %v2803_v0  ;;  %s2761_s29 = smul.u32 30, %s3737_s15  ;;  %vm872_vm3 = vcmask 1042432   ;;  %vm873_vm4 = vcmask 1046532   ;;  %v3019_v37 = vld [vmem:[%s3709_s1 + $0x20] sm:$0xff]   ;;  %vm3079_vm5 = vmor %vm467_vm1, %vm468_vm2 }
  0x11   : > { %2615 = vmatprep.subr.bf16.mxu1 %v2805_v1  ;;  %2633 = vmatprep.subr.bf16.mxu0 %v2930_v2  ;;  %vm3092_vm6 = vmor %vm872_vm3, %vm873_vm4 }
  0x12   : > { %s222_s30 = sadd.s32 %s2762_s28, %s2761_s29  ;;  %s2372_s28 = sshll.u32 %s3737_s15, 4 }
  0x13   : > { %s2371_s5 = sshll.u32 %s222_s30, 2  ;;  %s2373_s29 = sshll.u32 %s3735_s16, 5 }
  0x14   : > { %s2938_s8 = scalar_lea.vmem %s3708_s0, %s2371_s5  ;;  %s3593_s15 = sadd.s32 %s2373_s29, %s2372_s28 }
  0x15   : > { %v2941_v3 = vld [vmem:[%s2938_s8 + $0x30] sm:$0xf]  ;;  %v2944_v4 = vld [vmem:[%s2938_s8 + $0x34] sm:$0xf]  ;;  %v2947_v5 = vld [vmem:[%s2938_s8 + $0x3c] sm:$0xf] }
  0x16   : > { %v2951_v6 = vcombine.low %v2941_v3, %v2944_v4  ;;  %v567_v7 = vshrl.u32 %v2941_v3, 16  ;;  %v570_v8 = vshll.u32 %v2941_v3, 16  ;;  %v576_v9 = vshll.u32 %v2944_v4, 16  ;;  %v2957_v10 = vld [vmem:[%s2938_s8 + $0x40] sm:$0xf]  ;;  %s2374_s7 = sshll.u32 %s3593_s15, 3 }
  0x17   : > { %v580_v11 = vshrl.u32 %v2944_v4, 16  ;;  %v905_v13 = vrot.slane %v2944_v4, 5  ;;  %v2964_v14 = vcombine.low %v2947_v5, %v2957_v10  ;;  %v2967_v15 = vld [vmem:[%s2938_s8] sm:$0xf]  ;;  %v591_v20 = vshrl.u32 %v2947_v5, 16  ;;  %s3613_s10 = scalar_lea.vmem %s3712_s4, %s2374_s7 }
  0x18   : > { %2607 = vmatprep.mubr.msk.bf16.mxu1 %vm313_vm0, %v2951_v6  ;;  %v2976_v17 = vrot.slane %v567_v7, 4  ;;  %v2978_v18 = vrot.slane %v570_v8, 5  ;;  %v2980_v19 = vrot.slane %v576_v9, 5  ;;  %v2984_v21 = vld [vmem:[%s2938_s8 + $0x4] sm:$0xf]  ;;  %v594_v23 = vshll.u32 %v2947_v5, 16 }
  0x19   : > { %v2986_v22 = vrot.slane %v580_v11, 4  ;;  %2608 = vmatmul.mubr.msk.bf16.vlgmr.msra.gmra.mxu1 %vm313_vm0, %v2964_v14  ;;  %v604_v24 = vshrl.u32 %v2957_v10, 16  ;;  %v2375_v25 = vcombine.low %v2967_v15, %v2984_v21  ;;  %v2995_v26 = vld [vmem:[%s2938_s8 + $0xc] sm:$0xf]  ;;  %v471_v27 = vshrl.u32 %v2967_v15, 16 }
  0x1a   : > { %2616 = vmatpush3.bf16.msra.mxu1 %v2805_v1  ;;  %v474_v28 = vshll.u32 %v2967_v15, 16  ;;  %v480_v29 = vshll.u32 %v2984_v21, 16  ;;  %v484_v30 = vshrl.u32 %v2984_v21, 16  ;;  %v3002_v31 = vld [vmem:[%s2938_s8 + $0x10] sm:$0xf]  ;;  %v2411_v32 = vrot.slane %v2967_v15, 9 }
  0x1b   : > { %2599 = vmatprep.mubr.msk.bf16.mxu0 %vm313_vm0, %v2375_v25  ;;  %v877_v33 = vrot.slane %v2984_v21, 5  ;;  %v3009_v34 = vcombine.low %v2995_v26, %v3002_v31  ;;  %v495_v35 = vshrl.u32 %v2995_v26, 16  ;;  %v3013_v36 = vld [vmem:[%s2938_s8 + $0x48] sm:$0xf]  ;;  %2651 = vmatprep.subr.bf16.mxu1 %v2972_v16  ;;  %v473_v38 = vrot.slane %v471_v27, 4 }
  0x1c   : > { %v476_v39 = vrot.slane %v474_v28, 5  ;;  %v3021_v40 = vrot.slane %v480_v29, 5  ;;  %v486_v41 = vrot.slane %v484_v30, 4  ;;  %v3024_v42 = vld [vmem:[%s2938_s8 + $0x4c] sm:$0xf]  ;;  %v498_v45 = vshll.u32 %v2995_v26, 16 }
  0x1d   : > { %v3028_v43 = vrot.slane %v877_v33, 4  ;;  %2600 = vmatmul.mubr.msk.bf16.vlgmr.msra.gmra.mxu0 %vm313_vm0, %v3009_v34  ;;  %v497_v44 = vrot.slane %v495_v35, 4  ;;  %v504_v46 = vshll.u32 %v3002_v31, 16  ;;  %v3035_v47 = vld [vmem:[%s2938_s8 + $0x54] sm:$0xf]  ;;  %v508_v50 = vshrl.u32 %v3002_v31, 16 }
  0x1e   : > { %v477_v48 = vor.u32 %v476_v39, %v473_v38  ;;  %v487_v49 = vor.u32 %v486_v41, %v3021_v40  ;;  %v2412_v51 = vrot.slane %v2995_v26, 9  ;;  %v3041_v52 = vld [vmem:[%s2938_s8 + $0x58] sm:$0xf]  ;;  %2634 = vmatpush3.bf16.msra.mxu0 %v2930_v2  ;;  %v500_v54 = vrot.slane %v498_v45, 5  ;;  %v3055_v58 = vld [vmem:[%s2938_s8 + $0x1c] sm:$0xf] }
  0x1f   : > { %v3045_v53 = vld [vmem:[%s2938_s8 + $0x18] sm:$0xf]  ;;  %v3047_v55 = vrot.slane %v504_v46, 5  ;;  %v884_v56 = vrot.slane %v3002_v31, 5  ;;  %v3052_v57 = vcombine.low %v3013_v36, %v3024_v42  ;;  %2669 = vmatprep.subr.bf16.mxu0 %v3019_v37  ;;  %v510_v61 = vrot.slane %v508_v50, 4 }
  0x20   : > { %v478_v59 = vrot.slane %v477_v48, 4  ;;  %v488_v60 = vrot.slane %v487_v49, 4  ;;  %v3060_v63 = vld [vmem:[%s2938_s8 + $0x24] sm:$0xf]  ;;  %v501_v0 = vor.u32 %v500_v54, %v497_v44  ;;  %v3067_v8 = vld [vmem:[%s2938_s8 + $0x28] sm:$0xf]  ;;  %v3072_v11 = vcombine.low %v3035_v47, %v3041_v52 }
  0x21   : > { %v886_v1 = vrot.slane %v884_v56, 4  ;;  %2611 = vmatprep.mubr.msk.bf16.mxu1 %vm313_vm0, %v3052_v57  ;;  %v511_v9 = vor.u32 %v510_v61, %v3047_v55  ;;  %v237_v27 = vld [vmem:[%s2938_s8 + $0x8] sm:$0x1]  ;;  %v3086_v31 = vcombine.low %v3045_v53, %v3055_v58  ;;  %v519_v35 = vshrl.u32 %v3045_v53, 16  ;;  %v240_v38 = vld [vmem:[%s2938_s8 + $0x14] sm:$0x1] }
  0x22   : > { %v502_v29 = vrot.slane %v501_v0, 4  ;;  %2612 = vmatmul.mubr.msk.bf16.gmra.mxu1 %vm313_vm0, %v3072_v11  ;;  %v522_v44 = vshll.u32 %v3045_v53, 16  ;;  %v532_v45 = vshrl.u32 %v3055_v58, 16  ;;  %v3102_v46 = vcombine.low %v3060_v63, %v3067_v8  ;;  %v243_v26 = vld [vmem:[%s2938_s8 + $0x20] sm:$0x1] }
  0x23   : > { %v512_v41 = vrot.slane %v511_v9, 4  ;;  %2603 = vmatprep.mubr.msk.bf16.mxu0 %vm313_vm0, %v3086_v31  ;;  %v543_v48 = vshrl.u32 %v3060_v63, 16  ;;  %v546_v49 = vshll.u32 %v3060_v63, 16  ;;  %v556_v50 = vshrl.u32 %v3067_v8, 16 }
  0x24   : > { %v483_v54 = vsel %vm3079_vm5, %v478_v59, %v3021_v40  ;;  %v490_v61 = vshll.u32 %v237_v27, 16  ;;  %v507_v0 = vsel %vm3079_vm5, %v502_v29, %v3047_v55  ;;  %v514_v9 = vshll.u32 %v240_v38, 16 }
  0x25   : > { %2604 = vmatmul.mubr.msk.bf16.gmra.mxu0 %vm313_vm0, %v3102_v46  ;;  %v878_v30 = vsel %vm3092_vm6, %v2411_v32, %v877_v33  ;;  %v880_v25 = vrot.slane %v237_v27, 5  ;;  %v885_v40 = vsel %vm3092_vm6, %v2412_v51, %v884_v56  ;;  %v887_v59 = vrot.slane %v240_v38, 5 }
  0x26   : > { %v521_v7 = vrot.slane %v519_v35, 4  ;;  %v492_v2 = vrot.slane %v490_v61, 5  ;;  %v516_v62 = vrot.slane %v514_v9, 5  ;;  %v524_v12 = vrot.slane %v522_v44, 5  ;;  %v246_v35 = vld [vmem:[%s2938_s8 + $0x2c] sm:$0x1] }
  0x27   : > { %v528_v55 = vshll.u32 %v3055_v58, 16  ;;  %v881_v15 = vsel %vm3092_vm6, %v3028_v43, %v880_v25  ;;  %v888_v21 = vsel %vm3092_vm6, %v886_v1, %v887_v59  ;;  %v534_v32 = vrot.slane %v532_v45, 4 }
  0x28   : > { %v538_v33 = vshll.u32 %v243_v26, 16  ;;  %v493_v27 = vsel %vm3079_vm5, %v488_v60, %v492_v2  ;;  %v517_v51 = vsel %vm3079_vm5, %v512_v41, %v516_v62  ;;  %v2421_v56 = vcombine.low %v878_v30, %v881_v15  ;;  %v3146_v60 = vld [vmem:[%s3709_s1 + $0x28] sm:$0xff]   ;;  %v3151_v62 = vld [vmem:[%s3709_s1 + $0x30] sm:$0xff]  }
  0x29   : > { %v3136_v29 = vcombine.low %v885_v40, %v888_v21  ;;  %v2394_v38 = vcombine.low %v483_v54, %v493_v27  ;;  %v3139_v44 = vcombine.low %v507_v0, %v517_v51  ;;  %v525_v61 = vor.u32 %v524_v12, %v521_v7 }
  0x2a   : > { %v530_v43 = vrot.slane %v528_v55, 5  ;;  %2635 = vmatprep.mubr.msk.bf16.mxu0 %vm313_vm0, %v2421_v56  ;;  %v540_v1 = vrot.slane %v538_v33, 5  ;;  %v545_v25 = vrot.slane %v543_v48, 4  ;;  %v548_v45 = vrot.slane %v546_v49, 5 }
  0x2b   : > { %v552_v9 = vshll.u32 %v3067_v8, 16  ;;  %2617 = vmatprep.mubr.msk.bf16.mxu1 %vm313_vm0, %v2394_v38  ;;  %v526_v12 = vrot.slane %v525_v61, 4  ;;  %v558_v7 = vrot.slane %v556_v50, 4  ;;  %v562_v30 = vshll.u32 %v246_v35, 16 }
  0x2c   : > { %v535_v2 = vor.u32 %v534_v32, %v530_v43  ;;  %2618 = vmatmul.mubr.msk.bf16.vlgmr.msra.gmra.mxu1 %vm313_vm0, %v3139_v44  ;;  %v549_v41 = vor.u32 %v548_v45, %v545_v25  ;;  %v2413_v49 = vrot.slane %v3045_v53, 9  ;;  %v891_v54 = vrot.slane %v3055_v58, 5  ;;  %v252_v25 = vld [vmem:[%s2938_s8 + $0x44] sm:$0x1] }
  0x2d   : > { %2636 = vmatmul.mubr.msk.bf16.vlgmr.msra.gmra.mxu0 %vm313_vm0, %v3136_v29  ;;  %v554_v48 = vrot.slane %v552_v9, 5  ;;  %2652 = vmatpush3.bf16.msra.mxu1 %v2972_v16  ;;  %v531_v0 = vsel %vm3079_vm5, %v526_v12, %v530_v43  ;;  %v564_v40 = vrot.slane %v562_v30, 5  ;;  %v894_v59 = vrot.slane %v243_v26, 5  ;;  %v249_v26 = vld [vmem:[%s2938_s8 + $0x38] sm:$0x1] }
  0x2e   : > { %v536_v50 = vrot.slane %v535_v2, 4  ;;  %2670 = vmatpush3.bf16.msra.mxu0 %v3019_v37  ;;  %v550_v55 = vrot.slane %v549_v41, 4  ;;  %v892_v21 = vsel %vm3092_vm6, %v2413_v49, %v891_v54  ;;  %v893_v32 = vrot.slane %v891_v54, 4  ;;  %2687 = vmatprep.subr.bf16.mxu1 %v3146_v60 }
  0x2f   : > { %v559_v15 = vor.u32 %v558_v7, %v554_v48  ;;  %2705 = vmatprep.subr.bf16.mxu0 %v3151_v62  ;;  %v2414_v53 = vrot.slane %v3060_v63, 9  ;;  %v898_v58 = vrot.slane %v3067_v8, 5  ;;  %v901_v37 = vrot.slane %v246_v35, 5 }
  0x30   : > { %v541_v16 = vsel %vm3079_vm5, %v536_v50, %v540_v1  ;;  %v555_v27 = vsel %vm3079_vm5, %v550_v55, %v554_v48  ;;  %v895_v56 = vsel %vm3092_vm6, %v893_v32, %v894_v59  ;;  %v573_v8 = vor.u32 %v2978_v18, %v2976_v17 }
  0x31   : > { %v3173_v33 = vcombine.low %v531_v0, %v541_v16  ;;  %v560_v51 = vrot.slane %v559_v15, 4  ;;  %v3179_v38 = vcombine.low %v892_v21, %v895_v56  ;;  %v899_v61 = vsel %vm3092_vm6, %v2414_v53, %v898_v58  ;;  %v255_v53 = vld [vmem:[%s2938_s8 + $0x50] sm:$0x1] }
  0x32   : > { %v900_v63 = vrot.slane %v898_v58, 4  ;;  %v583_v43 = vor.u32 %v2986_v22, %v2980_v19  ;;  %v586_v1 = vshll.u32 %v249_v26, 16  ;;  %v593_v45 = vrot.slane %v591_v20, 4 }
  0x33   : > { %2621 = vmatprep.mubr.msk.bf16.mxu1 %vm313_vm0, %v3173_v33  ;;  %v565_v35 = vsel %vm3079_vm5, %v560_v51, %v564_v40  ;;  %2639 = vmatprep.mubr.msk.bf16.mxu0 %vm313_vm0, %v3179_v38  ;;  %v574_v18 = vrot.slane %v573_v8, 4  ;;  %v596_v12 = vrot.slane %v594_v23, 5  ;;  %v600_v30 = vshll.u32 %v2957_v10, 16 }
  0x34   : > { %v3194_v9 = vcombine.low %v555_v27, %v565_v35  ;;  %v902_v17 = vsel %vm3092_vm6, %v900_v63, %v901_v37  ;;  %v584_v22 = vrot.slane %v583_v43, 4  ;;  %v588_v7 = vrot.slane %v586_v1, 5 }
  0x35   : > { %v3202_v2 = vcombine.low %v899_v61, %v902_v17  ;;  %v579_v20 = vsel %vm3079_vm5, %v574_v18, %v2980_v19  ;;  %v597_v41 = vor.u32 %v596_v12, %v593_v45  ;;  %v606_v48 = vrot.slane %v604_v24, 4 }
  0x36   : > { %2622 = vmatmul.mubr.msk.bf16.gmra.mxu1 %vm313_vm0, %v3194_v9  ;;  %v610_v49 = vshll.u32 %v252_v25, 16  ;;  %v589_v23 = vsel %vm3079_vm5, %v584_v22, %v588_v7  ;;  %v602_v54 = vrot.slane %v600_v30, 5  ;;  %v3717_v0 = vrot.slane %v2941_v3, 9 }
  0x37   : > { %2640 = vmatmul.mubr.msk.bf16.gmra.mxu0 %vm313_vm0, %v3202_v2  ;;  %v907_v50 = vrot.slane %v905_v13, 4  ;;  %v3224_v40 = vcombine.low %v579_v20, %v589_v23  ;;  %v598_v24 = vrot.slane %v597_v41, 4  ;;  %v908_v55 = vrot.slane %v249_v26, 5 }
  0x38   : > { %v906_v19 = vsel %vm3092_vm6, %v3717_v0, %v905_v13  ;;  %v612_v59 = vrot.slane %v610_v49, 5  ;;  %v607_v15 = vor.u32 %v606_v48, %v602_v54  ;;  %v2416_v21 = vrot.slane %v2947_v5, 9 }
  0x39   : > { %v912_v32 = vrot.slane %v2957_v10, 5  ;;  %v915_v16 = vrot.slane %v252_v25, 5  ;;  %2625 = vmatprep.mubr.msk.bf16.mxu1 %vm313_vm0, %v3224_v40  ;;  %v603_v3 = vsel %vm3079_vm5, %v598_v24, %v602_v54  ;;  %v909_v4 = vsel %vm3092_vm6, %v907_v50, %v908_v55  ;;  %v258_v25 = vld [vmem:[%s2938_s8 + $0x5c] sm:$0x1] }
  0x3a   : > { %v3718_v13 = vshrl.u32 %v3013_v36, 16  ;;  %v3719_v37 = vshll.u32 %v3013_v36, 16  ;;  %v608_v26 = vrot.slane %v607_v15, 4  ;;  %v3239_v10 = vcombine.low %v906_v19, %v909_v4 }
  0x3b   : > { %v913_v27 = vsel %vm3092_vm6, %v2416_v21, %v912_v32  ;;  %v914_v51 = vrot.slane %v912_v32, 4  ;;  %v624_v61 = vshll.u32 %v3024_v42, 16  ;;  %v3720_v63 = vshrl.u32 %v3024_v42, 16 }
  0x3c   : > { %v617_v58 = vrot.slane %v3718_v13, 4  ;;  %v620_v5 = vrot.slane %v3719_v37, 5  ;;  %v634_v35 = vshll.u32 %v255_v53, 16  ;;  %v613_v43 = vsel %vm3079_vm5, %v608_v26, %v612_v59  ;;  %2643 = vmatprep.mubr.msk.bf16.mxu0 %vm313_vm0, %v3239_v10 }
  0x3d   : > { %v630_v8 = vrot.slane %v3720_v63, 4  ;;  %v916_v1 = vsel %vm3092_vm6, %v914_v51, %v915_v16  ;;  %v3721_v45 = vshrl.u32 %v3035_v47, 16  ;;  %v3722_v18 = vshll.u32 %v3035_v47, 16 }
  0x3e   : > { %v621_v56 = vor.u32 %v620_v5, %v617_v58  ;;  %v3257_v22 = vcombine.low %v603_v3, %v613_v43  ;;  %v3259_v7 = vcombine.low %v913_v27, %v916_v1  ;;  %v626_v20 = vrot.slane %v624_v61, 5  ;;  %v3304_v43 = vld [vmem:[%s2938_s8 + $0x64] sm:$0xf]  ;;  %v3309_v1 = vld [vmem:[%s2938_s8 + $0x68] sm:$0x1] }
  0x3f   : > { %v641_v17 = vrot.slane %v3721_v45, 4  ;;  %v644_v12 = vrot.slane %v3722_v18, 5  ;;  %v648_v48 = vshll.u32 %v3041_v52, 16  ;;  %v3723_v49 = vshrl.u32 %v3041_v52, 16  ;;  %v3319_v18 = vld [vmem:[%s2938_s8 + $0x6c] sm:$0xf] }
  0x40   : > { %v622_v30 = vrot.slane %v621_v56, 4  ;;  %2626 = vmatmul.mubr.msk.bf16.gmra.mxu1 %vm313_vm0, %v3257_v22  ;;  %2644 = vmatmul.mubr.msk.bf16.gmra.mxu0 %vm313_vm0, %v3259_v7  ;;  %v631_v54 = vor.u32 %v630_v8, %v626_v20  ;;  %v636_v0 = vrot.slane %v634_v35, 5  ;;  %v658_v19 = vshll.u32 %v258_v25, 16  ;;  %v3301_v35 = vld [vmem:[%s2938_s8 + $0x60] sm:$0xf] }
  0x41   : > { %v645_v41 = vor.u32 %v644_v12, %v641_v17  ;;  %v654_v23 = vrot.slane %v3723_v49, 4  ;;  %v2417_v50 = vrot.slane %v3013_v36, 9  ;;  %v650_v59 = vrot.slane %v648_v48, 5  ;;  %v264_v12 = vld [vmem:[%s2938_s8 + $0x74] sm:$0x1] }
  0x42   : > { %v919_v55 = vrot.slane %v3024_v42, 5  ;;  %v922_v15 = vrot.slane %v255_v53, 5  ;;  %v627_v21 = vsel %vm3079_vm5, %v622_v30, %v626_v20  ;;  %v632_v32 = vrot.slane %v631_v54, 4 }
  0x43   : > { %v646_v24 = vrot.slane %v645_v41, 4  ;;  %v2418_v16 = vrot.slane %v3035_v47, 9  ;;  %v926_v3 = vrot.slane %v3041_v52, 5  ;;  %v655_v4 = vor.u32 %v654_v23, %v650_v59  ;;  %v3327_v41 = vld [vmem:[%s2938_s8 + $0x70] sm:$0xf] }
  0x44   : > { %v660_v13 = vrot.slane %v658_v19, 5  ;;  %v920_v58 = vsel %vm3092_vm6, %v2417_v50, %v919_v55  ;;  %v921_v37 = vrot.slane %v919_v55, 4  ;;  %v637_v36 = vsel %vm3079_vm5, %v632_v32, %v636_v0 }
  0x45   : > { %v927_v42 = vsel %vm3092_vm6, %v2418_v16, %v926_v3  ;;  %v928_v53 = vrot.slane %v926_v3, 4  ;;  %v929_v5 = vrot.slane %v258_v25, 5  ;;  %v3280_v47 = vcombine.low %v627_v21, %v637_v36  ;;  %v2819_v21 = vld [vmem:[%s3709_s1 + $0x38] sm:$0xff]  }
  0x46   : > { %v651_v52 = vsel %vm3079_vm5, %v646_v24, %v650_v59  ;;  %v656_v26 = vrot.slane %v655_v4, 4  ;;  %v923_v27 = vsel %vm3092_vm6, %v921_v37, %v922_v15  ;;  %v2462_v25 = vrot.slane %v3301_v35, 9 }
  0x47   : > { %v3286_v51 = vcombine.low %v920_v58, %v923_v27  ;;  %v930_v56 = vsel %vm3092_vm6, %v928_v53, %v929_v5  ;;  %2629 = vmatprep.mubr.msk.bf16.mxu1 %vm313_vm0, %v3280_v47  ;;  %v1482_v45 = vrot.slane %v3304_v43, 5  ;;  %v1485_v17 = vrot.slane %v3309_v1, 5  ;;  %v2820_v58 = vld [vmem:[%s3709_s1 + $0x40] sm:$0xff]  }
  0x48   : > { %v661_v61 = vsel %vm3079_vm5, %v656_v26, %v660_v13  ;;  %v3294_v63 = vcombine.low %v927_v42, %v930_v56  ;;  %v1810_v48 = vshrl.u32 %v3319_v18, 16  ;;  %v1813_v49 = vshll.u32 %v3319_v18, 16 }
  0x49   : > { %v3296_v8 = vcombine.low %v651_v52, %v661_v61  ;;  %2647 = vmatprep.mubr.msk.bf16.mxu0 %vm313_vm0, %v3286_v51  ;;  %v1483_v30 = vsel %vm3092_vm6, %v2462_v25, %v1482_v45  ;;  %v1484_v20 = vrot.slane %v1482_v45, 4  ;;  %v1819_v23 = vshll.u32 %v3327_v41, 16 }
  0x4a   : > { %2648 = vmatmul.mubr.msk.bf16.gmra.mxu0 %vm313_vm0, %v3294_v63  ;;  %v1812_v0 = vrot.slane %v1810_v48, 4  ;;  %v1829_v19 = vshll.u32 %v264_v12, 16  ;;  %v1815_v50 = vrot.slane %v1813_v49, 5  ;;  %v2499_v55 = vrot.slane %v3319_v18, 9 }
  0x4b   : > { %2630 = vmatmul.mubr.msk.bf16.gmra.mxu1 %vm313_vm0, %v3296_v8  ;;  %2671 = vmatprep.mubr.msk.bf16.mxu0 %vm313_vm0, %v3139_v44  ;;  %v1823_v44 = vshrl.u32 %v3327_v41, 16  ;;  %v1486_v54 = vsel %vm3092_vm6, %v1484_v20, %v1485_v17  ;;  %v1821_v24 = vrot.slane %v1819_v23, 5  ;;  %v1296_v15 = vshrl.u32 %v3301_v35, 16 }
  0x4c   : > { %2653 = vmatprep.mubr.msk.bf16.mxu1 %vm313_vm0, %v3009_v34  ;;  %v3335_v34 = vcombine.low %v1483_v30, %v1486_v54  ;;  %v1816_v32 = vor.u32 %v1815_v50, %v1812_v0  ;;  %v1996_v16 = vrot.slane %v3327_v41, 5  ;;  %v1999_v3 = vrot.slane %v264_v12, 5 }
  0x4d   : > { %v1825_v59 = vrot.slane %v1823_v44, 4  ;;  %v1299_v4 = vshll.u32 %v3301_v35, 16  ;;  %v1309_v13 = vshrl.u32 %v3304_v43, 16  ;;  %v1831_v36 = vrot.slane %v1829_v19, 5 }
  0x4e   : > { %v1305_v42 = vshll.u32 %v3304_v43, 16  ;;  %v1817_v53 = vrot.slane %v1816_v32, 4  ;;  %v3356_v5 = vsel %vm3092_vm6, %v2499_v55, %v1996_v16  ;;  %v1998_v52 = vrot.slane %v1996_v16, 4 }
  0x4f   : > { %v1826_v37 = vor.u32 %v1825_v59, %v1821_v24  ;;  %v1298_v56 = vrot.slane %v1296_v15, 4  ;;  %v1301_v25 = vrot.slane %v1299_v4, 5  ;;  %v1311_v17 = vrot.slane %v1309_v13, 4 }
  0x50   : > { %v3367_v27 = vsel %vm3092_vm6, %v1998_v52, %v1999_v3  ;;  %v1307_v45 = vrot.slane %v1305_v42, 5  ;;  %v1315_v20 = vshll.u32 %v3309_v1, 16  ;;  %v2440_v0 = vcombine.low %v3301_v35, %v3304_v43 }
  0x51   : > { %v1827_v26 = vrot.slane %v1826_v37, 4  ;;  %v2502_v61 = vcombine.low %v3356_v5, %v3367_v27  ;;  %v1302_v39 = vor.u32 %v1301_v25, %v1298_v56 }
  0x52   : > { %2672 = vmatmul.mubr.msk.bf16.vlgmr.msra.gmra.mxu0 %vm313_vm0, %v3173_v33  ;;  %v1312_v30 = vor.u32 %v1311_v17, %v1307_v45  ;;  %v1317_v44 = vrot.slane %v1315_v20, 5 }
  0x53   : > { %2654 = vmatmul.mubr.msk.bf16.vlgmr.msra.gmra.mxu1 %vm313_vm0, %v3086_v31  ;;  %2706 = vmatpush3.bf16.msra.mxu0 %v3151_v62  ;;  %v1822_v62 = vsel %vm3079_vm5, %v1817_v53, %v1821_v24  ;;  %v1303_v48 = vrot.slane %v1302_v39, 4 }
  0x54   : > { %2688 = vmatpush3.bf16.msra.mxu1 %v3146_v60  ;;  %2657 = vmatprep.mubr.msk.bf16.mxu1 %vm313_vm0, %v3102_v46  ;;  %v1832_v60 = vsel %vm3079_vm5, %v1827_v26, %v1831_v36  ;;  %v1313_v49 = vrot.slane %v1312_v30, 4 }
  0x55   : > { %2675 = vmatprep.mubr.msk.bf16.mxu0 %vm313_vm0, %v3194_v9  ;;  %2723 = vmatprep.subr.bf16.mxu1 %v2819_v21  ;;  %v2489_v12 = vcombine.low %v1822_v62, %v1832_v60  ;;  %v1308_v23 = vsel %vm3079_vm5, %v1303_v48, %v1307_v45 }
  0x56   : > { %2741 = vmatprep.subr.bf16.mxu0 %v2820_v58  ;;  %v1318_v1 = vsel %vm3079_vm5, %v1313_v49, %v1317_v44 }
  0x57   : > { %v2452_v54 = vcombine.low %v1308_v23, %v1318_v1 }
  0x5a   : > { %2676 = vmatmul.mubr.msk.bf16.gmra.mxu0 %vm313_vm0, %v3224_v40 }
  0x5b   : > { %2658 = vmatmul.mubr.msk.bf16.gmra.mxu1 %vm313_vm0, %v2951_v6  ;;  %2679 = vmatprep.mubr.msk.bf16.mxu0 %vm313_vm0, %v3257_v22 }
  0x5c   : > { %2661 = vmatprep.mubr.msk.bf16.mxu1 %vm313_vm0, %v2964_v14 }
  0x62   : > { %2680 = vmatmul.mubr.msk.bf16.gmra.mxu0 %vm313_vm0, %v3280_v47 }
  0x63   : > { %2662 = vmatmul.mubr.msk.bf16.gmra.mxu1 %vm313_vm0, %v3052_v57  ;;  %2683 = vmatprep.mubr.msk.bf16.mxu0 %vm313_vm0, %v3296_v8 }
  0x64   : > { %2665 = vmatprep.mubr.msk.bf16.mxu1 %vm313_vm0, %v3072_v11 }
  0x6a   : > { %2684 = vmatmul.mubr.msk.bf16.gmra.mxu0 %vm313_vm0, %v2452_v54 }
  0x6b   : > { %2666 = vmatmul.mubr.msk.bf16.gmra.mxu1 %vm313_vm0, %v2440_v0  ;;  %2707 = vmatprep.mubr.msk.bf16.mxu0 %vm313_vm0, %v3086_v31 }
  0x6c   : > { %2689 = vmatprep.mubr.msk.bf16.mxu1 %vm313_vm0, %v3136_v29 }
  0x72   : > { %2708 = vmatmul.mubr.msk.bf16.vlgmr.msra.gmra.mxu0 %vm313_vm0, %v3102_v46 }
  0x73   : > { %2690 = vmatmul.mubr.msk.bf16.vlgmr.msra.gmra.mxu1 %vm313_vm0, %v3179_v38  ;;  %2742 = vmatpush3.bf16.msra.mxu0 %v2820_v58 }
  0x74   : > { %2724 = vmatpush3.bf16.msra.mxu1 %v2819_v21  ;;  %2693 = vmatprep.mubr.msk.bf16.mxu1 %vm313_vm0, %v3202_v2 }
  0x75   : > { %2711 = vmatprep.mubr.msk.bf16.mxu0 %vm313_vm0, %v2951_v6  ;;  %v2477_v6 = vcombine.low %v3319_v18, %v3327_v41 }
  0x7a   : > { %2712 = vmatmul.mubr.msk.bf16.gmra.mxu0 %vm313_vm0, %v2964_v14 }
  0x7b   : > { %2694 = vmatmul.mubr.msk.bf16.gmra.mxu1 %vm313_vm0, %v3239_v10  ;;  %2715 = vmatprep.mubr.msk.bf16.mxu0 %vm313_vm0, %v3052_v57 }
  0x7c   : > { %2697 = vmatprep.mubr.msk.bf16.mxu1 %vm313_vm0, %v3259_v7 }
  0x82   : > { %2716 = vmatmul.mubr.msk.bf16.gmra.mxu0 %vm313_vm0, %v3072_v11 }
  0x83   : > { %2698 = vmatmul.mubr.msk.bf16.gmra.mxu1 %vm313_vm0, %v3286_v51  ;;  %2719 = vmatprep.mubr.msk.bf16.mxu0 %vm313_vm0, %v2440_v0 }
  0x84   : > { %2701 = vmatprep.mubr.msk.bf16.mxu1 %vm313_vm0, %v3294_v63 }
  0x8a   : > { %2720 = vmatmul.mubr.msk.bf16.gmra.mxu0 %vm313_vm0, %v2477_v6 }
  0x8b   : > { %2702 = vmatmul.mubr.msk.bf16.gmra.mxu1 %vm313_vm0, %v3335_v34  ;;  %2743 = vmatprep.mubr.msk.bf16.mxu0 %vm313_vm0, %v3179_v38 }
  0x8c   : > { %2725 = vmatprep.mubr.msk.bf16.mxu1 %vm313_vm0, %v3173_v33 }
  0x92   : > { %2744 = vmatmul.mubr.msk.bf16.vlgmr.msra.gmra.mxu0 %vm313_vm0, %v3202_v2 }
  0x93   : > { %2726 = vmatmul.mubr.msk.bf16.vlgmr.msra.gmra.mxu1 %vm313_vm0, %v3194_v9  ;;  %2747 = vmatprep.mubr.msk.bf16.mxu0 %vm313_vm0, %v3239_v10 }
  0x94   : > { %2729 = vmatprep.mubr.msk.bf16.mxu1 %vm313_vm0, %v3224_v40 }
  0x9a   : > { %2748 = vmatmul.mubr.msk.bf16.gmra.mxu0 %vm313_vm0, %v3259_v7 }
  0x9b   : > { %2730 = vmatmul.mubr.msk.bf16.gmra.mxu1 %vm313_vm0, %v3257_v22  ;;  %2751 = vmatprep.mubr.msk.bf16.mxu0 %vm313_vm0, %v3286_v51 }
  0x9c   : > { %2733 = vmatprep.mubr.msk.bf16.mxu1 %vm313_vm0, %v3280_v47 }
  0xa2   : > { %2752 = vmatmul.mubr.msk.bf16.gmra.mxu0 %vm313_vm0, %v3294_v63 }
  0xa3   : > { %2734 = vmatmul.mubr.msk.bf16.gmra.mxu1 %vm313_vm0, %v3296_v8  ;;  %2755 = vmatprep.mubr.msk.bf16.mxu0 %vm313_vm0, %v3335_v34 }
  0xa4   : > { %2737 = vmatprep.mubr.msk.bf16.mxu1 %vm313_vm0, %v2452_v54 }
  0xaa   : > { %2756 = vmatmul.mubr.msk.bf16.gmra.mxu0 %vm313_vm0, %v2502_v61 }
  0xab   : > { %2738 = vmatmul.mubr.msk.bf16.gmra.mxu1 %vm313_vm0, %v2489_v12 }
  0xd9   : > { %v2609_v14 = vpop.f32.mrf.mxu1 }
  0xda   : > { %445 = vst.msk [vmem:[#allocation2 + $0x50] sm:$0xff] %vm313_vm0, %v2609_v14 }
  0xdb   : > { %v404_v57 = vpop.f32.mrf.mxu1 }
  0xdc   : > { %443 = vst.msk [vmem:[#allocation2 + $0x40] sm:$0xff] %vm313_vm0, %v404_v57 }
  0xdd   : > { %v2601_v11 = vpop.f32.mrf.mxu0  ;;  %v2610_v28 = vpop.f32.mrf.mxu1 }
  0xde   : > { %437 = vst.msk [vmem:[#allocation2 + $0x10] sm:$0xff] %vm313_vm0, %v2601_v11  ;;  %446 = vst.msk [vmem:[#allocation2 + $0x58] sm:$0xff] %vm313_vm0, %v2610_v28 }
  0xdf   : > { %v372_v31 = vpop.f32.mrf.mxu0  ;;  %v407_v46 = vpop.f32.mrf.mxu1 }
  0xe0   : > { %435 = vst.msk [vmem:[#allocation2] sm:$0xff] %vm313_vm0, %v372_v31  ;;  %444 = vst.msk [vmem:[#allocation2 + $0x48] sm:$0xff] %vm313_vm0, %v407_v46 }
  0xe1   : > { %v2602_v29 = vpop.f32.mrf.mxu0  ;;  %v461_v49 = vld [vmem:[#allocation2 + $0x50] sm:$0xff] }
  0xe2   : > { %438 = vst.msk [vmem:[#allocation2 + $0x18] sm:$0xff] %vm313_vm0, %v2602_v29  ;;  %v2613_v38 = vpop.f32.mrf.mxu1 }
  0xe3   : > { %v375_v33 = vpop.f32.mrf.mxu0  ;;  %449 = vst.msk [vmem:[#allocation2 + $0x70] sm:$0xff] %vm313_vm0, %v2613_v38  ;;  %v459_v6 = vld [vmem:[#allocation2 + $0x40] sm:$0xff] }
  0xe4   : > { %436 = vst.msk [vmem:[#allocation2 + $0x8] sm:$0xff] %vm313_vm0, %v375_v33  ;;  %v420_v9 = vpop.f32.mrf.mxu1 }
  0xe5   : > { %v2605_v2 = vpop.f32.mrf.mxu0  ;;  %447 = vst.msk [vmem:[#allocation2 + $0x60] sm:$0xff] %vm313_vm0, %v420_v9  ;;  %v453_v47 = vld [vmem:[#allocation2 + $0x10] sm:$0xff]  ;;  %v462_v46 = vld [vmem:[#allocation2 + $0x58] sm:$0xff] }
  0xe6   : > { %441 = vst.msk [vmem:[#allocation2 + $0x30] sm:$0xff] %vm313_vm0, %v2605_v2  ;;  %v2614_v40 = vpop.f32.mrf.mxu1 }
  0xe7   : > { %v388_v10 = vpop.f32.mrf.mxu0  ;;  %450 = vst.msk [vmem:[#allocation2 + $0x78] sm:$0xff] %vm313_vm0, %v2614_v40  ;;  %v451_v8 = vld [vmem:[#allocation2] sm:$0xff]  ;;  %v460_v40 = vld [vmem:[#allocation2 + $0x48] sm:$0xff] }
  0xe8   : > { %439 = vst.msk [vmem:[#allocation2 + $0x20] sm:$0xff] %vm313_vm0, %v388_v10  ;;  %v423_v22 = vpop.f32.mrf.mxu1 }
  0xe9   : > { %v2606_v7 = vpop.f32.mrf.mxu0  ;;  %448 = vst.msk [vmem:[#allocation2 + $0x68] sm:$0xff] %vm313_vm0, %v423_v22  ;;  %v454_v34 = vld [vmem:[#allocation2 + $0x18] sm:$0xff] }
  0xea   : > { %442 = vst.msk [vmem:[#allocation2 + $0x38] sm:$0xff] %vm313_vm0, %v2606_v7 }
  0xeb   : > { %v391_v51 = vpop.f32.mrf.mxu0  ;;  %v452_v55 = vld [vmem:[#allocation2 + $0x8] sm:$0xff] }
  0xec   : > { %440 = vst.msk [vmem:[#allocation2 + $0x28] sm:$0xff] %vm313_vm0, %v391_v51  ;;  %v2619_v63 = vpop.f32.mrf.mxu1 }
  0xed   : > { %v2637_v35 = vpop.f32.mrf.mxu0  ;;  %v818_v43 = vadd.f32 %v2619_v63, %v453_v47  ;;  %v457_v16 = vld [vmem:[#allocation2 + $0x30] sm:$0xff] }
  0xee   : > { %v753_v18 = vpop.f32.mrf.mxu1 }
  0xef   : > { %v1022_v41 = vpop.f32.mrf.mxu0  ;;  %834 = vst.msk [vmem:[#allocation2 + $0x10] sm:$0xff] %vm313_vm0, %v818_v43  ;;  %v816_v19 = vadd.f32 %v753_v18, %v451_v8  ;;  %v455_v4 = vld [vmem:[#allocation2 + $0x20] sm:$0xff]  ;;  %v465_v8 = vld [vmem:[#allocation2 + $0x70] sm:$0xff] }
  0xf0   : > { %v2620_v50 = vpop.f32.mrf.mxu1 }
  0xf1   : > { %v2638_v24 = vpop.f32.mrf.mxu0  ;;  %832 = vst.msk [vmem:[#allocation2] sm:$0xff] %vm313_vm0, %v816_v19  ;;  %v819_v59 = vadd.f32 %v2620_v50, %v454_v34  ;;  %v458_v62 = vld [vmem:[#allocation2 + $0x38] sm:$0xff]  ;;  %v463_v34 = vld [vmem:[#allocation2 + $0x60] sm:$0xff] }
  0xf2   : > { %v756_v15 = vpop.f32.mrf.mxu1 }
  0xf3   : > { %v1025_v21 = vpop.f32.mrf.mxu0  ;;  %835 = vst.msk [vmem:[#allocation2 + $0x18] sm:$0xff] %vm313_vm0, %v819_v59  ;;  %v817_v32 = vadd.f32 %v756_v15, %v452_v55  ;;  %v456_v45 = vld [vmem:[#allocation2 + $0x28] sm:$0xff] }
  0xf5   : > { %833 = vst.msk [vmem:[#allocation2 + $0x8] sm:$0xff] %vm313_vm0, %v817_v32 }
  0xf6   : > { %v2623_v3 = vpop.f32.mrf.mxu1  ;;  %v850_v13 = vld [vmem:[#allocation2 + $0x10] sm:$0xff] }
  0xf7   : > { %v822_v58 = vadd.f32 %v2623_v3, %v457_v16  ;;  %v2641_v37 = vpop.f32.mrf.mxu0  ;;  %v1087_v36 = vadd.f32 %v2637_v35, %v850_v13 }
  0xf8   : > { %v769_v42 = vpop.f32.mrf.mxu1  ;;  %v848_v53 = vld [vmem:[#allocation2] sm:$0xff] }
  0xf9   : > { %838 = vst.msk [vmem:[#allocation2 + $0x30] sm:$0xff] %vm313_vm0, %v822_v58  ;;  %v820_v5 = vadd.f32 %v769_v42, %v455_v4  ;;  %v1038_v52 = vpop.f32.mrf.mxu0  ;;  %1103 = vst.msk [vmem:[#allocation2 + $0x10] sm:$0xff] %vm313_vm0, %v1087_v36  ;;  %v1085_v26 = vadd.f32 %v1022_v41, %v848_v53  ;;  %v464_v58 = vld [vmem:[#allocation2 + $0x68] sm:$0xff] }
  0xfa   : > { %v2624_v27 = vpop.f32.mrf.mxu1  ;;  %v851_v56 = vld [vmem:[#allocation2 + $0x18] sm:$0xff] }
  0xfb   : > { %836 = vst.msk [vmem:[#allocation2 + $0x20] sm:$0xff] %vm313_vm0, %v820_v5  ;;  %v823_v60 = vadd.f32 %v2624_v27, %v458_v62  ;;  %v2642_v61 = vpop.f32.mrf.mxu0  ;;  %1101 = vst.msk [vmem:[#allocation2] sm:$0xff] %vm313_vm0, %v1085_v26  ;;  %v1088_v25 = vadd.f32 %v2638_v24, %v851_v56 }
  0xfc   : > { %v772_v17 = vpop.f32.mrf.mxu1  ;;  %v849_v12 = vld [vmem:[#allocation2 + $0x8] sm:$0xff] }
  0xfd   : > { %839 = vst.msk [vmem:[#allocation2 + $0x38] sm:$0xff] %vm313_vm0, %v823_v60  ;;  %v821_v39 = vadd.f32 %v772_v17, %v456_v45  ;;  %v1041_v30 = vpop.f32.mrf.mxu0  ;;  %1104 = vst.msk [vmem:[#allocation2 + $0x18] sm:$0xff] %vm313_vm0, %v1088_v25  ;;  %v1086_v20 = vadd.f32 %v1025_v21, %v849_v12  ;;  %v466_v21 = vld [vmem:[#allocation2 + $0x78] sm:$0xff] }
  0xff   : > { %837 = vst.msk [vmem:[#allocation2 + $0x28] sm:$0xff] %vm313_vm0, %v821_v39  ;;  %1102 = vst.msk [vmem:[#allocation2 + $0x8] sm:$0xff] %vm313_vm0, %v1086_v20 }
 0x100   : > { %v854_v48 = vld [vmem:[#allocation2 + $0x30] sm:$0xff]  ;;  %v2627_v44 = vpop.f32.mrf.mxu1  ;;  %v2645_v23 = vpop.f32.mrf.mxu0 }
 0x101   : > { %v1091_v1 = vadd.f32 %v2641_v37, %v854_v48  ;;  %v826_v54 = vadd.f32 %v2627_v44, %v461_v49  ;;  %v1119_v5 = vld [vmem:[#allocation2 + $0x10] sm:$0xff] }
 0x102   : > { %v852_v0 = vld [vmem:[#allocation2 + $0x20] sm:$0xff]  ;;  %v785_v14 = vpop.f32.mrf.mxu1  ;;  %v1054_v57 = vpop.f32.mrf.mxu0 }
 0x103   : > { %1107 = vst.msk [vmem:[#allocation2 + $0x30] sm:$0xff] %vm313_vm0, %v1091_v1  ;;  %v1089_v11 = vadd.f32 %v1038_v52, %v852_v0  ;;  %842 = vst.msk [vmem:[#allocation2 + $0x50] sm:$0xff] %vm313_vm0, %v826_v54  ;;  %v824_v28 = vadd.f32 %v785_v14, %v459_v6  ;;  %v1117_v56 = vld [vmem:[#allocation2] sm:$0xff] }
 0x104   : > { %v855_v31 = vld [vmem:[#allocation2 + $0x38] sm:$0xff]  ;;  %v2628_v29 = vpop.f32.mrf.mxu1  ;;  %v2646_v33 = vpop.f32.mrf.mxu0 }
 0x105   : > { %1105 = vst.msk [vmem:[#allocation2 + $0x20] sm:$0xff] %vm313_vm0, %v1089_v11  ;;  %v1092_v38 = vadd.f32 %v2642_v61, %v855_v31  ;;  %840 = vst.msk [vmem:[#allocation2 + $0x40] sm:$0xff] %vm313_vm0, %v824_v28  ;;  %v827_v9 = vadd.f32 %v2628_v29, %v462_v46  ;;  %v1120_v12 = vld [vmem:[#allocation2 + $0x18] sm:$0xff] }
 0x106   : > { %v853_v2 = vld [vmem:[#allocation2 + $0x28] sm:$0xff]  ;;  %v788_v10 = vpop.f32.mrf.mxu1  ;;  %v1057_v22 = vpop.f32.mrf.mxu0 }
 0x107   : > { %1108 = vst.msk [vmem:[#allocation2 + $0x38] sm:$0xff] %vm313_vm0, %v1092_v38  ;;  %v1090_v7 = vadd.f32 %v1041_v30, %v853_v2  ;;  %843 = vst.msk [vmem:[#allocation2 + $0x58] sm:$0xff] %vm313_vm0, %v827_v9  ;;  %v825_v47 = vadd.f32 %v788_v10, %v460_v40  ;;  %v1118_v44 = vld [vmem:[#allocation2 + $0x8] sm:$0xff] }
 0x109   : > { %1106 = vst.msk [vmem:[#allocation2 + $0x28] sm:$0xff] %vm313_vm0, %v1090_v7  ;;  %841 = vst.msk [vmem:[#allocation2 + $0x48] sm:$0xff] %vm313_vm0, %v825_v47 }
 0x10a   : > { %v2649_v51 = vpop.f32.mrf.mxu0  ;;  %v858_v63 = vld [vmem:[#allocation2 + $0x50] sm:$0xff] }
 0x10b   : > { %v2631_v35 = vpop.f32.mrf.mxu1  ;;  %v1095_v43 = vadd.f32 %v2645_v23, %v858_v63  ;;  %v1123_v14 = vld [vmem:[#allocation2 + $0x30] sm:$0xff] }
 0x10c   : > { %v830_v18 = vadd.f32 %v2631_v35, %v465_v8  ;;  %v1070_v41 = vpop.f32.mrf.mxu0  ;;  %v856_v19 = vld [vmem:[#allocation2 + $0x40] sm:$0xff] }
 0x10d   : > { %v801_v50 = vpop.f32.mrf.mxu1  ;;  %1111 = vst.msk [vmem:[#allocation2 + $0x50] sm:$0xff] %vm313_vm0, %v1095_v43  ;;  %v1093_v24 = vadd.f32 %v1054_v57, %v856_v19  ;;  %v1121_v29 = vld [vmem:[#allocation2 + $0x20] sm:$0xff] }
 0x10e   : > { %846 = vst.msk [vmem:[#allocation2 + $0x70] sm:$0xff] %vm313_vm0, %v830_v18  ;;  %v828_v59 = vadd.f32 %v801_v50, %v463_v34  ;;  %v2650_v55 = vpop.f32.mrf.mxu0  ;;  %v859_v15 = vld [vmem:[#allocation2 + $0x58] sm:$0xff] }
 0x10f   : > { %v2632_v32 = vpop.f32.mrf.mxu1  ;;  %1109 = vst.msk [vmem:[#allocation2 + $0x40] sm:$0xff] %vm313_vm0, %v1093_v24  ;;  %v1096_v16 = vadd.f32 %v2646_v33, %v859_v15  ;;  %v1124_v10 = vld [vmem:[#allocation2 + $0x38] sm:$0xff] }
 0x110   : > { %844 = vst.msk [vmem:[#allocation2 + $0x60] sm:$0xff] %vm313_vm0, %v828_v59  ;;  %v831_v3 = vadd.f32 %v2632_v32, %v466_v21  ;;  %v1073_v4 = vpop.f32.mrf.mxu0  ;;  %v857_v13 = vld [vmem:[#allocation2 + $0x48] sm:$0xff] }
 0x111   : > { %v804_v37 = vpop.f32.mrf.mxu1  ;;  %1112 = vst.msk [vmem:[#allocation2 + $0x58] sm:$0xff] %vm313_vm0, %v1096_v16  ;;  %v1094_v36 = vadd.f32 %v1057_v22, %v857_v13  ;;  %v1122_v8 = vld [vmem:[#allocation2 + $0x28] sm:$0xff] }
 0x112   : > { %847 = vst.msk [vmem:[#allocation2 + $0x78] sm:$0xff] %vm313_vm0, %v831_v3  ;;  %v829_v42 = vadd.f32 %v804_v37, %v464_v58  ;;  %v2673_v53 = vpop.f32.mrf.mxu0 }
 0x113   : > { %v2655_v52 = vpop.f32.mrf.mxu1  ;;  %1110 = vst.msk [vmem:[#allocation2 + $0x48] sm:$0xff] %vm313_vm0, %v1094_v36 }
 0x114   : > { %845 = vst.msk [vmem:[#allocation2 + $0x68] sm:$0xff] %vm313_vm0, %v829_v42  ;;  %v1249_v26 = vadd.f32 %v2655_v52, %v1119_v5  ;;  %v1368_v62 = vpop.f32.mrf.mxu0  ;;  %v1127_v34 = vld [vmem:[#allocation2 + $0x50] sm:$0xff] }
 0x115   : > { %v862_v27 = vld [vmem:[#allocation2 + $0x70] sm:$0xff]  ;;  %v1184_v60 = vpop.f32.mrf.mxu1 }
 0x116   : > { %v1099_v61 = vadd.f32 %v2649_v51, %v862_v27  ;;  %1265 = vst.msk [vmem:[#allocation2 + $0x10] sm:$0xff] %vm313_vm0, %v1249_v26  ;;  %v1247_v25 = vadd.f32 %v1184_v60, %v1117_v56  ;;  %v2674_v45 = vpop.f32.mrf.mxu0  ;;  %v1125_v21 = vld [vmem:[#allocation2 + $0x40] sm:$0xff] }
 0x117   : > { %v860_v17 = vld [vmem:[#allocation2 + $0x60] sm:$0xff]  ;;  %v2656_v39 = vpop.f32.mrf.mxu1 }
 0x118   : > { %1115 = vst.msk [vmem:[#allocation2 + $0x70] sm:$0xff] %vm313_vm0, %v1099_v61  ;;  %v1097_v30 = vadd.f32 %v1070_v41, %v860_v17  ;;  %1263 = vst.msk [vmem:[#allocation2] sm:$0xff] %vm313_vm0, %v1247_v25  ;;  %v1250_v20 = vadd.f32 %v2656_v39, %v1120_v12  ;;  %v1371_v48 = vpop.f32.mrf.mxu0  ;;  %v1128_v58 = vld [vmem:[#allocation2 + $0x58] sm:$0xff] }
 0x119   : > { %v863_v49 = vld [vmem:[#allocation2 + $0x78] sm:$0xff]  ;;  %v1187_v23 = vpop.f32.mrf.mxu1 }
 0x11a   : > { %1113 = vst.msk [vmem:[#allocation2 + $0x60] sm:$0xff] %vm313_vm0, %v1097_v30  ;;  %v1100_v1 = vadd.f32 %v2650_v55, %v863_v49  ;;  %1266 = vst.msk [vmem:[#allocation2 + $0x18] sm:$0xff] %vm313_vm0, %v1250_v20  ;;  %v1248_v54 = vadd.f32 %v1187_v23, %v1118_v44  ;;  %v2677_v0 = vpop.f32.mrf.mxu0  ;;  %v1126_v52 = vld [vmem:[#allocation2 + $0x48] sm:$0xff] }
 0x11b   : > { %v861_v6 = vld [vmem:[#allocation2 + $0x68] sm:$0xff]  ;;  %v2659_v57 = vpop.f32.mrf.mxu1 }
 0x11c   : > { %1116 = vst.msk [vmem:[#allocation2 + $0x78] sm:$0xff] %vm313_vm0, %v1100_v1  ;;  %v1098_v11 = vadd.f32 %v1073_v4, %v861_v6  ;;  %1264 = vst.msk [vmem:[#allocation2 + $0x8] sm:$0xff] %vm313_vm0, %v1248_v54  ;;  %v1253_v28 = vadd.f32 %v2659_v57, %v1123_v14  ;;  %v1384_v31 = vpop.f32.mrf.mxu0 }
 0x11d   : > { %v1281_v46 = vld [vmem:[#allocation2 + $0x10] sm:$0xff]  ;;  %v1200_v33 = vpop.f32.mrf.mxu1 }
 0x11e   : > { %1114 = vst.msk [vmem:[#allocation2 + $0x68] sm:$0xff] %vm313_vm0, %v1098_v11  ;;  %v1433_v38 = vadd.f32 %v2673_v53, %v1281_v46  ;;  %1269 = vst.msk [vmem:[#allocation2 + $0x30] sm:$0xff] %vm313_vm0, %v1253_v28  ;;  %v1251_v9 = vadd.f32 %v1200_v33, %v1121_v29  ;;  %v2678_v2 = vpop.f32.mrf.mxu0 }
 0x11f   : > { %v1279_v40 = vld [vmem:[#allocation2] sm:$0xff]  ;;  %v2660_v22 = vpop.f32.mrf.mxu1  ;;  %v1131_v61 = vld [vmem:[#allocation2 + $0x70] sm:$0xff] }
 0x120   : > { %1449 = vst.msk [vmem:[#allocation2 + $0x10] sm:$0xff] %vm313_vm0, %v1433_v38  ;;  %v1431_v7 = vadd.f32 %v1368_v62, %v1279_v40  ;;  %1267 = vst.msk [vmem:[#allocation2 + $0x20] sm:$0xff] %vm313_vm0, %v1251_v9  ;;  %v1254_v47 = vadd.f32 %v2660_v22, %v1124_v10  ;;  %v1387_v51 = vpop.f32.mrf.mxu0 }
 0x121   : > { %v1282_v63 = vld [vmem:[#allocation2 + $0x18] sm:$0xff]  ;;  %v1203_v35 = vpop.f32.mrf.mxu1  ;;  %v1129_v30 = vld [vmem:[#allocation2 + $0x60] sm:$0xff] }
 0x122   : > { %1447 = vst.msk [vmem:[#allocation2] sm:$0xff] %vm313_vm0, %v1431_v7  ;;  %v1434_v43 = vadd.f32 %v2674_v45, %v1282_v63  ;;  %1270 = vst.msk [vmem:[#allocation2 + $0x38] sm:$0xff] %vm313_vm0, %v1254_v47  ;;  %v1252_v18 = vadd.f32 %v1203_v35, %v1122_v8  ;;  %v2681_v41 = vpop.f32.mrf.mxu0 }
 0x123   : > { %v1280_v19 = vld [vmem:[#allocation2 + $0x8] sm:$0xff]  ;;  %v2663_v50 = vpop.f32.mrf.mxu1  ;;  %v1132_v1 = vld [vmem:[#allocation2 + $0x78] sm:$0xff] }
 0x124   : > { %1450 = vst.msk [vmem:[#allocation2 + $0x18] sm:$0xff] %vm313_vm0, %v1434_v43  ;;  %v1432_v24 = vadd.f32 %v1371_v48, %v1280_v19  ;;  %1268 = vst.msk [vmem:[#allocation2 + $0x28] sm:$0xff] %vm313_vm0, %v1252_v18  ;;  %v1257_v59 = vadd.f32 %v2663_v50, %v1127_v34  ;;  %v1400_v55 = vpop.f32.mrf.mxu0 }
 0x125   : > { %v1285_v15 = vld [vmem:[#allocation2 + $0x30] sm:$0xff]  ;;  %v1216_v32 = vpop.f32.mrf.mxu1  ;;  %v1130_v11 = vld [vmem:[#allocation2 + $0x68] sm:$0xff] }
 0x126   : > { %1448 = vst.msk [vmem:[#allocation2 + $0x8] sm:$0xff] %vm313_vm0, %v1432_v24  ;;  %v1437_v16 = vadd.f32 %v2677_v0, %v1285_v15  ;;  %1273 = vst.msk [vmem:[#allocation2 + $0x50] sm:$0xff] %vm313_vm0, %v1257_v59  ;;  %v1255_v3 = vadd.f32 %v1216_v32, %v1125_v21  ;;  %v2682_v4 = vpop.f32.mrf.mxu0 }
 0x127   : > { %v1283_v13 = vld [vmem:[#allocation2 + $0x20] sm:$0xff]  ;;  %v2664_v37 = vpop.f32.mrf.mxu1  ;;  %v1465_v38 = vld [vmem:[#allocation2 + $0x10] sm:$0xff] }
 0x128   : > { %1453 = vst.msk [vmem:[#allocation2 + $0x30] sm:$0xff] %vm313_vm0, %v1437_v16  ;;  %v1435_v36 = vadd.f32 %v1384_v31, %v1283_v13  ;;  %1271 = vst.msk [vmem:[#allocation2 + $0x40] sm:$0xff] %vm313_vm0, %v1255_v3  ;;  %v1258_v42 = vadd.f32 %v2664_v37, %v1128_v58  ;;  %v1403_v53 = vpop.f32.mrf.mxu0 }
 0x129   : > { %v1286_v5 = vld [vmem:[#allocation2 + $0x38] sm:$0xff]  ;;  %v1219_v26 = vpop.f32.mrf.mxu1  ;;  %v1463_v7 = vld [vmem:[#allocation2] sm:$0xff] }
 0x12a   : > { %1451 = vst.msk [vmem:[#allocation2 + $0x20] sm:$0xff] %vm313_vm0, %v1435_v36  ;;  %v1438_v62 = vadd.f32 %v2678_v2, %v1286_v5  ;;  %1274 = vst.msk [vmem:[#allocation2 + $0x58] sm:$0xff] %vm313_vm0, %v1258_v42  ;;  %v1256_v27 = vadd.f32 %v1219_v26, %v1126_v52  ;;  %v2685_v56 = vpop.f32.mrf.mxu0 }
 0x12b   : > { %v1284_v60 = vld [vmem:[#allocation2 + $0x28] sm:$0xff]  ;;  %v2667_v25 = vpop.f32.mrf.mxu1  ;;  %v1466_v43 = vld [vmem:[#allocation2 + $0x18] sm:$0xff] }
 0x12c   : > { %1454 = vst.msk [vmem:[#allocation2 + $0x38] sm:$0xff] %vm313_vm0, %v1438_v62  ;;  %v1436_v45 = vadd.f32 %v1387_v51, %v1284_v60  ;;  %1272 = vst.msk [vmem:[#allocation2 + $0x48] sm:$0xff] %vm313_vm0, %v1256_v27  ;;  %v1261_v17 = vadd.f32 %v2667_v25, %v1131_v61  ;;  %v1416_v12 = vpop.f32.mrf.mxu0 }
 0x12d   : > { %v1289_v39 = vld [vmem:[#allocation2 + $0x50] sm:$0xff]  ;;  %v1232_v20 = vpop.f32.mrf.mxu1  ;;  %v1464_v24 = vld [vmem:[#allocation2 + $0x8] sm:$0xff] }
 0x12e   : > { %1452 = vst.msk [vmem:[#allocation2 + $0x28] sm:$0xff] %vm313_vm0, %v1436_v45  ;;  %v1441_v48 = vadd.f32 %v2681_v41, %v1289_v39  ;;  %1277 = vst.msk [vmem:[#allocation2 + $0x70] sm:$0xff] %vm313_vm0, %v1261_v17  ;;  %v1259_v49 = vadd.f32 %v1232_v20, %v1129_v30  ;;  %v2686_v44 = vpop.f32.mrf.mxu0 }
 0x12f   : > { %v1287_v23 = vld [vmem:[#allocation2 + $0x40] sm:$0xff]  ;;  %v2668_v54 = vpop.f32.mrf.mxu1  ;;  %v1469_v16 = vld [vmem:[#allocation2 + $0x30] sm:$0xff] }
 0x130   : > { %1457 = vst.msk [vmem:[#allocation2 + $0x50] sm:$0xff] %vm313_vm0, %v1441_v48  ;;  %v1439_v0 = vadd.f32 %v1400_v55, %v1287_v23  ;;  %1275 = vst.msk [vmem:[#allocation2 + $0x60] sm:$0xff] %vm313_vm0, %v1259_v49  ;;  %v1262_v6 = vadd.f32 %v2668_v54, %v1132_v1  ;;  %v1419_v14 = vpop.f32.mrf.mxu0 }
 0x131   : > { %v1290_v57 = vld [vmem:[#allocation2 + $0x58] sm:$0xff]  ;;  %v1235_v28 = vpop.f32.mrf.mxu1  ;;  %v1467_v36 = vld [vmem:[#allocation2 + $0x20] sm:$0xff] }
 0x132   : > { %1455 = vst.msk [vmem:[#allocation2 + $0x40] sm:$0xff] %vm313_vm0, %v1439_v0  ;;  %v1442_v31 = vadd.f32 %v2682_v4, %v1290_v57  ;;  %1278 = vst.msk [vmem:[#allocation2 + $0x78] sm:$0xff] %vm313_vm0, %v1262_v6  ;;  %v1260_v46 = vadd.f32 %v1235_v28, %v1130_v11  ;;  %v2709_v29 = vpop.f32.mrf.mxu0 }
 0x133   : > { %v1288_v33 = vld [vmem:[#allocation2 + $0x48] sm:$0xff]  ;;  %v2691_v9 = vpop.f32.mrf.mxu1  ;;  %v1470_v62 = vld [vmem:[#allocation2 + $0x38] sm:$0xff] }
 0x134   : > { %1458 = vst.msk [vmem:[#allocation2 + $0x58] sm:$0xff] %vm313_vm0, %v1442_v31  ;;  %v1440_v2 = vadd.f32 %v1403_v53, %v1288_v33  ;;  %1276 = vst.msk [vmem:[#allocation2 + $0x68] sm:$0xff] %vm313_vm0, %v1260_v46  ;;  %v1601_v40 = vadd.f32 %v2691_v9, %v1465_v38  ;;  %v1698_v10 = vpop.f32.mrf.mxu0 }
 0x135   : > { %v1293_v22 = vld [vmem:[#allocation2 + $0x70] sm:$0xff]  ;;  %v1536_v47 = vpop.f32.mrf.mxu1  ;;  %v1468_v45 = vld [vmem:[#allocation2 + $0x28] sm:$0xff] }
 0x136   : > { %1456 = vst.msk [vmem:[#allocation2 + $0x48] sm:$0xff] %vm313_vm0, %v1440_v2  ;;  %v1445_v51 = vadd.f32 %v2685_v56, %v1293_v22  ;;  %1617 = vst.msk [vmem:[#allocation2 + $0x10] sm:$0xff] %vm313_vm0, %v1601_v40  ;;  %v1599_v63 = vadd.f32 %v1536_v47, %v1463_v7  ;;  %v2710_v8 = vpop.f32.mrf.mxu0 }
 0x137   : > { %v1291_v35 = vld [vmem:[#allocation2 + $0x60] sm:$0xff]  ;;  %v2692_v18 = vpop.f32.mrf.mxu1  ;;  %v1473_v48 = vld [vmem:[#allocation2 + $0x50] sm:$0xff] }
 0x138   : > { %1461 = vst.msk [vmem:[#allocation2 + $0x70] sm:$0xff] %vm313_vm0, %v1445_v51  ;;  %v1443_v41 = vadd.f32 %v1416_v12, %v1291_v35  ;;  %1615 = vst.msk [vmem:[#allocation2] sm:$0xff] %vm313_vm0, %v1599_v63  ;;  %v1602_v19 = vadd.f32 %v2692_v18, %v1466_v43  ;;  %v1701_v34 = vpop.f32.mrf.mxu0 }
 0x139   : > { %v1294_v50 = vld [vmem:[#allocation2 + $0x78] sm:$0xff]  ;;  %v1539_v59 = vpop.f32.mrf.mxu1  ;;  %v1471_v0 = vld [vmem:[#allocation2 + $0x40] sm:$0xff] }
 0x13a   : > { %1459 = vst.msk [vmem:[#allocation2 + $0x60] sm:$0xff] %vm313_vm0, %v1443_v41  ;;  %v1446_v55 = vadd.f32 %v2686_v44, %v1294_v50  ;;  %1618 = vst.msk [vmem:[#allocation2 + $0x18] sm:$0xff] %vm313_vm0, %v1602_v19  ;;  %v1600_v15 = vadd.f32 %v1539_v59, %v1464_v24  ;;  %v2713_v21 = vpop.f32.mrf.mxu0 }
 0x13b   : > { %v1292_v32 = vld [vmem:[#allocation2 + $0x68] sm:$0xff]  ;;  %v2695_v3 = vpop.f32.mrf.mxu1  ;;  %v1474_v31 = vld [vmem:[#allocation2 + $0x58] sm:$0xff] }
 0x13c   : > { %1462 = vst.msk [vmem:[#allocation2 + $0x78] sm:$0xff] %vm313_vm0, %v1446_v55  ;;  %v1444_v4 = vadd.f32 %v1419_v14, %v1292_v32  ;;  %1616 = vst.msk [vmem:[#allocation2 + $0x8] sm:$0xff] %vm313_vm0, %v1600_v15  ;;  %v1605_v13 = vadd.f32 %v2695_v3, %v1469_v16  ;;  %v1714_v58 = vpop.f32.mrf.mxu0 }
 0x13d   : > { %v1633_v37 = vld [vmem:[#allocation2 + $0x10] sm:$0xff]  ;;  %v1552_v42 = vpop.f32.mrf.mxu1  ;;  %v1472_v2 = vld [vmem:[#allocation2 + $0x48] sm:$0xff] }
 0x13e   : > { %1460 = vst.msk [vmem:[#allocation2 + $0x68] sm:$0xff] %vm313_vm0, %v1444_v4  ;;  %v1763_v53 = vadd.f32 %v2709_v29, %v1633_v37  ;;  %1621 = vst.msk [vmem:[#allocation2 + $0x30] sm:$0xff] %vm313_vm0, %v1605_v13  ;;  %v1603_v5 = vadd.f32 %v1552_v42, %v1467_v36  ;;  %v2714_v52 = vpop.f32.mrf.mxu0 }
 0x13f   : > { %v1631_v26 = vld [vmem:[#allocation2] sm:$0xff]  ;;  %v2696_v27 = vpop.f32.mrf.mxu1  ;;  %v1477_v51 = vld [vmem:[#allocation2 + $0x70] sm:$0xff] }
 0x140   : > { %1779 = vst.msk [vmem:[#allocation2 + $0x10] sm:$0xff] %vm313_vm0, %v1763_v53  ;;  %v1761_v56 = vadd.f32 %v1698_v10, %v1631_v26  ;;  %1619 = vst.msk [vmem:[#allocation2 + $0x20] sm:$0xff] %vm313_vm0, %v1603_v5  ;;  %v1606_v60 = vadd.f32 %v2696_v27, %v1470_v62  ;;  %v1717_v61 = vpop.f32.mrf.mxu0 }
 0x141   : > { %v1634_v25 = vld [vmem:[#allocation2 + $0x18] sm:$0xff]  ;;  %v1555_v17 = vpop.f32.mrf.mxu1  ;;  %v1475_v41 = vld [vmem:[#allocation2 + $0x60] sm:$0xff] }
 0x142   : > { %1777 = vst.msk [vmem:[#allocation2] sm:$0xff] %vm313_vm0, %v1761_v56  ;;  %v1764_v12 = vadd.f32 %v2710_v8, %v1634_v25  ;;  %1622 = vst.msk [vmem:[#allocation2 + $0x38] sm:$0xff] %vm313_vm0, %v1606_v60  ;;  %v1604_v39 = vadd.f32 %v1555_v17, %v1468_v45  ;;  %v2717_v30 = vpop.f32.mrf.mxu0 }
 0x143   : > { %v1632_v20 = vld [vmem:[#allocation2 + $0x8] sm:$0xff]  ;;  %v2699_v49 = vpop.f32.mrf.mxu1  ;;  %v1478_v55 = vld [vmem:[#allocation2 + $0x78] sm:$0xff] }
 0x144   : > { %1780 = vst.msk [vmem:[#allocation2 + $0x18] sm:$0xff] %vm313_vm0, %v1764_v12  ;;  %v1762_v44 = vadd.f32 %v1701_v34, %v1632_v20  ;;  %1620 = vst.msk [vmem:[#allocation2 + $0x28] sm:$0xff] %vm313_vm0, %v1604_v39  ;;  %v1609_v23 = vadd.f32 %v2699_v49, %v1473_v48  ;;  %v1730_v1 = vpop.f32.mrf.mxu0 }
 0x145   : > { %v1637_v54 = vld [vmem:[#allocation2 + $0x30] sm:$0xff]  ;;  %v1568_v6 = vpop.f32.mrf.mxu1  ;;  %v1476_v4 = vld [vmem:[#allocation2 + $0x68] sm:$0xff] }
 0x146   : > { %1778 = vst.msk [vmem:[#allocation2 + $0x8] sm:$0xff] %vm313_vm0, %v1762_v44  ;;  %v1767_v14 = vadd.f32 %v2713_v21, %v1637_v54  ;;  %1625 = vst.msk [vmem:[#allocation2 + $0x50] sm:$0xff] %vm313_vm0, %v1609_v23  ;;  %v1607_v57 = vadd.f32 %v1568_v6, %v1471_v0  ;;  %v2718_v11 = vpop.f32.mrf.mxu0 }
 0x147   : > { %v1635_v28 = vld [vmem:[#allocation2 + $0x20] sm:$0xff]  ;;  %v2700_v46 = vpop.f32.mrf.mxu1  ;;  %v1795_v53 = vld [vmem:[#allocation2 + $0x10] sm:$0xff] }
 0x148   : > { %1783 = vst.msk [vmem:[#allocation2 + $0x30] sm:$0xff] %vm313_vm0, %v1767_v14  ;;  %v1765_v29 = vadd.f32 %v1714_v58, %v1635_v28  ;;  %1623 = vst.msk [vmem:[#allocation2 + $0x40] sm:$0xff] %vm313_vm0, %v1607_v57  ;;  %v1610_v33 = vadd.f32 %v2700_v46, %v1474_v31  ;;  %v1733_v38 = vpop.f32.mrf.mxu0 }
 0x149   : > { %v1638_v9 = vld [vmem:[#allocation2 + $0x38] sm:$0xff]  ;;  %v1571_v40 = vpop.f32.mrf.mxu1  ;;  %v1793_v56 = vld [vmem:[#allocation2] sm:$0xff] }
 0x14a   : > { %1781 = vst.msk [vmem:[#allocation2 + $0x20] sm:$0xff] %vm313_vm0, %v1765_v29  ;;  %v1768_v10 = vadd.f32 %v2714_v52, %v1638_v9  ;;  %1626 = vst.msk [vmem:[#allocation2 + $0x58] sm:$0xff] %vm313_vm0, %v1610_v33  ;;  %v1608_v22 = vadd.f32 %v1571_v40, %v1472_v2  ;;  %v2721_v7 = vpop.f32.mrf.mxu0 }
 0x14b   : > { %v1636_v47 = vld [vmem:[#allocation2 + $0x28] sm:$0xff]  ;;  %v2703_v63 = vpop.f32.mrf.mxu1  ;;  %v1796_v12 = vld [vmem:[#allocation2 + $0x18] sm:$0xff] }
 0x14c   : > { %1784 = vst.msk [vmem:[#allocation2 + $0x38] sm:$0xff] %vm313_vm0, %v1768_v10  ;;  %v1766_v8 = vadd.f32 %v1717_v61, %v1636_v47  ;;  %1624 = vst.msk [vmem:[#allocation2 + $0x48] sm:$0xff] %vm313_vm0, %v1608_v22  ;;  %v1613_v35 = vadd.f32 %v2703_v63, %v1477_v51  ;;  %v1746_v43 = vpop.f32.mrf.mxu0 }
 0x14d   : > { %v1641_v18 = vld [vmem:[#allocation2 + $0x50] sm:$0xff]  ;;  %v1584_v19 = vpop.f32.mrf.mxu1  ;;  %v1794_v44 = vld [vmem:[#allocation2 + $0x8] sm:$0xff] }
 0x14e   : > { %1782 = vst.msk [vmem:[#allocation2 + $0x28] sm:$0xff] %vm313_vm0, %v1766_v8  ;;  %v1771_v34 = vadd.f32 %v2717_v30, %v1641_v18  ;;  %1629 = vst.msk [vmem:[#allocation2 + $0x70] sm:$0xff] %vm313_vm0, %v1613_v35  ;;  %v1611_v50 = vadd.f32 %v1584_v19, %v1475_v41  ;;  %v2722_v24 = vpop.f32.mrf.mxu0 }
 0x14f   : > { %v1639_v59 = vld [vmem:[#allocation2 + $0x40] sm:$0xff]  ;;  %v2704_v15 = vpop.f32.mrf.mxu1  ;;  %v1799_v14 = vld [vmem:[#allocation2 + $0x30] sm:$0xff] }
 0x150   : > { %1787 = vst.msk [vmem:[#allocation2 + $0x50] sm:$0xff] %vm313_vm0, %v1771_v34  ;;  %v1769_v21 = vadd.f32 %v1730_v1, %v1639_v59  ;;  %1627 = vst.msk [vmem:[#allocation2 + $0x60] sm:$0xff] %vm313_vm0, %v1611_v50  ;;  %v1614_v32 = vadd.f32 %v2704_v15, %v1478_v55  ;;  %v1749_v16 = vpop.f32.mrf.mxu0  ;;  %v3589_v55 = vld [vmem:[%s3710_s2] ss:$0 sm:$0xff] }
 0x151   : > { %v1642_v3 = vld [vmem:[#allocation2 + $0x58] sm:$0xff]  ;;  %v1587_v13 = vpop.f32.mrf.mxu1  ;;  %v1797_v29 = vld [vmem:[#allocation2 + $0x20] sm:$0xff] }
 0x152   : > { %1785 = vst.msk [vmem:[#allocation2 + $0x40] sm:$0xff] %vm313_vm0, %v1769_v21  ;;  %v1772_v58 = vadd.f32 %v2718_v11, %v1642_v3  ;;  %1630 = vst.msk [vmem:[#allocation2 + $0x78] sm:$0xff] %vm313_vm0, %v1614_v32  ;;  %v1612_v37 = vadd.f32 %v1587_v13, %v1476_v4  ;;  %v2745_v36 = vpop.f32.mrf.mxu0  ;;  %v3598_v3 = vld [vmem:[%s3711_s3] ss:$0 sm:$0xff] }
 0x153   : > { %v1640_v42 = vld [vmem:[#allocation2 + $0x48] sm:$0xff]  ;;  %v2727_v5 = vpop.f32.mrf.mxu1  ;;  %v1800_v10 = vld [vmem:[#allocation2 + $0x38] sm:$0xff] }
 0x154   : > { %1788 = vst.msk [vmem:[#allocation2 + $0x58] sm:$0xff] %vm313_vm0, %v1772_v58  ;;  %v1770_v52 = vadd.f32 %v1733_v38, %v1640_v42  ;;  %1628 = vst.msk [vmem:[#allocation2 + $0x68] sm:$0xff] %vm313_vm0, %v1612_v37  ;;  %v1947_v26 = vadd.f32 %v2727_v5, %v1795_v53  ;;  %v2050_v62 = vpop.f32.mrf.mxu0 }
 0x155   : > { %v1645_v27 = vld [vmem:[#allocation2 + $0x70] sm:$0xff]  ;;  %v1882_v60 = vpop.f32.mrf.mxu1  ;;  %v1798_v8 = vld [vmem:[#allocation2 + $0x28] sm:$0xff] }
 0x156   : > { %1786 = vst.msk [vmem:[#allocation2 + $0x48] sm:$0xff] %vm313_vm0, %v1770_v52  ;;  %v1775_v61 = vadd.f32 %v2721_v7, %v1645_v27  ;;  %1963 = vst.msk [vmem:[#allocation2 + $0x10] sm:$0xff] %vm313_vm0, %v1947_v26  ;;  %v1945_v25 = vadd.f32 %v1882_v60, %v1793_v56  ;;  %v2746_v45 = vpop.f32.mrf.mxu0 }
 0x157   : > { %v1643_v17 = vld [vmem:[#allocation2 + $0x60] sm:$0xff]  ;;  %v2728_v39 = vpop.f32.mrf.mxu1  ;;  %v1803_v34 = vld [vmem:[#allocation2 + $0x50] sm:$0xff] }
 0x158   : > { %1791 = vst.msk [vmem:[#allocation2 + $0x70] sm:$0xff] %vm313_vm0, %v1775_v61  ;;  %v1773_v30 = vadd.f32 %v1746_v43, %v1643_v17  ;;  %1961 = vst.msk [vmem:[#allocation2] sm:$0xff] %vm313_vm0, %v1945_v25  ;;  %v1948_v20 = vadd.f32 %v2728_v39, %v1796_v12  ;;  %v2053_v48 = vpop.f32.mrf.mxu0 }
 0x159   : > { %v1646_v49 = vld [vmem:[#allocation2 + $0x78] sm:$0xff]  ;;  %v1885_v23 = vpop.f32.mrf.mxu1  ;;  %v1801_v21 = vld [vmem:[#allocation2 + $0x40] sm:$0xff] }
 0x15a   : > { %1789 = vst.msk [vmem:[#allocation2 + $0x60] sm:$0xff] %vm313_vm0, %v1773_v30  ;;  %v1776_v1 = vadd.f32 %v2722_v24, %v1646_v49  ;;  %1964 = vst.msk [vmem:[#allocation2 + $0x18] sm:$0xff] %vm313_vm0, %v1948_v20  ;;  %v1946_v54 = vadd.f32 %v1885_v23, %v1794_v44  ;;  %v2749_v0 = vpop.f32.mrf.mxu0 }
 0x15b   : > { %v1644_v6 = vld [vmem:[#allocation2 + $0x68] sm:$0xff]  ;;  %v2731_v57 = vpop.f32.mrf.mxu1 }
 0x15c   : > { %1792 = vst.msk [vmem:[#allocation2 + $0x78] sm:$0xff] %vm313_vm0, %v1776_v1  ;;  %v1774_v11 = vadd.f32 %v1749_v16, %v1644_v6  ;;  %1962 = vst.msk [vmem:[#allocation2 + $0x8] sm:$0xff] %vm313_vm0, %v1946_v54  ;;  %v1951_v28 = vadd.f32 %v2731_v57, %v1799_v14  ;;  %v2066_v31 = vpop.f32.mrf.mxu0 }
 0x15d   : > { %v1979_v46 = vld [vmem:[#allocation2 + $0x10] sm:$0xff]  ;;  %v1898_v33 = vpop.f32.mrf.mxu1  ;;  %v1802_v27 = vld [vmem:[#allocation2 + $0x48] sm:$0xff] }
 0x15e   : > { %1790 = vst.msk [vmem:[#allocation2 + $0x68] sm:$0xff] %vm313_vm0, %v1774_v11  ;;  %v2115_v38 = vadd.f32 %v2745_v36, %v1979_v46  ;;  %1967 = vst.msk [vmem:[#allocation2 + $0x30] sm:$0xff] %vm313_vm0, %v1951_v28  ;;  %v1949_v9 = vadd.f32 %v1898_v33, %v1797_v29  ;;  %v2750_v2 = vpop.f32.mrf.mxu0  ;;  %v1804_v36 = vld [vmem:[#allocation2 + $0x58] sm:$0xff] }
 0x15f   : > { %v1977_v40 = vld [vmem:[#allocation2] sm:$0xff]  ;;  %v2732_v22 = vpop.f32.mrf.mxu1  ;;  %v1807_v44 = vld [vmem:[#allocation2 + $0x70] sm:$0xff] }
 0x160   : > { %2131 = vst.msk [vmem:[#allocation2 + $0x10] sm:$0xff] %vm313_vm0, %v2115_v38  ;;  %v2113_v7 = vadd.f32 %v2050_v62, %v1977_v40  ;;  %1965 = vst.msk [vmem:[#allocation2 + $0x20] sm:$0xff] %vm313_vm0, %v1949_v9  ;;  %v1952_v47 = vadd.f32 %v2732_v22, %v1800_v10  ;;  %v2069_v51 = vpop.f32.mrf.mxu0 }
 0x161   : > { %v1980_v63 = vld [vmem:[#allocation2 + $0x18] sm:$0xff]  ;;  %v1901_v35 = vpop.f32.mrf.mxu1 }
 0x162   : > { %2129 = vst.msk [vmem:[#allocation2] sm:$0xff] %vm313_vm0, %v2113_v7  ;;  %v2116_v43 = vadd.f32 %v2746_v45, %v1980_v63  ;;  %1968 = vst.msk [vmem:[#allocation2 + $0x38] sm:$0xff] %vm313_vm0, %v1952_v47  ;;  %v1950_v18 = vadd.f32 %v1901_v35, %v1798_v8  ;;  %v3580_v41 = vpop.f32.mrf.mxu0 }
 0x163   : > { %v1978_v19 = vld [vmem:[#allocation2 + $0x8] sm:$0xff]  ;;  %v2735_v50 = vpop.f32.mrf.mxu1  ;;  %v1808_v7 = vld [vmem:[#allocation2 + $0x78] sm:$0xff] }
 0x164   : > { %2132 = vst.msk [vmem:[#allocation2 + $0x18] sm:$0xff] %vm313_vm0, %v2116_v43  ;;  %v2114_v24 = vadd.f32 %v2053_v48, %v1978_v19  ;;  %1966 = vst.msk [vmem:[#allocation2 + $0x28] sm:$0xff] %vm313_vm0, %v1950_v18  ;;  %v1955_v59 = vadd.f32 %v2735_v50, %v1803_v34  ;;  %v3591_v16 = vpop.f32.mrf.mxu0 }
 0x165   : > { %v1983_v15 = vld [vmem:[#allocation2 + $0x30] sm:$0xff]  ;;  %v1914_v32 = vpop.f32.mrf.mxu1 }
 0x166   : > { %2130 = vst.msk [vmem:[#allocation2 + $0x8] sm:$0xff] %vm313_vm0, %v2114_v24  ;;  %v2119_v4 = vadd.f32 %v2749_v0, %v1983_v15  ;;  %1971 = vst.msk [vmem:[#allocation2 + $0x50] sm:$0xff] %vm313_vm0, %v1955_v59  ;;  %v1953_v13 = vadd.f32 %v1914_v32, %v1801_v21  ;;  %v2754_v60 = vpop.f32.mrf.mxu0  ;;  %v1806_v24 = vld [vmem:[#allocation2 + $0x68] sm:$0xff] }
 0x167   : > { %v2147_v58 = vld [vmem:[#allocation2 + $0x10] sm:$0xff]  ;;  %v1981_v37 = vld [vmem:[#allocation2 + $0x20] sm:$0xff]  ;;  %v2736_v42 = vpop.f32.mrf.mxu1 }
 0x168   : > { %v2170_v53 = vmul.f32 %v3589_v55, %v2147_v58  ;;  %2135 = vst.msk [vmem:[#allocation2 + $0x30] sm:$0xff] %vm313_vm0, %v2119_v4  ;;  %v2117_v5 = vadd.f32 %v2066_v31, %v1981_v37  ;;  %1969 = vst.msk [vmem:[#allocation2 + $0x40] sm:$0xff] %vm313_vm0, %v1953_v13  ;;  %v1956_v52 = vadd.f32 %v2736_v42, %v1804_v36  ;;  %v2085_v14 = vpop.f32.mrf.mxu0  ;;  %v1805_v31 = vld [vmem:[#allocation2 + $0x60] sm:$0xff] }
 0x169   : > { %v2145_v26 = vld [vmem:[#allocation2] sm:$0xff]  ;;  %v1984_v62 = vld [vmem:[#allocation2 + $0x38] sm:$0xff]  ;;  %v1917_v56 = vpop.f32.mrf.mxu1 }
 0x16a   : > { %v2193_v61 = vadd.f32 %v3598_v3, %v2170_v53  ;;  %v2168_v25 = vmul.f32 %v3589_v55, %v2145_v26  ;;  %2133 = vst.msk [vmem:[#allocation2 + $0x20] sm:$0xff] %vm313_vm0, %v2117_v5  ;;  %v2120_v45 = vadd.f32 %v2750_v2, %v1984_v62  ;;  %1972 = vst.msk [vmem:[#allocation2 + $0x58] sm:$0xff] %vm313_vm0, %v1956_v52  ;;  %v2757_v43 = vpop.f32.mrf.mxu0 }
 0x16b   : > { %v1954_v17 = vadd.f32 %v1917_v56, %v1802_v27  ;;  %v2148_v12 = vld [vmem:[#allocation2 + $0x18] sm:$0xff]  ;;  %v1982_v39 = vld [vmem:[#allocation2 + $0x28] sm:$0xff]  ;;  %v2739_v30 = vpop.f32.mrf.mxu1 }
 0x16c   : > { %vm2209_vm7 = vcmp.ge.f32.partialorder %v2193_v61, 0.0  ;;  %v2225_v20 = vmul.f32 0.1, %v2193_v61  ;;  %v2191_v48 = vadd.f32 %v3598_v3, %v2168_v25  ;;  %v2171_v49 = vmul.f32 %v3589_v55, %v2148_v12  ;;  %2136 = vst.msk [vmem:[#allocation2 + $0x38] sm:$0xff] %vm313_vm0, %v2120_v45  ;;  %v2098_v36 = vpop.f32.mrf.mxu0 }
 0x16d   : > { %1970 = vst.msk [vmem:[#allocation2 + $0x48] sm:$0xff] %vm313_vm0, %v1954_v17  ;;  %v2146_v23 = vld [vmem:[#allocation2 + $0x8] sm:$0xff]  ;;  %v2118_v1 = vadd.f32 %v2069_v51, %v1982_v39  ;;  %v1987_v54 = vld [vmem:[#allocation2 + $0x50] sm:$0xff]  ;;  %v1959_v0 = vadd.f32 %v2739_v30, %v1807_v44  ;;  %v1930_v6 = vpop.f32.mrf.mxu1 }
 0x16e   : > { %v2241_v57 = vsel %vm2209_vm7, %v2193_v61, %v2225_v20  ;;  %vm2207_vm8 = vcmp.ge.f32.partialorder %v2191_v48, 0.0  ;;  %v2223_v11 = vmul.f32 0.1, %v2191_v48  ;;  %v2194_v28 = vadd.f32 %v3598_v3, %v2171_v49  ;;  %v2758_v39 = vpop.f32.mrf.mxu0 }
 0x16f   : > { %2257 = vst.msk [vmem:[%s3613_s10 + $0x10] sm:$0xff] %vm313_vm0, %v2241_v57  ;;  %v2169_v46 = vmul.f32 %v3589_v55, %v2146_v23  ;;  %v2151_v29 = vld [vmem:[#allocation2 + $0x30] sm:$0xff]  ;;  %2134 = vst.msk [vmem:[#allocation2 + $0x28] sm:$0xff] %vm313_vm0, %v2118_v1  ;;  %v2123_v33 = vadd.f32 %v3580_v41, %v1987_v54  ;;  %v1985_v38 = vld [vmem:[#allocation2 + $0x40] sm:$0xff]  ;;  %v1957_v9 = vadd.f32 %v1930_v6, %v1805_v31  ;;  %v2740_v2 = vpop.f32.mrf.mxu1 }
 0x170   : > { %1975 = vst.msk [vmem:[#allocation2 + $0x70] sm:$0xff] %vm313_vm0, %v1959_v0  ;;  %v2239_v40 = vsel %vm2207_vm8, %v2191_v48, %v2223_v11  ;;  %vm2210_vm9 = vcmp.ge.f32.partialorder %v2194_v28, 0.0  ;;  %v2226_v10 = vmul.f32 0.1, %v2194_v28  ;;  %v2174_v22 = vmul.f32 %v3589_v55, %v2151_v29 }
 0x171   : > { %2255 = vst.msk [vmem:[%s3613_s10] sm:$0xff] %vm313_vm0, %v2239_v40  ;;  %v2192_v47 = vadd.f32 %v3598_v3, %v2169_v46  ;;  %v2149_v51 = vld [vmem:[#allocation2 + $0x20] sm:$0xff]  ;;  %2139 = vst.msk [vmem:[#allocation2 + $0x50] sm:$0xff] %vm313_vm0, %v2123_v33  ;;  %v2121_v63 = vadd.f32 %v3591_v16, %v1985_v38  ;;  %v1988_v8 = vld [vmem:[#allocation2 + $0x58] sm:$0xff]  ;;  %v1960_v35 = vadd.f32 %v2740_v2, %v1808_v7  ;;  %v1933_v18 = vpop.f32.mrf.mxu1 }
 0x172   : > { %1973 = vst.msk [vmem:[#allocation2 + $0x60] sm:$0xff] %vm313_vm0, %v1957_v9  ;;  %v2242_v41 = vsel %vm2210_vm9, %v2194_v28, %v2226_v10  ;;  %v2197_v19 = vadd.f32 %v3598_v3, %v2174_v22  ;;  %v2172_v34 = vmul.f32 %v3589_v55, %v2149_v51  ;;  %v2124_v50 = vadd.f32 %v2754_v60, %v1988_v8  ;;  %v2101_v28 = vpop.f32.mrf.mxu0 }
 0x173   : > { %2258 = vst.msk [vmem:[%s3613_s10 + $0x18] sm:$0xff] %vm313_vm0, %v2242_v41  ;;  %vm2208_vm10 = vcmp.ge.f32.partialorder %v2192_v47, 0.0  ;;  %v2224_v59 = vmul.f32 0.1, %v2192_v47  ;;  %v2152_v15 = vld [vmem:[#allocation2 + $0x38] sm:$0xff]  ;;  %2137 = vst.msk [vmem:[#allocation2 + $0x40] sm:$0xff] %vm313_vm0, %v2121_v63  ;;  %v1958_v32 = vadd.f32 %v1933_v18, %v1806_v24 }
 0x174   : > { %v1986_v21 = vld [vmem:[#allocation2 + $0x48] sm:$0xff]  ;;  %1976 = vst.msk [vmem:[#allocation2 + $0x78] sm:$0xff] %vm313_vm0, %v1960_v35  ;;  %vm2213_vm11 = vcmp.ge.f32.partialorder %v2197_v19, 0.0  ;;  %v2229_v16 = vmul.f32 0.1, %v2197_v19  ;;  %v2195_v4 = vadd.f32 %v3598_v3, %v2172_v34  ;;  %v2175_v13 = vmul.f32 %v3589_v55, %v2152_v15  ;;  %2140 = vst.msk [vmem:[#allocation2 + $0x58] sm:$0xff] %vm313_vm0, %v2124_v50 }
 0x175   : > { %v2240_v58 = vsel %vm2208_vm10, %v2192_v47, %v2224_v59  ;;  %v2122_v37 = vadd.f32 %v2085_v14, %v1986_v21  ;;  %1974 = vst.msk [vmem:[#allocation2 + $0x68] sm:$0xff] %vm313_vm0, %v1958_v32 }
 0x176   : > { %2256 = vst.msk [vmem:[%s3613_s10 + $0x8] sm:$0xff] %vm313_vm0, %v2240_v58  ;;  %v2245_v42 = vsel %vm2213_vm11, %v2197_v19, %v2229_v16  ;;  %vm2211_vm12 = vcmp.ge.f32.partialorder %v2195_v4, 0.0  ;;  %v2227_v53 = vmul.f32 0.1, %v2195_v4  ;;  %v2198_v5 = vadd.f32 %v3598_v3, %v2175_v13  ;;  %v2150_v52 = vld [vmem:[#allocation2 + $0x28] sm:$0xff] }
 0x177   : > { %v1991_v26 = vld [vmem:[#allocation2 + $0x70] sm:$0xff]  ;;  %2261 = vst.msk [vmem:[%s3613_s10 + $0x30] sm:$0xff] %vm313_vm0, %v2245_v42  ;;  %v2173_v62 = vmul.f32 %v3589_v55, %v2150_v52  ;;  %2138 = vst.msk [vmem:[#allocation2 + $0x48] sm:$0xff] %vm313_vm0, %v2122_v37 }
 0x178   : > { %v2127_v27 = vadd.f32 %v2757_v43, %v1991_v26  ;;  %v2243_v56 = vsel %vm2211_vm12, %v2195_v4, %v2227_v53  ;;  %vm2214_vm13 = vcmp.ge.f32.partialorder %v2198_v5, 0.0  ;;  %v2230_v60 = vmul.f32 0.1, %v2198_v5  ;;  %v2155_v61 = vld [vmem:[#allocation2 + $0x50] sm:$0xff] }
 0x179   : > { %v1989_v25 = vld [vmem:[#allocation2 + $0x60] sm:$0xff]  ;;  %2259 = vst.msk [vmem:[%s3613_s10 + $0x20] sm:$0xff] %vm313_vm0, %v2243_v56  ;;  %v2196_v45 = vadd.f32 %v3598_v3, %v2173_v62  ;;  %v2178_v17 = vmul.f32 %v3589_v55, %v2155_v61 }
 0x17a   : > { %2143 = vst.msk [vmem:[#allocation2 + $0x70] sm:$0xff] %vm313_vm0, %v2127_v27  ;;  %v2125_v12 = vadd.f32 %v2098_v36, %v1989_v25  ;;  %v2246_v30 = vsel %vm2214_vm13, %v2198_v5, %v2230_v60  ;;  %v2153_v20 = vld [vmem:[#allocation2 + $0x40] sm:$0xff] }
 0x17b   : > { %v1992_v48 = vld [vmem:[#allocation2 + $0x78] sm:$0xff]  ;;  %2262 = vst.msk [vmem:[%s3613_s10 + $0x38] sm:$0xff] %vm313_vm0, %v2246_v30  ;;  %vm2212_vm14 = vcmp.ge.f32.partialorder %v2196_v45, 0.0  ;;  %v2228_v49 = vmul.f32 0.1, %v2196_v45  ;;  %v2201_v44 = vadd.f32 %v3598_v3, %v2178_v17  ;;  %v2176_v23 = vmul.f32 %v3589_v55, %v2153_v20 }
 0x17c   : > { %v2156_v1 = vld [vmem:[#allocation2 + $0x58] sm:$0xff]  ;;  %2141 = vst.msk [vmem:[#allocation2 + $0x60] sm:$0xff] %vm313_vm0, %v2125_v12  ;;  %v2128_v0 = vadd.f32 %v2758_v39, %v1992_v48  ;;  %v1990_v6 = vld [vmem:[#allocation2 + $0x68] sm:$0xff] }
 0x17d   : > { %v2179_v54 = vmul.f32 %v3589_v55, %v2156_v1  ;;  %v2244_v14 = vsel %vm2212_vm14, %v2196_v45, %v2228_v49  ;;  %vm2217_vm15 = vcmp.ge.f32.partialorder %v2201_v44, 0.0  ;;  %v2233_v57 = vmul.f32 0.1, %v2201_v44 }
 0x17e   : > { %v2199_v11 = vadd.f32 %v3598_v3, %v2176_v23  ;;  %2260 = vst.msk [vmem:[%s3613_s10 + $0x28] sm:$0xff] %vm313_vm0, %v2244_v14  ;;  %v2154_v46 = vld [vmem:[#allocation2 + $0x48] sm:$0xff]  ;;  %2144 = vst.msk [vmem:[#allocation2 + $0x78] sm:$0xff] %vm313_vm0, %v2128_v0  ;;  %v2126_v29 = vadd.f32 %v2101_v28, %v1990_v6 }
 0x17f   : > { %v2202_v31 = vadd.f32 %v3598_v3, %v2179_v54  ;;  %v2249_v33 = vsel %vm2217_vm15, %v2201_v44, %v2233_v57  ;;  %v2177_v9 = vmul.f32 %v3589_v55, %v2154_v46 }
 0x180   : > { %vm2215_vm1 = vcmp.ge.f32.partialorder %v2199_v11, 0.0  ;;  %v2231_v38 = vmul.f32 0.1, %v2199_v11  ;;  %2265 = vst.msk [vmem:[%s3613_s10 + $0x50] sm:$0xff] %vm313_vm0, %v2249_v33  ;;  %2142 = vst.msk [vmem:[#allocation2 + $0x68] sm:$0xff] %vm313_vm0, %v2126_v29 }
 0x181   : > { %vm2218_vm2 = vcmp.ge.f32.partialorder %v2202_v31, 0.0  ;;  %v2234_v2 = vmul.f32 0.1, %v2202_v31  ;;  %v2159_v40 = vld [vmem:[#allocation2 + $0x70] sm:$0xff]  ;;  %v2200_v22 = vadd.f32 %v3598_v3, %v2177_v9 }
 0x182   : > { %v2247_v10 = vsel %vm2215_vm1, %v2199_v11, %v2231_v38  ;;  %v2182_v7 = vmul.f32 %v3589_v55, %v2159_v40 }
 0x183   : > { %2263 = vst.msk [vmem:[%s3613_s10 + $0x40] sm:$0xff] %vm313_vm0, %v2247_v10  ;;  %v2250_v47 = vsel %vm2218_vm2, %v2202_v31, %v2234_v2  ;;  %v2157_v51 = vld [vmem:[#allocation2 + $0x60] sm:$0xff]  ;;  %vm2216_vm3 = vcmp.ge.f32.partialorder %v2200_v22, 0.0  ;;  %v2232_v63 = vmul.f32 0.1, %v2200_v22 }
 0x184   : > { %2266 = vst.msk [vmem:[%s3613_s10 + $0x58] sm:$0xff] %vm313_vm0, %v2250_v47  ;;  %v2205_v8 = vadd.f32 %v3598_v3, %v2182_v7  ;;  %v2180_v35 = vmul.f32 %v3589_v55, %v2157_v51 }
 0x185   : > { %v2248_v43 = vsel %vm2216_vm3, %v2200_v22, %v2232_v63  ;;  %v2160_v19 = vld [vmem:[#allocation2 + $0x78] sm:$0xff] }
 0x186   : > { %vm2221_vm4 = vcmp.ge.f32.partialorder %v2205_v8, 0.0  ;;  %v2237_v18 = vmul.f32 0.1, %v2205_v8  ;;  %v2203_v41 = vadd.f32 %v3598_v3, %v2180_v35  ;;  %2264 = vst.msk [vmem:[%s3613_s10 + $0x48] sm:$0xff] %vm313_vm0, %v2248_v43  ;;  %v2183_v34 = vmul.f32 %v3589_v55, %v2160_v19 }
 0x187   : > { %v2158_v59 = vld [vmem:[#allocation2 + $0x68] sm:$0xff] }
 0x188   : > { %v2253_v50 = vsel %vm2221_vm4, %v2205_v8, %v2237_v18  ;;  %vm2219_vm5 = vcmp.ge.f32.partialorder %v2203_v41, 0.0  ;;  %v2235_v24 = vmul.f32 0.1, %v2203_v41  ;;  %v2206_v15 = vadd.f32 %v3598_v3, %v2183_v34 }
 0x189   : > { %2269 = vst.msk [vmem:[%s3613_s10 + $0x70] sm:$0xff] %vm313_vm0, %v2253_v50  ;;  %v2181_v21 = vmul.f32 %v3589_v55, %v2158_v59 }
 0x18a   : > { %v2251_v32 = vsel %vm2219_vm5, %v2203_v41, %v2235_v24  ;;  %vm2222_vm6 = vcmp.ge.f32.partialorder %v2206_v15, 0.0  ;;  %v2238_v16 = vmul.f32 0.1, %v2206_v15 }
 0x18b   : > { %2267 = vst.msk [vmem:[%s3613_s10 + $0x60] sm:$0xff] %vm313_vm0, %v2251_v32  ;;  %v2204_v4 = vadd.f32 %v3598_v3, %v2181_v21 }
 0x18c   : > { %v2254_v13 = vsel %vm2222_vm6, %v2206_v15, %v2238_v16 }
 0x18d   : > { %vm2220_vm7 = vcmp.ge.f32.partialorder %v2204_v4, 0.0  ;;  %v2236_v58 = vmul.f32 0.1, %v2204_v4  ;;  %2270 = vst.msk [vmem:[%s3613_s10 + $0x78] sm:$0xff] %vm313_vm0, %v2254_v13 }
 0x18f   : > { %v2252_v37 = vsel %vm2220_vm7, %v2204_v4, %v2236_v58 }
 0x190   : > { %2268 = vst.msk [vmem:[%s3613_s10 + $0x68] sm:$0xff] %vm313_vm0, %v2252_v37 }
 0x191 PF: > { %s14_s19 = sadd.s32 1, %s2860_s19   ;;  %s3724_s15 = smov %s2852_s17 }
 0x192   : > { %p11_p7 = scmp.ge.s32.totalorder %s14_s19, 6   ;;  %s3725_s16 = smov %s2856_s18 }
 0x193   : > { %s3726_s17 = smov %s3729_s20  ;;  %s3727_s18 = smov %s3733_s21 }
 0x194   :  { %13 = sbr.rel (!%p11_p7) target bundleno = 3 (0x3), region = 74 }

</bundles_post_ra>
